<compile_context>
chip_gen: v7x
topology: tpu7x:2x2x1
jax: 0.10.0
libtpu: 0.0.40
codegen_flags: <defaults>
</compile_context>

<pallas_src>
import functools

import jax
import jax.numpy as jnp
import numpy as np
from jax import lax
from jax.experimental import pallas as pl
from jax.experimental.pallas import tpu as pltpu


def _round_up(x, m):
    return -(-x // m) * m


# ----------------------------------------------------------------------------
# Pallas kernel: TD output depth planes per grid step
# ----------------------------------------------------------------------------
def _conv3d_relu_kernel(x_ref, w_ref, b_ref, o_ref, *,
                        Cip, Wp, L_out, LT, SLAB_W, TD):
    # x_ref : (Dp*Cip, PL)    bf16  whole padded volume of one batch element,
    #                               row index = (padded depth plane)*Cip + channel
    # w_ref : (9, Co, 3*Cip)  bf16  tap kh*3+kw -> (Co, kd*Cip + ci)
    # b_ref : (Co, 1)         f32
    # o_ref : (Co, TD*L_out)  f32   the TD output planes of this grid step
    db = pl.program_id(1)
    w = w_ref[...]                                   # tiny; hoisted out of the loop
    b = b_ref[...]
    nch = L_out // LT

    def plane(i, carry):
        d = db * TD + i                              # global output depth plane
        row0 = pl.multiple_of(d * Cip, Cip)          # tile-aligned sublane start
        for c in range(nch):                         # static lane chunks
            lane0 = c * LT                           # static, multiple of 128
            # one aligned (3*Cip, SLAB_W) slab load per chunk; all 9 taps reuse it
            slab = x_ref[pl.ds(row0, 3 * Cip), pl.ds(lane0, SLAB_W)]
            acc = None
            for kh in range(3):
                for kw in range(3):
                    off = kh * Wp + kw               # static lane offset of this tap
                    contrib = jnp.dot(w[kh * 3 + kw], slab[:, off:off + LT],
                                      preferred_element_type=jnp.float32)
                    acc = contrib if acc is None else acc + contrib
            out = jnp.maximum(acc + b, 0.0)          # bias + ReLU, f32
            dst = pl.multiple_of(i * L_out + lane0, 128)
            o_ref[:, pl.ds(dst, LT)] = out.astype(o_ref.dtype)
        return carry

    lax.fori_loop(0, TD, plane, 0)


# ----------------------------------------------------------------------------
# Pallas wrapper: Conv3d(3x3x3, stride 1, pad 1) + bias + ReLU
# ----------------------------------------------------------------------------
def conv3d_relu_pallas(x, weight, bias):
    """x: (N, Ci, D, H, W), weight: (Co, Ci, 3, 3, 3), bias: (Co,).
    Returns (N, Co, D, H, W) float32 (PyTorch Conv3d + ReLU semantics)."""
    N, Ci, D, H, W = x.shape
    Co = weight.shape[0]

    Wp, Hp, Dp = W + 2, H + 2, D + 2
    Cip = _round_up(Ci, 16)                       # bf16 sublane-packing multiple
    L = H * Wp                                    # logical flattened output plane
    L_out = _round_up(L, 128)                     # lane-dense output plane width
    PL = _round_up(max(Hp * Wp, L_out + 2 * Wp + 2), 128)
    # halo reach (max tap offset + L_out) must stay inside the zero-padded plane
    assert PL >= L_out + 2 * Wp + 2

    # grid coarsening: TD output depth planes per grid step
    TD = next(t for t in (8, 4, 2, 1) if D % t == 0)
    # lane chunking inside a plane (keeps vreg pressure low, chunks stay >=128)
    lt_units = L_out // 128
    nch = next(c for c in range(1, lt_units + 1)
               if lt_units % c == 0 and (L_out // c) <= 512)
    LT = L_out // nch
    SLAB_W = LT + _round_up(2 * Wp + 2, 128)      # chunk + halo reach, 128-aligned
    assert (L_out - LT) + SLAB_W <= PL

    # ---- layout prep (pure data movement, stays in XLA) ----
    # channels -> Cip, 1-voxel spatial halo, flatten (h,w) plane, pad plane to PL,
    # then flatten (padded depth, channel) onto the sublane axis.
    xb = x.astype(jnp.bfloat16)
    xp = jnp.pad(xb, ((0, 0), (0, Cip - Ci), (1, 1), (1, 1), (1, 1)))  # (N,Cip,Dp,Hp,Wp)
    xp = jnp.transpose(xp, (0, 2, 1, 3, 4)).reshape(N, Dp, Cip, Hp * Wp)
    xp = jnp.pad(xp, ((0, 0), (0, 0), (0, 0), (0, PL - Hp * Wp)))
    xp = xp.reshape(N, Dp * Cip, PL)

    # weight -> (tap=kh*3+kw, Co, kd*Cip + ci) bf16, zero in padded channels
    w_t = jnp.transpose(weight, (3, 4, 0, 2, 1))                       # (kh,kw,Co,kd,Ci)
    w_t = jnp.pad(w_t, ((0, 0), (0, 0), (0, 0), (0, 0), (0, Cip - Ci)))
    w_r = w_t.reshape(9, Co, 3 * Cip).astype(jnp.bfloat16)
    b_r = bias.reshape(Co, 1).astype(jnp.float32)

    kern = functools.partial(_conv3d_relu_kernel, Cip=Cip, Wp=Wp,
                             L_out=L_out, LT=LT, SLAB_W=SLAB_W, TD=TD)

    cost = pl.CostEstimate(
        flops=2 * 27 * Cip * Co * N * D * L_out,
        transcendentals=0,
        bytes_accessed=xp.size * 2 + w_r.size * 2 + b_r.size * 4
        + N * Co * D * L_out * 4,
    )

    out = pl.pallas_call(
        kern,
        out_shape=jax.ShapeDtypeStruct((N, Co, D * L_out), jnp.float32),
        grid=(N, D // TD),
        in_specs=[
            # whole padded volume of batch n; block index constant across the
            # depth-block axis -> the block stays resident, every input byte is
            # DMA'd from HBM exactly once per batch element.
            pl.BlockSpec((None, Dp * Cip, PL), lambda n, db: (n, 0, 0)),
            pl.BlockSpec((9, Co, 3 * Cip), lambda n, db: (0, 0, 0)),
            pl.BlockSpec((Co, 1), lambda n, db: (0, 0)),
        ],
        out_specs=pl.BlockSpec((None, Co, TD * L_out), lambda n, db: (n, 0, db)),
        compiler_params=pltpu.CompilerParams(
            dimension_semantics=("parallel", "arbitrary")),
        cost_estimate=cost,
    )(xp, w_r, b_r)

    # drop lane padding and the 2 junk columns per row -- already NCDHW order,
    # no transpose needed.
    out = out.reshape(N, Co, D, L_out)[:, :, :, :L]
    out = out.reshape(N, Co, D, H, Wp)[..., :W]
    return out


# ----------------------------------------------------------------------------
# DecoderBlock forward (upsample + concat in JAX, conv+bias+ReLU in Pallas)
# ----------------------------------------------------------------------------
def nearest_upsample_x2(x):
    """nn.Upsample(scale_factor=2) default mode='nearest' for 5-D input."""
    x = jnp.repeat(x, 2, axis=2)
    x = jnp.repeat(x, 2, axis=3)
    x = jnp.repeat(x, 2, axis=4)
    return x


@jax.jit
def decoder_block_forward(params, x, skip):
    # cast to bf16 *before* the 8x upsample so the materialized intermediates
    # (upsampled + concatenated volume) are half the bytes.
    up = nearest_upsample_x2(x.astype(jnp.bfloat16))          # (N, Cd, 2D, 2H, 2W)
    cat = jnp.concatenate([up, skip.astype(jnp.bfloat16)], axis=1)
    return conv3d_relu_pallas(cat, params["w"], params["b"])


# ----------------------------------------------------------------------------
# main
# ----------------------------------------------------------------------------
if __name__ == "__main__":
    key = jax.random.PRNGKey(0)
    k1, k2, k3, k4 = jax.random.split(key, 4)

    N = 2
    deconv_c, skip_c, out_c = 8, 4, 8
    D, H, W = 8, 16, 16                                  # low-res decoder input

    x = jax.random.normal(k1, (N, deconv_c, D, H, W), jnp.float32)
    skip = jax.random.normal(k2, (N, skip_c, 2 * D, 2 * H, 2 * W), jnp.float32)

    fan_in = (deconv_c + skip_c) * 27
    params = {
        "w": jax.random.normal(
            k3, (out_c, deconv_c + skip_c, 3, 3, 3), jnp.float32) / np.sqrt(fan_in),
        "b": 0.01 * jax.random.normal(k4, (out_c,), jnp.float32),
    }

    out = decoder_block_forward(params, x, skip)
    jax.block_until_ready(out)
    assert out.shape == (N, out_c, 2 * D, 2 * H, 2 * W), out.shape

    # correctness check against an XLA reference using the same bf16 operand casts
    def ref_forward(params, x, skip):
        up = nearest_upsample_x2(x)
        cat = jnp.concatenate([up, skip], axis=1)
        xb = cat.astype(jnp.bfloat16).astype(jnp.float32)
        wb = params["w"].astype(jnp.bfloat16).astype(jnp.float32)
        conv = jax.lax.conv_general_dilated(
            xb, wb, window_strides=(1, 1, 1),
            padding=((1, 1), (1, 1), (1, 1)),
            dimension_numbers=("NCDHW", "OIDHW", "NCDHW"),
            precision=jax.lax.Precision.HIGHEST,
        )
        return jnp.maximum(conv + params["b"].reshape(1, -1, 1, 1, 1), 0.0)

    ref = jax.jit(ref_forward)(params, x, skip)
    np.testing.assert_allclose(np.asarray(out), np.asarray(ref), atol=2e-2, rtol=2e-2)

    print("KERNEL_OK")
</pallas_src>

<mosaic_0001>
module attributes {stable_mosaic.version = 11 : i64} {
  func.func @_conv3d_relu_kernel(%arg0: i32, %arg1: i32, %arg2: memref<1x288x1280xbf16, #tpu.memory_space<vmem>>, %arg3: memref<9x8x48xbf16, #tpu.memory_space<vmem>>, %arg4: memref<8x1xf32, #tpu.memory_space<vmem>>, %arg5: memref<1x8x9216xf32, #tpu.memory_space<vmem>>) attributes {dimension_semantics = [#tpu.dimension_semantics<parallel>, #tpu.dimension_semantics<arbitrary>], iteration_bounds = array<i64: 2, 2>, scalar_prefetch = 0 : i64, scratch_operands = 0 : i64, tpu.core_type = #tpu.core_type<tc>, window_params = [{transform_indices = @transform_0, window_bounds = array<i64: 1, 288, 1280>}, {pipeline_mode = #tpu.pipeline_mode<synchronous>, transform_indices = @transform_1, window_bounds = array<i64: 9, 8, 48>}, {pipeline_mode = #tpu.pipeline_mode<synchronous>, transform_indices = @transform_2, window_bounds = array<i64: 8, 1>}, {transform_indices = @transform_3, window_bounds = array<i64: 1, 8, 9216>}]} {
    %c0 = arith.constant 0 : index
    %c0_0 = arith.constant 0 : index
    %c0_1 = arith.constant 0 : index
    %0 = vector.load %arg3[%c0, %c0_0, %c0_1] : memref<9x8x48xbf16, #tpu.memory_space<vmem>>, vector<9x8x48xbf16>
    %c0_2 = arith.constant 0 : index
    %c0_3 = arith.constant 0 : index
    %1 = vector.load %arg4[%c0_2, %c0_3] : memref<8x1xf32, #tpu.memory_space<vmem>>, vector<8x1xf32>
    %c0_i32 = arith.constant 0 : i32
    %c8_i32 = arith.constant 8 : i32
    %2 = arith.addi %c0_i32, %c8_i32 : i32
    %c1_i32 = arith.constant 1 : i32
    scf.for %arg6 = %c0_i32 to %2 step %c1_i32  : i32 {
      %c8_i32_5 = arith.constant 8 : i32
      %3 = arith.muli %arg1, %c8_i32_5 : i32
      %4 = arith.addi %3, %arg6 : i32
      %c16_i32 = arith.constant 16 : i32
      %5 = arith.muli %4, %c16_i32 : i32
      %6 = tpu.assume_multiple %5, 16 : i32
      %c0_6 = arith.constant 0 : index
      %7 = arith.index_cast %6 : i32 to index
      %c0_7 = arith.constant 0 : index
      %8 = vector.load %arg2[%c0_6, %7, %c0_7] : memref<1x288x1280xbf16, #tpu.memory_space<vmem>>, vector<1x48x512xbf16>
      %9 = vector.shape_cast %8 : vector<1x48x512xbf16> to vector<48x512xbf16>
      %10 = vector.extract_strided_slice %0 {offsets = [0, 0, 0], sizes = [1, 8, 48], strides = [1, 1, 1]} : vector<9x8x48xbf16> to vector<1x8x48xbf16>
      %11 = vector.shape_cast %10 : vector<1x8x48xbf16> to vector<8x48xbf16>
      %12 = vector.extract_strided_slice %9 {offsets = [0, 0], sizes = [48, 384], strides = [1, 1]} : vector<48x512xbf16> to vector<48x384xbf16>
      %cst = arith.constant dense<0.000000e+00> : vector<8x384xf32>
      %13 = tpu.matmul %11, %12, %cst {dimension_numbers = #tpu.dot_dimension_numbers<[1], [0], [0], [1], [0, 0, 1, 1], [], []>} : vector<8x48xbf16>, vector<48x384xbf16>, vector<8x384xf32> -> vector<8x384xf32>
      %14 = vector.extract_strided_slice %0 {offsets = [1, 0, 0], sizes = [1, 8, 48], strides = [1, 1, 1]} : vector<9x8x48xbf16> to vector<1x8x48xbf16>
      %15 = vector.shape_cast %14 : vector<1x8x48xbf16> to vector<8x48xbf16>
      %16 = vector.extract_strided_slice %9 {offsets = [0, 1], sizes = [48, 384], strides = [1, 1]} : vector<48x512xbf16> to vector<48x384xbf16>
      %cst_8 = arith.constant dense<0.000000e+00> : vector<8x384xf32>
      %17 = tpu.matmul %15, %16, %cst_8 {dimension_numbers = #tpu.dot_dimension_numbers<[1], [0], [0], [1], [0, 0, 1, 1], [], []>} : vector<8x48xbf16>, vector<48x384xbf16>, vector<8x384xf32> -> vector<8x384xf32>
      %18 = arith.addf %13, %17 : vector<8x384xf32>
      %19 = vector.extract_strided_slice %0 {offsets = [2, 0, 0], sizes = [1, 8, 48], strides = [1, 1, 1]} : vector<9x8x48xbf16> to vector<1x8x48xbf16>
      %20 = vector.shape_cast %19 : vector<1x8x48xbf16> to vector<8x48xbf16>
      %21 = vector.extract_strided_slice %9 {offsets = [0, 2], sizes = [48, 384], strides = [1, 1]} : vector<48x512xbf16> to vector<48x384xbf16>
      %cst_9 = arith.constant dense<0.000000e+00> : vector<8x384xf32>
      %22 = tpu.matmul %20, %21, %cst_9 {dimension_numbers = #tpu.dot_dimension_numbers<[1], [0], [0], [1], [0, 0, 1, 1], [], []>} : vector<8x48xbf16>, vector<48x384xbf16>, vector<8x384xf32> -> vector<8x384xf32>
      %23 = arith.addf %18, %22 : vector<8x384xf32>
      %24 = vector.extract_strided_slice %0 {offsets = [3, 0, 0], sizes = [1, 8, 48], strides = [1, 1, 1]} : vector<9x8x48xbf16> to vector<1x8x48xbf16>
      %25 = vector.shape_cast %24 : vector<1x8x48xbf16> to vector<8x48xbf16>
      %26 = vector.extract_strided_slice %9 {offsets = [0, 34], sizes = [48, 384], strides = [1, 1]} : vector<48x512xbf16> to vector<48x384xbf16>
      %cst_10 = arith.constant dense<0.000000e+00> : vector<8x384xf32>
      %27 = tpu.matmul %25, %26, %cst_10 {dimension_numbers = #tpu.dot_dimension_numbers<[1], [0], [0], [1], [0, 0, 1, 1], [], []>} : vector<8x48xbf16>, vector<48x384xbf16>, vector<8x384xf32> -> vector<8x384xf32>
      %28 = arith.addf %23, %27 : vector<8x384xf32>
      %29 = vector.extract_strided_slice %0 {offsets = [4, 0, 0], sizes = [1, 8, 48], strides = [1, 1, 1]} : vector<9x8x48xbf16> to vector<1x8x48xbf16>
      %30 = vector.shape_cast %29 : vector<1x8x48xbf16> to vector<8x48xbf16>
      %31 = vector.extract_strided_slice %9 {offsets = [0, 35], sizes = [48, 384], strides = [1, 1]} : vector<48x512xbf16> to vector<48x384xbf16>
      %cst_11 = arith.constant dense<0.000000e+00> : vector<8x384xf32>
      %32 = tpu.matmul %30, %31, %cst_11 {dimension_numbers = #tpu.dot_dimension_numbers<[1], [0], [0], [1], [0, 0, 1, 1], [], []>} : vector<8x48xbf16>, vector<48x384xbf16>, vector<8x384xf32> -> vector<8x384xf32>
      %33 = arith.addf %28, %32 : vector<8x384xf32>
      %34 = vector.extract_strided_slice %0 {offsets = [5, 0, 0], sizes = [1, 8, 48], strides = [1, 1, 1]} : vector<9x8x48xbf16> to vector<1x8x48xbf16>
      %35 = vector.shape_cast %34 : vector<1x8x48xbf16> to vector<8x48xbf16>
      %36 = vector.extract_strided_slice %9 {offsets = [0, 36], sizes = [48, 384], strides = [1, 1]} : vector<48x512xbf16> to vector<48x384xbf16>
      %cst_12 = arith.constant dense<0.000000e+00> : vector<8x384xf32>
      %37 = tpu.matmul %35, %36, %cst_12 {dimension_numbers = #tpu.dot_dimension_numbers<[1], [0], [0], [1], [0, 0, 1, 1], [], []>} : vector<8x48xbf16>, vector<48x384xbf16>, vector<8x384xf32> -> vector<8x384xf32>
      %38 = arith.addf %33, %37 : vector<8x384xf32>
      %39 = vector.extract_strided_slice %0 {offsets = [6, 0, 0], sizes = [1, 8, 48], strides = [1, 1, 1]} : vector<9x8x48xbf16> to vector<1x8x48xbf16>
      %40 = vector.shape_cast %39 : vector<1x8x48xbf16> to vector<8x48xbf16>
      %41 = vector.extract_strided_slice %9 {offsets = [0, 68], sizes = [48, 384], strides = [1, 1]} : vector<48x512xbf16> to vector<48x384xbf16>
      %cst_13 = arith.constant dense<0.000000e+00> : vector<8x384xf32>
      %42 = tpu.matmul %40, %41, %cst_13 {dimension_numbers = #tpu.dot_dimension_numbers<[1], [0], [0], [1], [0, 0, 1, 1], [], []>} : vector<8x48xbf16>, vector<48x384xbf16>, vector<8x384xf32> -> vector<8x384xf32>
      %43 = arith.addf %38, %42 : vector<8x384xf32>
      %44 = vector.extract_strided_slice %0 {offsets = [7, 0, 0], sizes = [1, 8, 48], strides = [1, 1, 1]} : vector<9x8x48xbf16> to vector<1x8x48xbf16>
      %45 = vector.shape_cast %44 : vector<1x8x48xbf16> to vector<8x48xbf16>
      %46 = vector.extract_strided_slice %9 {offsets = [0, 69], sizes = [48, 384], strides = [1, 1]} : vector<48x512xbf16> to vector<48x384xbf16>
      %cst_14 = arith.constant dense<0.000000e+00> : vector<8x384xf32>
      %47 = tpu.matmul %45, %46, %cst_14 {dimension_numbers = #tpu.dot_dimension_numbers<[1], [0], [0], [1], [0, 0, 1, 1], [], []>} : vector<8x48xbf16>, vector<48x384xbf16>, vector<8x384xf32> -> vector<8x384xf32>
      %48 = arith.addf %43, %47 : vector<8x384xf32>
      %49 = vector.extract_strided_slice %0 {offsets = [8, 0, 0], sizes = [1, 8, 48], strides = [1, 1, 1]} : vector<9x8x48xbf16> to vector<1x8x48xbf16>
      %50 = vector.shape_cast %49 : vector<1x8x48xbf16> to vector<8x48xbf16>
      %51 = vector.extract_strided_slice %9 {offsets = [0, 70], sizes = [48, 384], strides = [1, 1]} : vector<48x512xbf16> to vector<48x384xbf16>
      %cst_15 = arith.constant dense<0.000000e+00> : vector<8x384xf32>
      %52 = tpu.matmul %50, %51, %cst_15 {dimension_numbers = #tpu.dot_dimension_numbers<[1], [0], [0], [1], [0, 0, 1, 1], [], []>} : vector<8x48xbf16>, vector<48x384xbf16>, vector<8x384xf32> -> vector<8x384xf32>
      %53 = arith.addf %48, %52 : vector<8x384xf32>
      %54 = vector.broadcast %1 : vector<8x1xf32> to vector<8x384xf32>
      %55 = arith.addf %53, %54 : vector<8x384xf32>
      %cst_16 = arith.constant 0.000000e+00 : f32
      %56 = vector.broadcast %cst_16 : f32 to vector<8x384xf32>
      %57 = arith.maximumf %55, %56 : vector<8x384xf32>
      %c1152_i32 = arith.constant 1152 : i32
      %58 = arith.muli %arg6, %c1152_i32 : i32
      %c0_i32_17 = arith.constant 0 : i32
      %59 = arith.addi %58, %c0_i32_17 : i32
      %60 = tpu.assume_multiple %59, 128 : i32
      %c0_18 = arith.constant 0 : index
      %c0_19 = arith.constant 0 : index
      %61 = arith.index_cast %60 : i32 to index
      %62 = vector.load %arg5[%c0_18, %c0_19, %61] : memref<1x8x9216xf32, #tpu.memory_space<vmem>>, vector<1x8x384xf32>
      %63 = vector.shape_cast %62 : vector<1x8x384xf32> to vector<8x384xf32>
      %64 = vector.shape_cast %57 : vector<8x384xf32> to vector<1x8x384xf32>
      tpu.vector_store %arg5[%c0_18, %c0_19, %61], %64 {strides = array<i32>} : memref<1x8x9216xf32, #tpu.memory_space<vmem>>, vector<1x8x384xf32>,
      %c0_20 = arith.constant 0 : index
      %65 = arith.index_cast %6 : i32 to index
      %c384 = arith.constant 384 : index
      %66 = vector.load %arg2[%c0_20, %65, %c384] : memref<1x288x1280xbf16, #tpu.memory_space<vmem>>, vector<1x48x512xbf16>
      %67 = vector.shape_cast %66 : vector<1x48x512xbf16> to vector<48x512xbf16>
      %68 = vector.extract_strided_slice %0 {offsets = [0, 0, 0], sizes = [1, 8, 48], strides = [1, 1, 1]} : vector<9x8x48xbf16> to vector<1x8x48xbf16>
      %69 = vector.shape_cast %68 : vector<1x8x48xbf16> to vector<8x48xbf16>
      %70 = vector.extract_strided_slice %67 {offsets = [0, 0], sizes = [48, 384], strides = [1, 1]} : vector<48x512xbf16> to vector<48x384xbf16>
      %cst_21 = arith.constant dense<0.000000e+00> : vector<8x384xf32>
      %71 = tpu.matmul %69, %70, %cst_21 {dimension_numbers = #tpu.dot_dimension_numbers<[1], [0], [0], [1], [0, 0, 1, 1], [], []>} : vector<8x48xbf16>, vector<48x384xbf16>, vector<8x384xf32> -> vector<8x384xf32>
      %72 = vector.extract_strided_slice %0 {offsets = [1, 0, 0], sizes = [1, 8, 48], strides = [1, 1, 1]} : vector<9x8x48xbf16> to vector<1x8x48xbf16>
      %73 = vector.shape_cast %72 : vector<1x8x48xbf16> to vector<8x48xbf16>
      %74 = vector.extract_strided_slice %67 {offsets = [0, 1], sizes = [48, 384], strides = [1, 1]} : vector<48x512xbf16> to vector<48x384xbf16>
      %cst_22 = arith.constant dense<0.000000e+00> : vector<8x384xf32>
      %75 = tpu.matmul %73, %74, %cst_22 {dimension_numbers = #tpu.dot_dimension_numbers<[1], [0], [0], [1], [0, 0, 1, 1], [], []>} : vector<8x48xbf16>, vector<48x384xbf16>, vector<8x384xf32> -> vector<8x384xf32>
      %76 = arith.addf %71, %75 : vector<8x384xf32>
      %77 = vector.extract_strided_slice %0 {offsets = [2, 0, 0], sizes = [1, 8, 48], strides = [1, 1, 1]} : vector<9x8x48xbf16> to vector<1x8x48xbf16>
      %78 = vector.shape_cast %77 : vector<1x8x48xbf16> to vector<8x48xbf16>
      %79 = vector.extract_strided_slice %67 {offsets = [0, 2], sizes = [48, 384], strides = [1, 1]} : vector<48x512xbf16> to vector<48x384xbf16>
      %cst_23 = arith.constant dense<0.000000e+00> : vector<8x384xf32>
      %80 = tpu.matmul %78, %79, %cst_23 {dimension_numbers = #tpu.dot_dimension_numbers<[1], [0], [0], [1], [0, 0, 1, 1], [], []>} : vector<8x48xbf16>, vector<48x384xbf16>, vector<8x384xf32> -> vector<8x384xf32>
      %81 = arith.addf %76, %80 : vector<8x384xf32>
      %82 = vector.extract_strided_slice %0 {offsets = [3, 0, 0], sizes = [1, 8, 48], strides = [1, 1, 1]} : vector<9x8x48xbf16> to vector<1x8x48xbf16>
      %83 = vector.shape_cast %82 : vector<1x8x48xbf16> to vector<8x48xbf16>
      %84 = vector.extract_strided_slice %67 {offsets = [0, 34], sizes = [48, 384], strides = [1, 1]} : vector<48x512xbf16> to vector<48x384xbf16>
      %cst_24 = arith.constant dense<0.000000e+00> : vector<8x384xf32>
      %85 = tpu.matmul %83, %84, %cst_24 {dimension_numbers = #tpu.dot_dimension_numbers<[1], [0], [0], [1], [0, 0, 1, 1], [], []>} : vector<8x48xbf16>, vector<48x384xbf16>, vector<8x384xf32> -> vector<8x384xf32>
      %86 = arith.addf %81, %85 : vector<8x384xf32>
      %87 = vector.extract_strided_slice %0 {offsets = [4, 0, 0], sizes = [1, 8, 48], strides = [1, 1, 1]} : vector<9x8x48xbf16> to vector<1x8x48xbf16>
      %88 = vector.shape_cast %87 : vector<1x8x48xbf16> to vector<8x48xbf16>
      %89 = vector.extract_strided_slice %67 {offsets = [0, 35], sizes = [48, 384], strides = [1, 1]} : vector<48x512xbf16> to vector<48x384xbf16>
      %cst_25 = arith.constant dense<0.000000e+00> : vector<8x384xf32>
      %90 = tpu.matmul %88, %89, %cst_25 {dimension_numbers = #tpu.dot_dimension_numbers<[1], [0], [0], [1], [0, 0, 1, 1], [], []>} : vector<8x48xbf16>, vector<48x384xbf16>, vector<8x384xf32> -> vector<8x384xf32>
      %91 = arith.addf %86, %90 : vector<8x384xf32>
      %92 = vector.extract_strided_slice %0 {offsets = [5, 0, 0], sizes = [1, 8, 48], strides = [1, 1, 1]} : vector<9x8x48xbf16> to vector<1x8x48xbf16>
      %93 = vector.shape_cast %92 : vector<1x8x48xbf16> to vector<8x48xbf16>
      %94 = vector.extract_strided_slice %67 {offsets = [0, 36], sizes = [48, 384], strides = [1, 1]} : vector<48x512xbf16> to vector<48x384xbf16>
      %cst_26 = arith.constant dense<0.000000e+00> : vector<8x384xf32>
      %95 = tpu.matmul %93, %94, %cst_26 {dimension_numbers = #tpu.dot_dimension_numbers<[1], [0], [0], [1], [0, 0, 1, 1], [], []>} : vector<8x48xbf16>, vector<48x384xbf16>, vector<8x384xf32> -> vector<8x384xf32>
      %96 = arith.addf %91, %95 : vector<8x384xf32>
      %97 = vector.extract_strided_slice %0 {offsets = [6, 0, 0], sizes = [1, 8, 48], strides = [1, 1, 1]} : vector<9x8x48xbf16> to vector<1x8x48xbf16>
      %98 = vector.shape_cast %97 : vector<1x8x48xbf16> to vector<8x48xbf16>
      %99 = vector.extract_strided_slice %67 {offsets = [0, 68], sizes = [48, 384], strides = [1, 1]} : vector<48x512xbf16> to vector<48x384xbf16>
      %cst_27 = arith.constant dense<0.000000e+00> : vector<8x384xf32>
      %100 = tpu.matmul %98, %99, %cst_27 {dimension_numbers = #tpu.dot_dimension_numbers<[1], [0], [0], [1], [0, 0, 1, 1], [], []>} : vector<8x48xbf16>, vector<48x384xbf16>, vector<8x384xf32> -> vector<8x384xf32>
      %101 = arith.addf %96, %100 : vector<8x384xf32>
      %102 = vector.extract_strided_slice %0 {offsets = [7, 0, 0], sizes = [1, 8, 48], strides = [1, 1, 1]} : vector<9x8x48xbf16> to vector<1x8x48xbf16>
      %103 = vector.shape_cast %102 : vector<1x8x48xbf16> to vector<8x48xbf16>
      %104 = vector.extract_strided_slice %67 {offsets = [0, 69], sizes = [48, 384], strides = [1, 1]} : vector<48x512xbf16> to vector<48x384xbf16>
      %cst_28 = arith.constant dense<0.000000e+00> : vector<8x384xf32>
      %105 = tpu.matmul %103, %104, %cst_28 {dimension_numbers = #tpu.dot_dimension_numbers<[1], [0], [0], [1], [0, 0, 1, 1], [], []>} : vector<8x48xbf16>, vector<48x384xbf16>, vector<8x384xf32> -> vector<8x384xf32>
      %106 = arith.addf %101, %105 : vector<8x384xf32>
      %107 = vector.extract_strided_slice %0 {offsets = [8, 0, 0], sizes = [1, 8, 48], strides = [1, 1, 1]} : vector<9x8x48xbf16> to vector<1x8x48xbf16>
      %108 = vector.shape_cast %107 : vector<1x8x48xbf16> to vector<8x48xbf16>
      %109 = vector.extract_strided_slice %67 {offsets = [0, 70], sizes = [48, 384], strides = [1, 1]} : vector<48x512xbf16> to vector<48x384xbf16>
      %cst_29 = arith.constant dense<0.000000e+00> : vector<8x384xf32>
      %110 = tpu.matmul %108, %109, %cst_29 {dimension_numbers = #tpu.dot_dimension_numbers<[1], [0], [0], [1], [0, 0, 1, 1], [], []>} : vector<8x48xbf16>, vector<48x384xbf16>, vector<8x384xf32> -> vector<8x384xf32>
      %111 = arith.addf %106, %110 : vector<8x384xf32>
      %112 = vector.broadcast %1 : vector<8x1xf32> to vector<8x384xf32>
      %113 = arith.addf %111, %112 : vector<8x384xf32>
      %cst_30 = arith.constant 0.000000e+00 : f32
      %114 = vector.broadcast %cst_30 : f32 to vector<8x384xf32>
      %115 = arith.maximumf %113, %114 : vector<8x384xf32>
      %c1152_i32_31 = arith.constant 1152 : i32
      %116 = arith.muli %arg6, %c1152_i32_31 : i32
      %c384_i32 = arith.constant 384 : i32
      %117 = arith.addi %116, %c384_i32 : i32
      %118 = tpu.assume_multiple %117, 128 : i32
      %c0_32 = arith.constant 0 : index
      %c0_33 = arith.constant 0 : index
      %119 = arith.index_cast %118 : i32 to index
      %120 = vector.load %arg5[%c0_32, %c0_33, %119] : memref<1x8x9216xf32, #tpu.memory_space<vmem>>, vector<1x8x384xf32>
      %121 = vector.shape_cast %120 : vector<1x8x384xf32> to vector<8x384xf32>
      %122 = vector.shape_cast %115 : vector<8x384xf32> to vector<1x8x384xf32>
      tpu.vector_store %arg5[%c0_32, %c0_33, %119], %122 {strides = array<i32>} : memref<1x8x9216xf32, #tpu.memory_space<vmem>>, vector<1x8x384xf32>,
      %c0_34 = arith.constant 0 : index
      %123 = arith.index_cast %6 : i32 to index
      %c768 = arith.constant 768 : index
      %124 = vector.load %arg2[%c0_34, %123, %c768] : memref<1x288x1280xbf16, #tpu.memory_space<vmem>>, vector<1x48x512xbf16>
      %125 = vector.shape_cast %124 : vector<1x48x512xbf16> to vector<48x512xbf16>
      %126 = vector.extract_strided_slice %0 {offsets = [0, 0, 0], sizes = [1, 8, 48], strides = [1, 1, 1]} : vector<9x8x48xbf16> to vector<1x8x48xbf16>
      %127 = vector.shape_cast %126 : vector<1x8x48xbf16> to vector<8x48xbf16>
      %128 = vector.extract_strided_slice %125 {offsets = [0, 0], sizes = [48, 384], strides = [1, 1]} : vector<48x512xbf16> to vector<48x384xbf16>
      %cst_35 = arith.constant dense<0.000000e+00> : vector<8x384xf32>
      %129 = tpu.matmul %127, %128, %cst_35 {dimension_numbers = #tpu.dot_dimension_numbers<[1], [0], [0], [1], [0, 0, 1, 1], [], []>} : vector<8x48xbf16>, vector<48x384xbf16>, vector<8x384xf32> -> vector<8x384xf32>
      %130 = vector.extract_strided_slice %0 {offsets = [1, 0, 0], sizes = [1, 8, 48], strides = [1, 1, 1]} : vector<9x8x48xbf16> to vector<1x8x48xbf16>
      %131 = vector.shape_cast %130 : vector<1x8x48xbf16> to vector<8x48xbf16>
      %132 = vector.extract_strided_slice %125 {offsets = [0, 1], sizes = [48, 384], strides = [1, 1]} : vector<48x512xbf16> to vector<48x384xbf16>
      %cst_36 = arith.constant dense<0.000000e+00> : vector<8x384xf32>
      %133 = tpu.matmul %131, %132, %cst_36 {dimension_numbers = #tpu.dot_dimension_numbers<[1], [0], [0], [1], [0, 0, 1, 1], [], []>} : vector<8x48xbf16>, vector<48x384xbf16>, vector<8x384xf32> -> vector<8x384xf32>
      %134 = arith.addf %129, %133 : vector<8x384xf32>
      %135 = vector.extract_strided_slice %0 {offsets = [2, 0, 0], sizes = [1, 8, 48], strides = [1, 1, 1]} : vector<9x8x48xbf16> to vector<1x8x48xbf16>
      %136 = vector.shape_cast %135 : vector<1x8x48xbf16> to vector<8x48xbf16>
      %137 = vector.extract_strided_slice %125 {offsets = [0, 2], sizes = [48, 384], strides = [1, 1]} : vector<48x512xbf16> to vector<48x384xbf16>
      %cst_37 = arith.constant dense<0.000000e+00> : vector<8x384xf32>
      %138 = tpu.matmul %136, %137, %cst_37 {dimension_numbers = #tpu.dot_dimension_numbers<[1], [0], [0], [1], [0, 0, 1, 1], [], []>} : vector<8x48xbf16>, vector<48x384xbf16>, vector<8x384xf32> -> vector<8x384xf32>
      %139 = arith.addf %134, %138 : vector<8x384xf32>
      %140 = vector.extract_strided_slice %0 {offsets = [3, 0, 0], sizes = [1, 8, 48], strides = [1, 1, 1]} : vector<9x8x48xbf16> to vector<1x8x48xbf16>
      %141 = vector.shape_cast %140 : vector<1x8x48xbf16> to vector<8x48xbf16>
      %142 = vector.extract_strided_slice %125 {offsets = [0, 34], sizes = [48, 384], strides = [1, 1]} : vector<48x512xbf16> to vector<48x384xbf16>
      %cst_38 = arith.constant dense<0.000000e+00> : vector<8x384xf32>
      %143 = tpu.matmul %141, %142, %cst_38 {dimension_numbers = #tpu.dot_dimension_numbers<[1], [0], [0], [1], [0, 0, 1, 1], [], []>} : vector<8x48xbf16>, vector<48x384xbf16>, vector<8x384xf32> -> vector<8x384xf32>
      %144 = arith.addf %139, %143 : vector<8x384xf32>
      %145 = vector.extract_strided_slice %0 {offsets = [4, 0, 0], sizes = [1, 8, 48], strides = [1, 1, 1]} : vector<9x8x48xbf16> to vector<1x8x48xbf16>
      %146 = vector.shape_cast %145 : vector<1x8x48xbf16> to vector<8x48xbf16>
      %147 = vector.extract_strided_slice %125 {offsets = [0, 35], sizes = [48, 384], strides = [1, 1]} : vector<48x512xbf16> to vector<48x384xbf16>
      %cst_39 = arith.constant dense<0.000000e+00> : vector<8x384xf32>
      %148 = tpu.matmul %146, %147, %cst_39 {dimension_numbers = #tpu.dot_dimension_numbers<[1], [0], [0], [1], [0, 0, 1, 1], [], []>} : vector<8x48xbf16>, vector<48x384xbf16>, vector<8x384xf32> -> vector<8x384xf32>
      %149 = arith.addf %144, %148 : vector<8x384xf32>
      %150 = vector.extract_strided_slice %0 {offsets = [5, 0, 0], sizes = [1, 8, 48], strides = [1, 1, 1]} : vector<9x8x48xbf16> to vector<1x8x48xbf16>
      %151 = vector.shape_cast %150 : vector<1x8x48xbf16> to vector<8x48xbf16>
      %152 = vector.extract_strided_slice %125 {offsets = [0, 36], sizes = [48, 384], strides = [1, 1]} : vector<48x512xbf16> to vector<48x384xbf16>
      %cst_40 = arith.constant dense<0.000000e+00> : vector<8x384xf32>
      %153 = tpu.matmul %151, %152, %cst_40 {dimension_numbers = #tpu.dot_dimension_numbers<[1], [0], [0], [1], [0, 0, 1, 1], [], []>} : vector<8x48xbf16>, vector<48x384xbf16>, vector<8x384xf32> -> vector<8x384xf32>
      %154 = arith.addf %149, %153 : vector<8x384xf32>
      %155 = vector.extract_strided_slice %0 {offsets = [6, 0, 0], sizes = [1, 8, 48], strides = [1, 1, 1]} : vector<9x8x48xbf16> to vector<1x8x48xbf16>
      %156 = vector.shape_cast %155 : vector<1x8x48xbf16> to vector<8x48xbf16>
      %157 = vector.extract_strided_slice %125 {offsets = [0, 68], sizes = [48, 384], strides = [1, 1]} : vector<48x512xbf16> to vector<48x384xbf16>
      %cst_41 = arith.constant dense<0.000000e+00> : vector<8x384xf32>
      %158 = tpu.matmul %156, %157, %cst_41 {dimension_numbers = #tpu.dot_dimension_numbers<[1], [0], [0], [1], [0, 0, 1, 1], [], []>} : vector<8x48xbf16>, vector<48x384xbf16>, vector<8x384xf32> -> vector<8x384xf32>
      %159 = arith.addf %154, %158 : vector<8x384xf32>
      %160 = vector.extract_strided_slice %0 {offsets = [7, 0, 0], sizes = [1, 8, 48], strides = [1, 1, 1]} : vector<9x8x48xbf16> to vector<1x8x48xbf16>
      %161 = vector.shape_cast %160 : vector<1x8x48xbf16> to vector<8x48xbf16>
      %162 = vector.extract_strided_slice %125 {offsets = [0, 69], sizes = [48, 384], strides = [1, 1]} : vector<48x512xbf16> to vector<48x384xbf16>
      %cst_42 = arith.constant dense<0.000000e+00> : vector<8x384xf32>
      %163 = tpu.matmul %161, %162, %cst_42 {dimension_numbers = #tpu.dot_dimension_numbers<[1], [0], [0], [1], [0, 0, 1, 1], [], []>} : vector<8x48xbf16>, vector<48x384xbf16>, vector<8x384xf32> -> vector<8x384xf32>
      %164 = arith.addf %159, %163 : vector<8x384xf32>
      %165 = vector.extract_strided_slice %0 {offsets = [8, 0, 0], sizes = [1, 8, 48], strides = [1, 1, 1]} : vector<9x8x48xbf16> to vector<1x8x48xbf16>
      %166 = vector.shape_cast %165 : vector<1x8x48xbf16> to vector<8x48xbf16>
      %167 = vector.extract_strided_slice %125 {offsets = [0, 70], sizes = [48, 384], strides = [1, 1]} : vector<48x512xbf16> to vector<48x384xbf16>
      %cst_43 = arith.constant dense<0.000000e+00> : vector<8x384xf32>
      %168 = tpu.matmul %166, %167, %cst_43 {dimension_numbers = #tpu.dot_dimension_numbers<[1], [0], [0], [1], [0, 0, 1, 1], [], []>} : vector<8x48xbf16>, vector<48x384xbf16>, vector<8x384xf32> -> vector<8x384xf32>
      %169 = arith.addf %164, %168 : vector<8x384xf32>
      %170 = vector.broadcast %1 : vector<8x1xf32> to vector<8x384xf32>
      %171 = arith.addf %169, %170 : vector<8x384xf32>
      %cst_44 = arith.constant 0.000000e+00 : f32
      %172 = vector.broadcast %cst_44 : f32 to vector<8x384xf32>
      %173 = arith.maximumf %171, %172 : vector<8x384xf32>
      %c1152_i32_45 = arith.constant 1152 : i32
      %174 = arith.muli %arg6, %c1152_i32_45 : i32
      %c768_i32 = arith.constant 768 : i32
      %175 = arith.addi %174, %c768_i32 : i32
      %176 = tpu.assume_multiple %175, 128 : i32
      %c0_46 = arith.constant 0 : index
      %c0_47 = arith.constant 0 : index
      %177 = arith.index_cast %176 : i32 to index
      %178 = vector.load %arg5[%c0_46, %c0_47, %177] : memref<1x8x9216xf32, #tpu.memory_space<vmem>>, vector<1x8x384xf32>
      %179 = vector.shape_cast %178 : vector<1x8x384xf32> to vector<8x384xf32>
      %180 = vector.shape_cast %173 : vector<8x384xf32> to vector<1x8x384xf32>
      tpu.vector_store %arg5[%c0_46, %c0_47, %177], %180 {strides = array<i32>} : memref<1x8x9216xf32, #tpu.memory_space<vmem>>, vector<1x8x384xf32>,
    }
    %c8_i32_4 = arith.constant 8 : i32
    return
  }
  func.func @transform_0(%arg0: i32, %arg1: i32) -> (i32, i32, i32) {
    %c0_i32 = arith.constant 0 : i32
    %c0_i32_0 = arith.constant 0 : i32
    %c0_i32_1 = arith.constant 0 : i32
    return %arg0, %c0_i32, %c0_i32_0 : i32, i32, i32
  }
  func.func @transform_1(%arg0: i32, %arg1: i32) -> (i32, i32, i32) {
    %c0_i32 = arith.constant 0 : i32
    %c0_i32_0 = arith.constant 0 : i32
    %c0_i32_1 = arith.constant 0 : i32
    %c0_i32_2 = arith.constant 0 : i32
    return %c0_i32, %c0_i32_0, %c0_i32_1 : i32, i32, i32
  }
  func.func @transform_2(%arg0: i32, %arg1: i32) -> (i32, i32) {
    %c0_i32 = arith.constant 0 : i32
    %c0_i32_0 = arith.constant 0 : i32
    %c0_i32_1 = arith.constant 0 : i32
    return %c0_i32, %c0_i32_0 : i32, i32
  }
  func.func @transform_3(%arg0: i32, %arg1: i32) -> (i32, i32, i32) {
    %c0_i32 = arith.constant 0 : i32
    %c0_i32_0 = arith.constant 0 : i32
    return %arg0, %c0_i32, %arg1 : i32, i32, i32
  }
}

</mosaic_0001>

<bundles_post_ra>
// kernel: decoder_block_forward.1
= control target key start
LH: loop header
LB: loop body
LE: loop exit
PB: predicated region body
PF: predicated region fallthrough
CT: control target
= control target key end

     0   :  { %s4543_s12 = smov 0   ;;  %s4545_s13 = smov 0   ;;  %s5892_s0 = inlined_call_operand.vmem [shape: bf16[2,288,1280], index: 0, kind: input, shape index: {}]   ;;  %s5893_s1 = inlined_call_operand.vmem [shape: bf16[9,8,48], index: 1, kind: input, shape index: {}]   ;;  %s5894_s2 = inlined_call_operand.vmem [shape: f32[8,1], index: 2, kind: input, shape index: {}]   ;;  %s5895_s3 = inlined_call_operand.vmem [shape: f32[2,8,18432], index: 3, kind: output, shape index: {}]  }
   0x1   :  { %s4547_s14 = smov 0   ;;  %s4549_s15 = smov 0  }
   0x2   :  { %s4551_s16 = smov 0  }
   0x3 LB: > { %s22_s17 = sadd.s32 1, %s4498_s14  ;;  %s25_s18 = sadd.s32 1, %s4502_s15  ;;  %s4506_s16 = sphi %s4551_s16, %s13_s16   ;;  %s4502_s15 = sphi %s4549_s15, %s5899_s15   ;;  %s4498_s14 = sphi %s4547_s14, %s5898_s14   ;;  %s4494_s13 = sphi %s4545_s13, %s5897_s13   ;;  %s4490_s12 = sphi %s4543_s12, %s5896_s12  }
   0x4   : > { %p23_p0 = scmp.ge.s32.totalorder %s22_s17, 2  ;;  %p3868_p1 = scmp.ge.s32.totalorder %s4506_s16, 1 }
   0x5   : > { %p151_p2 = scmp.lt.s32.totalorder %s4506_s16, 5 }
   0x6   : > { %s5901_s17 = smov (%p23_p0, %s22_s17), 0  ;;  %s5903_s18 = smov (!%p23_p0, %s25_s18), %s4502_s15 }
   0x7   : > { %p152_p3 = pnand %p3868_p1, %p151_p2  ;;  %p27_p4 = scmp.ge.s32.totalorder %s5903_s18, 2 }
   0x8   : > { %p179_p5 = scmp.lt.s32.totalorder (!%p152_p3), %s4494_s13, 1  ;;  %s184_s19 = smul.u32 (!%p152_p3), 72, %s4490_s12  ;;  %v4579_v0 = vld [vmem:[%s5893_s1] sm:$0xf] (!%p152_p3)  ;;  %v4584_v1 = vld [vmem:[%s5893_s1 + $0x4] sm:$0xf] (!%p152_p3) }
   0x9   : > { %s5905_s18 = smov (%p27_p4, %s5903_s18), 0  ;;  %155 = sbr.rel (%p152_p3) target bundleno = 942 (0x3ae), region = 32 }
   0xa   : > { %v4589_v2 = vld [vmem:[%s5893_s1 + $0x8] sm:$0xf] (!%p152_p3)  ;;  %v4594_v3 = vld [vmem:[%s5893_s1 + $0xc] sm:$0xf] (!%p152_p3)  ;;  %v4599_v4 = vld [vmem:[%s5893_s1 + $0x10] sm:$0xf] (!%p152_p3) }
   0xb   : > { %v4604_v5 = vld [vmem:[%s5893_s1 + $0x14] sm:$0xf] (!%p152_p3)  ;;  %v4609_v6 = vld [vmem:[%s5893_s1 + $0x18] sm:$0xf] (!%p152_p3)  ;;  %v4614_v7 = vld [vmem:[%s5894_s2] sm:$0xff] (!%p152_p3)  ;;  %p187_p6 = scmp.lt.s32.totalorder (!%p152_p3), %s184_s19, 143 }
   0xc   : > { %v4619_v8 = vld [vmem:[%s5893_s1 + $0x1c] sm:$0xf] (!%p152_p3)  ;;  %v4624_v9 = vld [vmem:[%s5893_s1 + $0x20] sm:$0xf] (!%p152_p3)  ;;  %s4636_s4 = smov (!%p152_p3), 0  }
  0x10   : > { %s5907_s13 = smov (!%p179_p5, %s4494_s13), 1  ;;  %s5909_s19 = smov (!%p187_p6, %s184_s19), 143 }
  0x11   : > { %s4348_s21 = smul.u32 1440, %s5907_s13 }
  0x12   : > { %s4349_s25 = smul.u32 144, %s5907_s13 }
  0x13   : > { %s4629_s24 = scalar_lea.vmem %s5892_s0, %s4348_s21 }
  0x14   : > { %s190_s26 = sadd.s32 %s4349_s25, %s5909_s19 }
  0x15   : > { %s3870_s27 = sshll.u32 %s190_s26, 3 }
  0x16   : > { %s4634_s30 = scalar_lea.vmem %s5895_s3, %s3870_s27 }
  0x17 LB: >> { %s3871_s5 = sshll.u32 %s4490_s12, 3  ;;  %v4512_v10 = vmov 0.0   ;;  %s4513_s9 = smov 127   ;;  %v4514_v21 = vmov 0   ;;  %vm4515_vm0 = vmmov 0   ;;  %vm303_vm1 = vcmask 1039360   ;;  %s4510_s4 = sphi %s4636_s4, %s210_s4  }
  0x18   : >> { %s212_s6 = sadd.s32 %s4510_s4, %s3871_s5  ;;  %4078 = vmatprep.subr.bf16.mxu1 %v4512_v10  ;;  %358 = vmatprep.mubr.bf16.mxu0 %v4514_v21  ;;  %s4516_s10 = smov 126   ;;  %vm322_vm2 = vcmask 392192   ;;  %vm524_vm3 = vcmask 1031168   ;;  %vm654_vm4 = vcmask 769024   ;;  %vm784_vm5 = vcmask 760832  }
  0x19   : >> { %s3872_s13 = sshll.u32 %s212_s6, 4  ;;  %4084 = vmatprep.mubr.msk.bf16.mxu1 %vm4515_vm0, %v4512_v10  ;;  %4409 = vset.pattern.permute.xlu0 %v4514_v21  ;;  %s4517_s11 = smov 94   ;;  %vm914_vm6 = vcmask 752640   ;;  %vm1044_vm7 = vcmask 490496   ;;  %vm1174_vm8 = vcmask 482304   ;;  %vm1304_vm9 = vcmask 474112  }
  0x1a   : >> { %s214_s19 = sshra.s32 %s3872_s13, 3  ;;  %s4518_s20 = smov 93  }
  0x1b   : >> { %s3969_s7 = smul.u32 40, %s214_s19  ;;  %s4519_s21 = smov 92  }
  0x1c   : >> { %s4520_s22 = smov 60   ;;  %s4521_s23 = smov 59  }
  0x1d   : >> { %s4645_s8 = scalar_lea.vmem %s4629_s24, %s3969_s7  ;;  %s4522_s25 = smov 58  }
  0x1e   : >> { %v4648_v11 = vld [vmem:[%s4645_s8 + $0x4] ss:$40 sps:$4 sm:$0xff]   ;;  %v4651_v12 = vld [vmem:[%s4645_s8] ss:$40 sps:$4 sm:$0xff]   ;;  %v4666_v15 = vld [vmem:[%s4645_s8 + $0x54] ss:$40 sps:$4 sm:$0xff]  }
  0x1f   : >> { %281 = vrot.lane.b32.xlu0 %v4648_v11, %s4513_s9  ;;  %v4656_v13 = vld [vmem:[%s4645_s8 + $0x8] ss:$40 sps:$4 sm:$0xff]   ;;  %279 = vrot.lane.b32.xlu1 %v4651_v12, %s4513_s9  ;;  %v4661_v14 = vld [vmem:[%s4645_s8 + $0xc] ss:$40 sps:$4 sm:$0xff]   ;;  %s5852_s26 = smul.u32 1152, %s4510_s4  ;;  %s210_s4 = sadd.s32 1, %s4510_s4  }
  0x20   : >> { %v4671_v16 = vld [vmem:[%s4645_s8 + $0x58] ss:$40 sps:$4 sm:$0xff]   ;;  %v4677_v18 = vld [vmem:[%s4645_s8 + $0x5c] ss:$40 sps:$4 sm:$0xff]   ;;  %v4687_v20 = vld [vmem:[%s4645_s8 + $0xa8] ss:$40 sps:$4 sm:$0xff]  }
  0x21   : >> { %v4674_v17 = vld [vmem:[%s4645_s8 + $0x50] ss:$40 sps:$4 sm:$0xff]   ;;  %v4684_v19 = vld [vmem:[%s4645_s8 + $0xa4] ss:$40 sps:$4 sm:$0xff]   ;;  %v4700_v22 = vld [vmem:[%s4645_s8 + $0xa0] ss:$40 sps:$4 sm:$0xff]  }
  0x22   : >> { %v4705_v23 = vld [vmem:[%s4645_s8 + $0xac] ss:$40 sps:$4 sm:$0xff]   ;;  %s1422_s27 = sshra.s32 %s5852_s26, 7  ;;  %s2590_s5 = sadd.s32 384, %s5852_s26 }
  0x23   : >> { %283 = vrot.lane.b32.xlu0 %v4656_v13, %s4513_s9  ;;  %285 = vrot.lane.b32.xlu1 %v4661_v14, %s4513_s9  ;;  %s3904_s28 = sshll.u32 %s1422_s27, 3  ;;  %s2591_s6 = sshra.s32 %s2590_s5, 7 }
  0x24   : >> { %s1425_s29 = scalar_lea.vmem %s4634_s30, %s3904_s28  ;;  %s3935_s13 = sshll.u32 %s2591_s6, 3 }
  0x25   : >> { %s2594_s19 = scalar_lea.vmem %s4634_s30, %s3935_s13  ;;  %s3759_s7 = sadd.s32 768, %s5852_s26 }
  0x26   : >> { %p207_p7 = scmp.ge.s32.totalorder %s210_s4, 8  }
  0x27   : >> { %289 = vrot.lane.b32.xlu0 %v4666_v15, %s4513_s9  ;;  %291 = vrot.lane.b32.xlu1 %v4671_v16, %s4513_s9 }
  0x2b   : >> { %287 = vrot.lane.b32.xlu0 %v4674_v17, %s4513_s9  ;;  %293 = vrot.lane.b32.xlu1 %v4677_v18, %s4513_s9 }
  0x2f   : >> { %297 = vrot.lane.b32.xlu0 %v4684_v19, %s4513_s9  ;;  %299 = vrot.lane.b32.xlu1 %v4687_v20, %s4513_s9 }
  0x33   : >> { %295 = vrot.lane.b32.xlu0 %v4700_v22, %s4513_s9  ;;  %301 = vrot.lane.b32.xlu1 %v4705_v23, %s4513_s9 }
  0x37   : >> { %502 = vrot.lane.b32.xlu0 %v4648_v11, %s4516_s10  ;;  %504 = vrot.lane.b32.xlu1 %v4656_v13, %s4516_s10 }
  0x3b   : >> { %500 = vrot.lane.b32.xlu0 %v4651_v12, %s4516_s10  ;;  %506 = vrot.lane.b32.xlu1 %v4661_v14, %s4516_s10 }
  0x3f   : >> { %510 = vrot.lane.b32.xlu0 %v4666_v15, %s4516_s10  ;;  %512 = vrot.lane.b32.xlu1 %v4671_v16, %s4516_s10 }
  0x43   : >> { %508 = vrot.lane.b32.xlu0 %v4674_v17, %s4516_s10  ;;  %514 = vrot.lane.b32.xlu1 %v4677_v18, %s4516_s10 }
  0x47   : >> { %518 = vrot.lane.b32.xlu0 %v4684_v19, %s4516_s10  ;;  %520 = vrot.lane.b32.xlu1 %v4687_v20, %s4516_s10 }
  0x4b   : >> { %516 = vrot.lane.b32.xlu0 %v4700_v22, %s4516_s10  ;;  %522 = vrot.lane.b32.xlu1 %v4705_v23, %s4516_s10 }
  0x4f   : >> { %632 = vrot.lane.b32.xlu0 %v4648_v11, %s4517_s11  ;;  %634 = vrot.lane.b32.xlu1 %v4656_v13, %s4517_s11 }
  0x53   : >> { %630 = vrot.lane.b32.xlu0 %v4651_v12, %s4517_s11  ;;  %636 = vrot.lane.b32.xlu1 %v4661_v14, %s4517_s11 }
  0x57   : >> { %640 = vrot.lane.b32.xlu0 %v4666_v15, %s4517_s11  ;;  %642 = vrot.lane.b32.xlu1 %v4671_v16, %s4517_s11 }
  0x5b   : >> { %638 = vrot.lane.b32.xlu0 %v4674_v17, %s4517_s11  ;;  %644 = vrot.lane.b32.xlu1 %v4677_v18, %s4517_s11 }
  0x5f   : >> { %648 = vrot.lane.b32.xlu0 %v4684_v19, %s4517_s11  ;;  %650 = vrot.lane.b32.xlu1 %v4687_v20, %s4517_s11 }
  0x63   : >> { %646 = vrot.lane.b32.xlu0 %v4700_v22, %s4517_s11  ;;  %652 = vrot.lane.b32.xlu1 %v4705_v23, %s4517_s11 }
  0x67   : >> { %762 = vrot.lane.b32.xlu0 %v4648_v11, %s4518_s20  ;;  %764 = vrot.lane.b32.xlu1 %v4656_v13, %s4518_s20 }
  0x6b   : >> { %760 = vrot.lane.b32.xlu0 %v4651_v12, %s4518_s20  ;;  %766 = vrot.lane.b32.xlu1 %v4661_v14, %s4518_s20 }
  0x6f   : >> { %770 = vrot.lane.b32.xlu0 %v4666_v15, %s4518_s20  ;;  %772 = vrot.lane.b32.xlu1 %v4671_v16, %s4518_s20 }
  0x73   : >> { %768 = vrot.lane.b32.xlu0 %v4674_v17, %s4518_s20  ;;  %774 = vrot.lane.b32.xlu1 %v4677_v18, %s4518_s20 }
  0x77   : >> { %778 = vrot.lane.b32.xlu0 %v4684_v19, %s4518_s20  ;;  %780 = vrot.lane.b32.xlu1 %v4687_v20, %s4518_s20 }
  0x7b   : >> { %776 = vrot.lane.b32.xlu0 %v4700_v22, %s4518_s20  ;;  %782 = vrot.lane.b32.xlu1 %v4705_v23, %s4518_s20 }
  0x7f   : >> { %892 = vrot.lane.b32.xlu0 %v4648_v11, %s4519_s21  ;;  %894 = vrot.lane.b32.xlu1 %v4656_v13, %s4519_s21 }
  0x83   : >> { %890 = vrot.lane.b32.xlu0 %v4651_v12, %s4519_s21  ;;  %896 = vrot.lane.b32.xlu1 %v4661_v14, %s4519_s21 }
  0x87   : >> { %900 = vrot.lane.b32.xlu0 %v4666_v15, %s4519_s21  ;;  %902 = vrot.lane.b32.xlu1 %v4671_v16, %s4519_s21 }
  0x8b   : >> { %898 = vrot.lane.b32.xlu0 %v4674_v17, %s4519_s21  ;;  %904 = vrot.lane.b32.xlu1 %v4677_v18, %s4519_s21 }
  0x8f   : >> { %908 = vrot.lane.b32.xlu0 %v4684_v19, %s4519_s21  ;;  %910 = vrot.lane.b32.xlu1 %v4687_v20, %s4519_s21 }
  0x91   : >> { %v282_v24 = vpop.permute.xlu0 %281  ;;  %v280_v25 = vpop.permute.xlu1 %279 }
  0x92   : >> { %v304_v30 = vsel %vm303_vm1, %v280_v25, %v282_v24 }
  0x93   : >> { %906 = vrot.lane.b32.xlu0 %v4700_v22, %s4519_s21  ;;  %912 = vrot.lane.b32.xlu1 %v4705_v23, %s4519_s21 }
  0x95   : >> { %v284_v26 = vpop.permute.xlu0 %283  ;;  %v286_v27 = vpop.permute.xlu1 %285 }
  0x96   : >> { %v305_v28 = vsel %vm303_vm1, %v282_v24, %v284_v26  ;;  %v306_v29 = vsel %vm303_vm1, %v284_v26, %v286_v27 }
  0x97   : >> { %326 = vmatprep.subr.bf16.mxu0 %v305_v28  ;;  %1022 = vrot.lane.b32.xlu0 %v4648_v11, %s4520_s22 }
  0x98   : >> { %1024 = vrot.lane.b32.xlu1 %v4656_v13, %s4520_s22  ;;  %4079 = vmatpush3.bf16.msra.mxu1 %v306_v29 }
  0x99   : >> { %327 = vmatpush1.bf16.msra.mxu0 %v304_v30  ;;  %v290_v31 = vpop.permute.xlu0 %289  ;;  %4080 = vmatprep.subr.bf16.mxu1 %v4512_v10  ;;  %v292_v32 = vpop.permute.xlu1 %291 }
  0x9a   : >> { %v308_v33 = vsel %vm303_vm1, %v290_v31, %v292_v32 }
  0x9b   : >> { %1020 = vrot.lane.b32.xlu0 %v4651_v12, %s4520_s22  ;;  %328 = vmatprep.subr.bf16.mxu0 %v308_v33 }
  0x9c   : >> { %1026 = vrot.lane.b32.xlu1 %v4661_v14, %s4520_s22 }
  0x9d   : >> { %v288_v34 = vpop.permute.xlu0 %287  ;;  %v294_v35 = vpop.permute.xlu1 %293 }
  0x9e   : >> { %v307_v36 = vsel %vm303_vm1, %v288_v34, %v290_v31  ;;  %v309_v37 = vsel %vm303_vm1, %v292_v32, %v294_v35 }
  0x9f   : >> { %1030 = vrot.lane.b32.xlu0 %v4666_v15, %s4520_s22  ;;  %329 = vmatpush1.bf16.msra.mxu0 %v307_v36 }
  0xa0   : >> { %1032 = vrot.lane.b32.xlu1 %v4671_v16, %s4520_s22  ;;  %4081 = vmatpush3.bf16.msra.mxu1 %v309_v37 }
  0xa1   : >> { %v298_v38 = vpop.permute.xlu0 %297  ;;  %4082 = vmatprep.subr.bf16.mxu1 %v4512_v10  ;;  %v300_v39 = vpop.permute.xlu1 %299 }
  0xa2   : >> { %v311_v40 = vsel %vm303_vm1, %v298_v38, %v300_v39 }
  0xa3   : >> { %1028 = vrot.lane.b32.xlu0 %v4674_v17, %s4520_s22  ;;  %330 = vmatprep.subr.bf16.mxu0 %v311_v40 }
  0xa4   : >> { %1034 = vrot.lane.b32.xlu1 %v4677_v18, %s4520_s22 }
  0xa5   : >> { %v296_v41 = vpop.permute.xlu0 %295  ;;  %v302_v42 = vpop.permute.xlu1 %301 }
  0xa6   : >> { %v310_v43 = vsel %vm303_vm1, %v296_v41, %v298_v38  ;;  %v312_v44 = vsel %vm303_vm1, %v300_v39, %v302_v42 }
  0xa7   : >> { %1038 = vrot.lane.b32.xlu0 %v4684_v19, %s4520_s22  ;;  %331 = vmatpush1.bf16.msra.mxu0 %v310_v43 }
  0xa8   : >> { %1040 = vrot.lane.b32.xlu1 %v4687_v20, %s4520_s22  ;;  %4083 = vmatpush3.bf16.msra.mxu1 %v312_v44 }
  0xa9   : >> { %v503_v45 = vpop.permute.xlu0 %502  ;;  %419 = vmatprep.subr.bf16.mxu0 %v4648_v11  ;;  %4088 = vmatprep.subr.bf16.mxu1 %v4512_v10  ;;  %v505_v46 = vpop.permute.xlu1 %504 }
  0xaa   : >> { %3886 = vmatmul.mubr.msk.bf16.vlgmr.msra.gmra.mrb[0].mxu0 %vm322_vm2, %v4584_v1  ;;  %v526_v51 = vsel %vm524_vm3, %v503_v45, %v505_v46 }
  0xab   : >> { %1036 = vrot.lane.b32.xlu0 %v4700_v22, %s4520_s22  ;;  %4085 = vmatmul.mubr.msk.bf16.vlgmr.msra.gmra.mrb[0].mxu1 %vm322_vm2, %v4584_v1 }
  0xac   : >> { %1042 = vrot.lane.b32.xlu1 %v4705_v23, %s4520_s22  ;;  %420 = vmatpush1.bf16.msra.mxu0 %v4651_v12 }
  0xad   : >> { %4089 = vmatpush3.bf16.msra.mxu1 %v4656_v13  ;;  %v501_v47 = vpop.permute.xlu0 %500  ;;  %421 = vmatprep.subr.bf16.mxu0 %v4666_v15  ;;  %v507_v48 = vpop.permute.xlu1 %506 }
  0xae   : >> { %4090 = vmatprep.subr.bf16.mxu1 %v4512_v10  ;;  %451 = vmatprep.mubr.bf16.mxu0 %v4514_v21  ;;  %v525_v54 = vsel %vm524_vm3, %v501_v47, %v503_v45  ;;  %v527_v55 = vsel %vm524_vm3, %v505_v46, %v507_v48  ;;  %v4972_v45 = vld [vmem:[%s4645_s8 + $0x18] ss:$40 sps:$4 sm:$0xff]  }
  0xaf   : >> { %1152 = vrot.lane.b32.xlu0 %v4648_v11, %s4521_s23  ;;  %4094 = vmatprep.mubr.msk.bf16.mxu1 %vm4515_vm0, %v4512_v10 }
  0xb0   : >> { %1154 = vrot.lane.b32.xlu1 %v4656_v13, %s4521_s23  ;;  %422 = vmatpush1.bf16.msra.mxu0 %v4674_v17 }
  0xb1   : >> { %4091 = vmatpush3.bf16.msra.mxu1 %v4671_v16  ;;  %v511_v49 = vpop.permute.xlu0 %510  ;;  %423 = vmatprep.subr.bf16.mxu0 %v4684_v19  ;;  %v513_v50 = vpop.permute.xlu1 %512 }
  0xb2   : >> { %4092 = vmatprep.subr.bf16.mxu1 %v4512_v10  ;;  %v529_v56 = vsel %vm524_vm3, %v511_v49, %v513_v50 }
  0xb3   : >> { %1150 = vrot.lane.b32.xlu0 %v4651_v12, %s4521_s23 }
  0xb4   : >> { %1156 = vrot.lane.b32.xlu1 %v4661_v14, %s4521_s23  ;;  %424 = vmatpush1.bf16.msra.mxu0 %v4700_v22 }
  0xb5   : >> { %4093 = vmatpush3.bf16.msra.mxu1 %v4687_v20  ;;  %546 = vmatprep.subr.bf16.mxu0 %v526_v51  ;;  %v509_v52 = vpop.permute.xlu0 %508  ;;  %v515_v53 = vpop.permute.xlu1 %514 }
  0xb6   : >> { %4098 = vmatprep.subr.bf16.mxu1 %v4512_v10  ;;  %v528_v60 = vsel %vm524_vm3, %v509_v52, %v511_v49  ;;  %v530_v61 = vsel %vm524_vm3, %v513_v50, %v515_v53  ;;  %v4979_v49 = vld [vmem:[%s4645_s8 + $0x60] ss:$40 sps:$4 sm:$0xff]   ;;  %v4984_v50 = vld [vmem:[%s4645_s8 + $0x64] ss:$40 sps:$4 sm:$0xff]  }
  0xb7   : >> { %1160 = vrot.lane.b32.xlu0 %v4666_v15, %s4521_s23  ;;  %3888 = vmatmul.mubr.msk.bf16.vlgmr.msra.gmra.mrb[4].mxu0 %vm322_vm2, %v4579_v0 }
  0xb8   : >> { %1162 = vrot.lane.b32.xlu1 %v4671_v16, %s4521_s23  ;;  %4095 = vmatmul.mubr.msk.bf16.vlgmr.msra.gmra.mrb[4].mxu1 %vm322_vm2, %v4579_v0 }
  0xb9   : >> { %547 = vmatpush1.bf16.msra.mxu0 %v525_v54  ;;  %4099 = vmatpush3.bf16.msra.mxu1 %v527_v55  ;;  %v519_v57 = vpop.permute.xlu0 %518  ;;  %v521_v58 = vpop.permute.xlu1 %520  ;;  %v4991_v55 = vld [vmem:[%s4645_s8 + $0x5c] ss:$40 sps:$4 sm:$0xff]  }
  0xba   : >> { %548 = vmatprep.subr.bf16.mxu0 %v529_v56  ;;  %4100 = vmatprep.subr.bf16.mxu1 %v4512_v10  ;;  %v532_v59 = vsel %vm524_vm3, %v519_v57, %v521_v58  ;;  %v4996_v56 = vld [vmem:[%s4645_s8 + $0x68] ss:$40 sps:$4 sm:$0xff]  }
  0xbb   : >> { %1158 = vrot.lane.b32.xlu0 %v4674_v17, %s4521_s23  ;;  %578 = vmatprep.mubr.bf16.mxu0 %v4514_v21 }
  0xbc   : >> { %1164 = vrot.lane.b32.xlu1 %v4677_v18, %s4521_s23  ;;  %4104 = vmatprep.mubr.msk.bf16.mxu1 %vm4515_vm0, %v4512_v10 }
  0xbd   : >> { %549 = vmatpush1.bf16.msra.mxu0 %v528_v60  ;;  %4101 = vmatpush3.bf16.msra.mxu1 %v530_v61  ;;  %v517_v62 = vpop.permute.xlu0 %516  ;;  %v523_v24 = vpop.permute.xlu1 %522  ;;  %v5003_v60 = vld [vmem:[%s4645_s8 + $0xb0] ss:$40 sps:$4 sm:$0xff]   ;;  %v5008_v61 = vld [vmem:[%s4645_s8 + $0xb4] ss:$40 sps:$4 sm:$0xff]  }
  0xbe   : >> { %550 = vmatprep.subr.bf16.mxu0 %v532_v59  ;;  %v531_v63 = vsel %vm524_vm3, %v517_v62, %v519_v57  ;;  %4102 = vmatprep.subr.bf16.mxu1 %v4512_v10  ;;  %v533_v25 = vsel %vm524_vm3, %v521_v58, %v523_v24 }
  0xbf   : >> { %1168 = vrot.lane.b32.xlu0 %v4684_v19, %s4521_s23 }
  0xc0   : >> { %1170 = vrot.lane.b32.xlu1 %v4687_v20, %s4521_s23 }
  0xc1   : >> { %551 = vmatpush1.bf16.msra.mxu0 %v531_v63  ;;  %4103 = vmatpush3.bf16.msra.mxu1 %v533_v25  ;;  %v633_v26 = vpop.permute.xlu0 %632  ;;  %v635_v27 = vpop.permute.xlu1 %634 }
  0xc2   : >> { %4108 = vmatprep.subr.bf16.mxu1 %v4512_v10  ;;  %v656_v28 = vsel %vm654_vm4, %v633_v26, %v635_v27 }
  0xc3   : >> { %1166 = vrot.lane.b32.xlu0 %v4700_v22, %s4521_s23  ;;  %676 = vmatprep.subr.bf16.mxu0 %v656_v28 }
  0xc4   : >> { %1172 = vrot.lane.b32.xlu1 %v4705_v23, %s4521_s23  ;;  %3890 = vmatmul.mubr.msk.bf16.vlgmr.msra.gmra.mrb[8].mxu0 %vm322_vm2, %v4589_v2 }
  0xc5   : >> { %v631_v29 = vpop.permute.xlu0 %630  ;;  %4105 = vmatmul.mubr.msk.bf16.vlgmr.msra.gmra.mrb[8].mxu1 %vm322_vm2, %v4589_v2  ;;  %v637_v31 = vpop.permute.xlu1 %636  ;;  %708 = vmatprep.mubr.bf16.mxu0 %v4514_v21 }
  0xc6   : >> { %v655_v30 = vsel %vm654_vm4, %v631_v29, %v633_v26  ;;  %4114 = vmatprep.mubr.msk.bf16.mxu1 %vm4515_vm0, %v4512_v10  ;;  %v657_v32 = vsel %vm654_vm4, %v635_v27, %v637_v31  ;;  %v5015_v26 = vld [vmem:[%s4645_s8 + $0xac] ss:$40 sps:$4 sm:$0xff]   ;;  %v5020_v27 = vld [vmem:[%s4645_s8 + $0xb8] ss:$40 sps:$4 sm:$0xff]  }
  0xc7   : >> { %1282 = vrot.lane.b32.xlu0 %v4648_v11, %s4522_s25  ;;  %677 = vmatpush1.bf16.msra.mxu0 %v655_v30 }
  0xc8   : >> { %1284 = vrot.lane.b32.xlu1 %v4656_v13, %s4522_s25  ;;  %4109 = vmatpush3.bf16.msra.mxu1 %v657_v32 }
  0xc9   : >> { %v641_v33 = vpop.permute.xlu0 %640  ;;  %4110 = vmatprep.subr.bf16.mxu1 %v4512_v10  ;;  %v643_v34 = vpop.permute.xlu1 %642 }
  0xca   : >> { %v659_v35 = vsel %vm654_vm4, %v641_v33, %v643_v34 }
  0xcb   : >> { %1280 = vrot.lane.b32.xlu0 %v4651_v12, %s4522_s25  ;;  %678 = vmatprep.subr.bf16.mxu0 %v659_v35 }
  0xcc   : >> { %1286 = vrot.lane.b32.xlu1 %v4661_v14, %s4522_s25 }
  0xcd   : >> { %v639_v36 = vpop.permute.xlu0 %638  ;;  %v645_v37 = vpop.permute.xlu1 %644 }
  0xce   : >> { %v658_v11 = vsel %vm654_vm4, %v639_v36, %v641_v33  ;;  %v660_v13 = vsel %vm654_vm4, %v643_v34, %v645_v37 }
  0xcf   : >> { %1290 = vrot.lane.b32.xlu0 %v4666_v15, %s4522_s25  ;;  %679 = vmatpush1.bf16.msra.mxu0 %v658_v11 }
  0xd0   : >> { %1292 = vrot.lane.b32.xlu1 %v4671_v16, %s4522_s25  ;;  %4111 = vmatpush3.bf16.msra.mxu1 %v660_v13 }
  0xd1   : >> { %v649_v12 = vpop.permute.xlu0 %648  ;;  %4112 = vmatprep.subr.bf16.mxu1 %v4512_v10  ;;  %v651_v38 = vpop.permute.xlu1 %650 }
  0xd2   : >> { %v662_v14 = vsel %vm654_vm4, %v649_v12, %v651_v38 }
  0xd3   : >> { %1288 = vrot.lane.b32.xlu0 %v4674_v17, %s4522_s25  ;;  %680 = vmatprep.subr.bf16.mxu0 %v662_v14 }
  0xd4   : >> { %1294 = vrot.lane.b32.xlu1 %v4677_v18, %s4522_s25 }
  0xd5   : >> { %v647_v15 = vpop.permute.xlu0 %646  ;;  %v653_v40 = vpop.permute.xlu1 %652 }
  0xd6   : >> { %v661_v39 = vsel %vm654_vm4, %v647_v15, %v649_v12  ;;  %v663_v16 = vsel %vm654_vm4, %v651_v38, %v653_v40 }
  0xd7   : >> { %1298 = vrot.lane.b32.xlu0 %v4684_v19, %s4522_s25  ;;  %681 = vmatpush1.bf16.msra.mxu0 %v661_v39  ;;  %v4950_v19 = vld [vmem:[%s4645_s8 + $0x10] ss:$40 sps:$4 sm:$0xff]  }
  0xd8   : >> { %1300 = vrot.lane.b32.xlu1 %v4687_v20, %s4522_s25  ;;  %4113 = vmatpush3.bf16.msra.mxu1 %v663_v16  ;;  %v4957_v20 = vld [vmem:[%s4645_s8 + $0x14] ss:$40 sps:$4 sm:$0xff]  }
  0xd9   : >> { %v763_v17 = vpop.permute.xlu0 %762  ;;  %4118 = vmatprep.subr.bf16.mxu1 %v4512_v10  ;;  %v765_v18 = vpop.permute.xlu1 %764 }
  0xda   : >> { %3892 = vmatmul.mubr.msk.bf16.vlgmr.msra.gmra.mrb[12].mxu0 %vm322_vm2, %v4594_v3  ;;  %v786_v41 = vsel %vm784_vm5, %v763_v17, %v765_v18 }
  0xdb   : >> { %1296 = vrot.lane.b32.xlu0 %v4700_v22, %s4522_s25  ;;  %4115 = vmatmul.mubr.msk.bf16.vlgmr.msra.gmra.mrb[12].mxu1 %vm322_vm2, %v4594_v3 }
  0xdc   : >> { %1302 = vrot.lane.b32.xlu1 %v4705_v23, %s4522_s25  ;;  %806 = vmatprep.subr.bf16.mxu0 %v786_v41  ;;  %v4967_v23 = vld [vmem:[%s4645_s8 + $0xc] ss:$40 sps:$4 sm:$0xff]  }
  0xdd   : >> { %v761_v42 = vpop.permute.xlu0 %760  ;;  %838 = vmatprep.mubr.bf16.mxu0 %v4514_v21  ;;  %4124 = vmatprep.mubr.msk.bf16.mxu1 %vm4515_vm0, %v4512_v10  ;;  %v767_v43 = vpop.permute.xlu1 %766 }
  0xde   : >> { %v785_v22 = vsel %vm784_vm5, %v761_v42, %v763_v17  ;;  %v787_v44 = vsel %vm784_vm5, %v765_v18, %v767_v43 }
  0xdf   : >> { %1491 = vrot.lane.b32.xlu0 %v4950_v19, %s4513_s9  ;;  %807 = vmatpush1.bf16.msra.mxu0 %v785_v22 }
  0xe0   : >> { %1493 = vrot.lane.b32.xlu1 %v4957_v20, %s4513_s9  ;;  %4119 = vmatpush3.bf16.msra.mxu1 %v787_v44 }
  0xe1   : >> { %v771_v46 = vpop.permute.xlu0 %770  ;;  %4120 = vmatprep.subr.bf16.mxu1 %v4512_v10  ;;  %v773_v47 = vpop.permute.xlu1 %772 }
  0xe2   : >> { %v789_v48 = vsel %vm784_vm5, %v771_v46, %v773_v47 }
  0xe3   : >> { %1489 = vrot.lane.b32.xlu0 %v4967_v23, %s4513_s9  ;;  %808 = vmatprep.subr.bf16.mxu0 %v789_v48 }
  0xe4   : >> { %1495 = vrot.lane.b32.xlu1 %v4972_v45, %s4513_s9 }
  0xe5   : >> { %v769_v51 = vpop.permute.xlu0 %768  ;;  %v775_v53 = vpop.permute.xlu1 %774 }
  0xe6   : >> { %v788_v52 = vsel %vm784_vm5, %v769_v51, %v771_v46  ;;  %v790_v54 = vsel %vm784_vm5, %v773_v47, %v775_v53 }
  0xe7   : >> { %1499 = vrot.lane.b32.xlu0 %v4979_v49, %s4513_s9  ;;  %809 = vmatpush1.bf16.msra.mxu0 %v788_v52 }
  0xe8   : >> { %1501 = vrot.lane.b32.xlu1 %v4984_v50, %s4513_s9  ;;  %4121 = vmatpush3.bf16.msra.mxu1 %v790_v54 }
  0xe9   : >> { %v779_v57 = vpop.permute.xlu0 %778  ;;  %4122 = vmatprep.subr.bf16.mxu1 %v4512_v10  ;;  %v781_v58 = vpop.permute.xlu1 %780 }
  0xea   : >> { %v792_v59 = vsel %vm784_vm5, %v779_v57, %v781_v58 }
  0xeb   : >> { %1497 = vrot.lane.b32.xlu0 %v4991_v55, %s4513_s9  ;;  %810 = vmatprep.subr.bf16.mxu0 %v792_v59 }
  0xec   : >> { %1503 = vrot.lane.b32.xlu1 %v4996_v56, %s4513_s9 }
  0xed   : >> { %v777_v62 = vpop.permute.xlu0 %776  ;;  %v783_v24 = vpop.permute.xlu1 %782 }
  0xee   : >> { %v791_v63 = vsel %vm784_vm5, %v777_v62, %v779_v57  ;;  %v793_v25 = vsel %vm784_vm5, %v781_v58, %v783_v24 }
  0xef   : >> { %1507 = vrot.lane.b32.xlu0 %v5003_v60, %s4513_s9  ;;  %811 = vmatpush1.bf16.msra.mxu0 %v791_v63 }
  0xf0   : >> { %1509 = vrot.lane.b32.xlu1 %v5008_v61, %s4513_s9  ;;  %4123 = vmatpush3.bf16.msra.mxu1 %v793_v25 }
  0xf1   : >> { %v893_v28 = vpop.permute.xlu0 %892  ;;  %4128 = vmatprep.subr.bf16.mxu1 %v4512_v10  ;;  %v895_v29 = vpop.permute.xlu1 %894 }
  0xf2   : >> { %3894 = vmatmul.mubr.msk.bf16.vlgmr.msra.gmra.mrb[16].mxu0 %vm322_vm2, %v4599_v4  ;;  %v916_v30 = vsel %vm914_vm6, %v893_v28, %v895_v29 }
  0xf3   : >> { %1505 = vrot.lane.b32.xlu0 %v5015_v26, %s4513_s9  ;;  %4125 = vmatmul.mubr.msk.bf16.vlgmr.msra.gmra.mrb[16].mxu1 %vm322_vm2, %v4599_v4 }
  0xf4   : >> { %1511 = vrot.lane.b32.xlu1 %v5020_v27, %s4513_s9  ;;  %936 = vmatprep.subr.bf16.mxu0 %v916_v30 }
  0xf5   : >> { %v891_v31 = vpop.permute.xlu0 %890  ;;  %968 = vmatprep.mubr.bf16.mxu0 %v4514_v21  ;;  %4134 = vmatprep.mubr.msk.bf16.mxu1 %vm4515_vm0, %v4512_v10  ;;  %v897_v33 = vpop.permute.xlu1 %896 }
  0xf6   : >> { %v915_v32 = vsel %vm914_vm6, %v891_v31, %v893_v28  ;;  %v917_v34 = vsel %vm914_vm6, %v895_v29, %v897_v33 }
  0xf7   : >> { %1704 = vrot.lane.b32.xlu0 %v4950_v19, %s4516_s10  ;;  %937 = vmatpush1.bf16.msra.mxu0 %v915_v32 }
  0xf8   : >> { %1706 = vrot.lane.b32.xlu1 %v4957_v20, %s4516_s10  ;;  %4129 = vmatpush3.bf16.msra.mxu1 %v917_v34 }
  0xf9   : >> { %v901_v35 = vpop.permute.xlu0 %900  ;;  %4130 = vmatprep.subr.bf16.mxu1 %v4512_v10  ;;  %v903_v36 = vpop.permute.xlu1 %902 }
  0xfa   : >> { %v919_v11 = vsel %vm914_vm6, %v901_v35, %v903_v36 }
  0xfb   : >> { %1702 = vrot.lane.b32.xlu0 %v4967_v23, %s4516_s10  ;;  %938 = vmatprep.subr.bf16.mxu0 %v919_v11 }
  0xfc   : >> { %1708 = vrot.lane.b32.xlu1 %v4972_v45, %s4516_s10 }
  0xfd   : >> { %v899_v37 = vpop.permute.xlu0 %898  ;;  %v905_v12 = vpop.permute.xlu1 %904 }
  0xfe   : >> { %v918_v13 = vsel %vm914_vm6, %v899_v37, %v901_v35  ;;  %v920_v38 = vsel %vm914_vm6, %v903_v36, %v905_v12 }
  0xff   : >> { %1712 = vrot.lane.b32.xlu0 %v4979_v49, %s4516_s10  ;;  %939 = vmatpush1.bf16.msra.mxu0 %v918_v13 }
 0x100   : >> { %1714 = vrot.lane.b32.xlu1 %v4984_v50, %s4516_s10  ;;  %4131 = vmatpush3.bf16.msra.mxu1 %v920_v38 }
 0x101   : >> { %v909_v14 = vpop.permute.xlu0 %908  ;;  %4132 = vmatprep.subr.bf16.mxu1 %v4512_v10  ;;  %v911_v15 = vpop.permute.xlu1 %910 }
 0x102   : >> { %v922_v39 = vsel %vm914_vm6, %v909_v14, %v911_v15 }
 0x103   : >> { %1710 = vrot.lane.b32.xlu0 %v4991_v55, %s4516_s10  ;;  %940 = vmatprep.subr.bf16.mxu0 %v922_v39 }
 0x104   : >> { %1716 = vrot.lane.b32.xlu1 %v4996_v56, %s4516_s10 }
 0x105   : >> { %v907_v40 = vpop.permute.xlu0 %906  ;;  %v913_v17 = vpop.permute.xlu1 %912 }
 0x106   : >> { %v921_v16 = vsel %vm914_vm6, %v907_v40, %v909_v14  ;;  %v923_v18 = vsel %vm914_vm6, %v911_v15, %v913_v17 }
 0x107   : >> { %1720 = vrot.lane.b32.xlu0 %v5003_v60, %s4516_s10  ;;  %941 = vmatpush1.bf16.msra.mxu0 %v921_v16 }
 0x108   : >> { %1722 = vrot.lane.b32.xlu1 %v5008_v61, %s4516_s10  ;;  %4133 = vmatpush3.bf16.msra.mxu1 %v923_v18 }
 0x109   : >> { %v1023_v41 = vpop.permute.xlu0 %1022  ;;  %4138 = vmatprep.subr.bf16.mxu1 %v4512_v10 }
 0x10a   : >> { %v1025_v42 = vpop.permute.xlu1 %1024  ;;  %3896 = vmatmul.mubr.msk.bf16.vlgmr.msra.gmra.mrb[20].mxu0 %vm322_vm2, %v4604_v5 }
 0x10b   : >> { %1718 = vrot.lane.b32.xlu0 %v5015_v26, %s4516_s10  ;;  %v1046_v22 = vsel %vm1044_vm7, %v1023_v41, %v1025_v42  ;;  %4135 = vmatmul.mubr.msk.bf16.vlgmr.msra.gmra.mrb[20].mxu1 %vm322_vm2, %v4604_v5 }
 0x10c   : >> { %1724 = vrot.lane.b32.xlu1 %v5020_v27, %s4516_s10  ;;  %1066 = vmatprep.subr.bf16.mxu0 %v1046_v22 }
 0x10d   : >> { %v1021_v43 = vpop.permute.xlu0 %1020  ;;  %1098 = vmatprep.mubr.bf16.mxu0 %v4514_v21  ;;  %4144 = vmatprep.mubr.msk.bf16.mxu1 %vm4515_vm0, %v4512_v10 }
 0x10e   : >> { %v1045_v44 = vsel %vm1044_vm7, %v1021_v43, %v1023_v41  ;;  %v1027_v46 = vpop.permute.xlu1 %1026 }
 0x10f   : >> { %v1047_v47 = vsel %vm1044_vm7, %v1025_v42, %v1027_v46  ;;  %1830 = vrot.lane.b32.xlu0 %v4950_v19, %s4517_s11  ;;  %1067 = vmatpush1.bf16.msra.mxu0 %v1045_v44 }
 0x110   : >> { %1832 = vrot.lane.b32.xlu1 %v4957_v20, %s4517_s11  ;;  %4139 = vmatpush3.bf16.msra.mxu1 %v1047_v47 }
 0x111   : >> { %v1031_v48 = vpop.permute.xlu0 %1030  ;;  %4140 = vmatprep.subr.bf16.mxu1 %v4512_v10 }
 0x112   : >> { %v1033_v51 = vpop.permute.xlu1 %1032 }
 0x113   : >> { %1828 = vrot.lane.b32.xlu0 %v4967_v23, %s4517_s11  ;;  %v1049_v52 = vsel %vm1044_vm7, %v1031_v48, %v1033_v51 }
 0x114   : >> { %1834 = vrot.lane.b32.xlu1 %v4972_v45, %s4517_s11  ;;  %1068 = vmatprep.subr.bf16.mxu0 %v1049_v52 }
 0x115   : >> { %v1029_v53 = vpop.permute.xlu0 %1028 }
 0x116   : >> { %v1048_v54 = vsel %vm1044_vm7, %v1029_v53, %v1031_v48  ;;  %v1035_v57 = vpop.permute.xlu1 %1034 }
 0x117   : >> { %v1050_v58 = vsel %vm1044_vm7, %v1033_v51, %v1035_v57  ;;  %1838 = vrot.lane.b32.xlu0 %v4979_v49, %s4517_s11  ;;  %1069 = vmatpush1.bf16.msra.mxu0 %v1048_v54 }
 0x118   : >> { %1840 = vrot.lane.b32.xlu1 %v4984_v50, %s4517_s11  ;;  %4141 = vmatpush3.bf16.msra.mxu1 %v1050_v58 }
 0x119   : >> { %v1039_v59 = vpop.permute.xlu0 %1038  ;;  %4142 = vmatprep.subr.bf16.mxu1 %v4512_v10 }
 0x11a   : >> { %v1041_v62 = vpop.permute.xlu1 %1040 }
 0x11b   : >> { %1836 = vrot.lane.b32.xlu0 %v4991_v55, %s4517_s11  ;;  %v1052_v63 = vsel %vm1044_vm7, %v1039_v59, %v1041_v62 }
 0x11c   : >> { %1842 = vrot.lane.b32.xlu1 %v4996_v56, %s4517_s11  ;;  %1070 = vmatprep.subr.bf16.mxu0 %v1052_v63 }
 0x11d   : >> { %v1037_v24 = vpop.permute.xlu0 %1036 }
 0x11e   : >> { %v1051_v25 = vsel %vm1044_vm7, %v1037_v24, %v1039_v59  ;;  %v1043_v28 = vpop.permute.xlu1 %1042 }
 0x11f   : >> { %v1053_v29 = vsel %vm1044_vm7, %v1041_v62, %v1043_v28  ;;  %1846 = vrot.lane.b32.xlu0 %v5003_v60, %s4517_s11  ;;  %1071 = vmatpush1.bf16.msra.mxu0 %v1051_v25 }
 0x120   : >> { %1848 = vrot.lane.b32.xlu1 %v5008_v61, %s4517_s11  ;;  %4143 = vmatpush3.bf16.msra.mxu1 %v1053_v29 }
 0x121   : >> { %v1153_v30 = vpop.permute.xlu0 %1152  ;;  %4148 = vmatprep.subr.bf16.mxu1 %v4512_v10 }
 0x122   : >> { %v1155_v31 = vpop.permute.xlu1 %1154  ;;  %3898 = vmatmul.mubr.msk.bf16.vlgmr.msra.gmra.mrb[24].mxu0 %vm322_vm2, %v4609_v6 }
 0x123   : >> { %1844 = vrot.lane.b32.xlu0 %v5015_v26, %s4517_s11  ;;  %v1176_v32 = vsel %vm1174_vm8, %v1153_v30, %v1155_v31  ;;  %4145 = vmatmul.mubr.msk.bf16.vlgmr.msra.gmra.mrb[24].mxu1 %vm322_vm2, %v4609_v6 }
 0x124   : >> { %1850 = vrot.lane.b32.xlu1 %v5020_v27, %s4517_s11  ;;  %1196 = vmatprep.subr.bf16.mxu0 %v1176_v32 }
 0x125   : >> { %v1151_v33 = vpop.permute.xlu0 %1150  ;;  %1228 = vmatprep.mubr.bf16.mxu0 %v4514_v21  ;;  %4154 = vmatprep.mubr.msk.bf16.mxu1 %vm4515_vm0, %v4512_v10 }
 0x126   : >> { %v1175_v34 = vsel %vm1174_vm8, %v1151_v33, %v1153_v30  ;;  %v1157_v35 = vpop.permute.xlu1 %1156 }
 0x127   : >> { %v1177_v36 = vsel %vm1174_vm8, %v1155_v31, %v1157_v35  ;;  %1956 = vrot.lane.b32.xlu0 %v4950_v19, %s4518_s20  ;;  %1197 = vmatpush1.bf16.msra.mxu0 %v1175_v34 }
 0x128   : >> { %1958 = vrot.lane.b32.xlu1 %v4957_v20, %s4518_s20  ;;  %4149 = vmatpush3.bf16.msra.mxu1 %v1177_v36 }
 0x129   : >> { %v1161_v11 = vpop.permute.xlu0 %1160  ;;  %4150 = vmatprep.subr.bf16.mxu1 %v4512_v10 }
 0x12a   : >> { %v1163_v37 = vpop.permute.xlu1 %1162 }
 0x12b   : >> { %1954 = vrot.lane.b32.xlu0 %v4967_v23, %s4518_s20  ;;  %v1179_v13 = vsel %vm1174_vm8, %v1161_v11, %v1163_v37 }
 0x12c   : >> { %1960 = vrot.lane.b32.xlu1 %v4972_v45, %s4518_s20  ;;  %1198 = vmatprep.subr.bf16.mxu0 %v1179_v13 }
 0x12d   : >> { %v1159_v12 = vpop.permute.xlu0 %1158 }
 0x12e   : >> { %v1178_v38 = vsel %vm1174_vm8, %v1159_v12, %v1161_v11  ;;  %v1165_v14 = vpop.permute.xlu1 %1164 }
 0x12f   : >> { %v1180_v15 = vsel %vm1174_vm8, %v1163_v37, %v1165_v14  ;;  %1964 = vrot.lane.b32.xlu0 %v4979_v49, %s4518_s20  ;;  %1199 = vmatpush1.bf16.msra.mxu0 %v1178_v38 }
 0x130   : >> { %1966 = vrot.lane.b32.xlu1 %v4984_v50, %s4518_s20  ;;  %4151 = vmatpush3.bf16.msra.mxu1 %v1180_v15 }
 0x131   : >> { %v1169_v39 = vpop.permute.xlu0 %1168  ;;  %4152 = vmatprep.subr.bf16.mxu1 %v4512_v10 }
 0x132   : >> { %v1171_v40 = vpop.permute.xlu1 %1170 }
 0x133   : >> { %1962 = vrot.lane.b32.xlu0 %v4991_v55, %s4518_s20  ;;  %v1182_v16 = vsel %vm1174_vm8, %v1169_v39, %v1171_v40 }
 0x134   : >> { %1968 = vrot.lane.b32.xlu1 %v4996_v56, %s4518_s20  ;;  %1200 = vmatprep.subr.bf16.mxu0 %v1182_v16 }
 0x135   : >> { %v1167_v17 = vpop.permute.xlu0 %1166 }
 0x136   : >> { %v1181_v18 = vsel %vm1174_vm8, %v1167_v17, %v1169_v39  ;;  %v1173_v41 = vpop.permute.xlu1 %1172 }
 0x137   : >> { %v1183_v42 = vsel %vm1174_vm8, %v1171_v40, %v1173_v41  ;;  %1972 = vrot.lane.b32.xlu0 %v5003_v60, %s4518_s20  ;;  %1201 = vmatpush1.bf16.msra.mxu0 %v1181_v18 }
 0x138   : >> { %1974 = vrot.lane.b32.xlu1 %v5008_v61, %s4518_s20  ;;  %4153 = vmatpush3.bf16.msra.mxu1 %v1183_v42 }
 0x139   : >> { %v1283_v22 = vpop.permute.xlu0 %1282  ;;  %4158 = vmatprep.subr.bf16.mxu1 %v4512_v10 }
 0x13a   : >> { %v1285_v43 = vpop.permute.xlu1 %1284  ;;  %3900 = vmatmul.mubr.msk.bf16.vlgmr.msra.gmra.mrb[28].mxu0 %vm322_vm2, %v4619_v8 }
 0x13b   : >> { %1970 = vrot.lane.b32.xlu0 %v5015_v26, %s4518_s20  ;;  %v1306_v44 = vsel %vm1304_vm9, %v1283_v22, %v1285_v43  ;;  %4155 = vmatmul.mubr.msk.bf16.vlgmr.msra.gmra.mrb[28].mxu1 %vm322_vm2, %v4619_v8 }
 0x13c   : >> { %1976 = vrot.lane.b32.xlu1 %v5020_v27, %s4518_s20  ;;  %1326 = vmatprep.subr.bf16.mxu0 %v1306_v44 }
 0x13d   : >> { %v1281_v46 = vpop.permute.xlu0 %1280  ;;  %1358 = vmatprep.mubr.bf16.mxu0 %v4514_v21  ;;  %4164 = vmatprep.mubr.msk.bf16.mxu1 %vm4515_vm0, %v4512_v10 }
 0x13e   : >> { %v1305_v47 = vsel %vm1304_vm9, %v1281_v46, %v1283_v22  ;;  %v1287_v48 = vpop.permute.xlu1 %1286 }
 0x13f   : >> { %v1307_v51 = vsel %vm1304_vm9, %v1285_v43, %v1287_v48  ;;  %2082 = vrot.lane.b32.xlu0 %v4950_v19, %s4519_s21  ;;  %1327 = vmatpush1.bf16.msra.mxu0 %v1305_v47 }
 0x140   : >> { %2084 = vrot.lane.b32.xlu1 %v4957_v20, %s4519_s21  ;;  %4159 = vmatpush3.bf16.msra.mxu1 %v1307_v51 }
 0x141   : >> { %v1291_v52 = vpop.permute.xlu0 %1290  ;;  %4160 = vmatprep.subr.bf16.mxu1 %v4512_v10 }
 0x142   : >> { %v1293_v53 = vpop.permute.xlu1 %1292 }
 0x143   : >> { %2080 = vrot.lane.b32.xlu0 %v4967_v23, %s4519_s21  ;;  %v1309_v54 = vsel %vm1304_vm9, %v1291_v52, %v1293_v53 }
 0x144   : >> { %2086 = vrot.lane.b32.xlu1 %v4972_v45, %s4519_s21  ;;  %1328 = vmatprep.subr.bf16.mxu0 %v1309_v54 }
 0x145   : >> { %v1289_v57 = vpop.permute.xlu0 %1288 }
 0x146   : >> { %v1308_v58 = vsel %vm1304_vm9, %v1289_v57, %v1291_v52  ;;  %v1295_v59 = vpop.permute.xlu1 %1294 }
 0x147   : >> { %v1310_v62 = vsel %vm1304_vm9, %v1293_v53, %v1295_v59  ;;  %2090 = vrot.lane.b32.xlu0 %v4979_v49, %s4519_s21  ;;  %1329 = vmatpush1.bf16.msra.mxu0 %v1308_v58 }
 0x148   : >> { %2092 = vrot.lane.b32.xlu1 %v4984_v50, %s4519_s21  ;;  %4161 = vmatpush3.bf16.msra.mxu1 %v1310_v62 }
 0x149   : >> { %v1299_v63 = vpop.permute.xlu0 %1298  ;;  %4162 = vmatprep.subr.bf16.mxu1 %v4512_v10 }
 0x14a   : >> { %v1301_v24 = vpop.permute.xlu1 %1300 }
 0x14b   : >> { %2088 = vrot.lane.b32.xlu0 %v4991_v55, %s4519_s21  ;;  %v1312_v25 = vsel %vm1304_vm9, %v1299_v63, %v1301_v24 }
 0x14c   : >> { %2094 = vrot.lane.b32.xlu1 %v4996_v56, %s4519_s21  ;;  %1330 = vmatprep.subr.bf16.mxu0 %v1312_v25 }
 0x14d   : >> { %v1297_v28 = vpop.permute.xlu0 %1296 }
 0x14e   : >> { %v1311_v29 = vsel %vm1304_vm9, %v1297_v28, %v1299_v63  ;;  %v1303_v30 = vpop.permute.xlu1 %1302 }
 0x14f   : >> { %v1313_v31 = vsel %vm1304_vm9, %v1301_v24, %v1303_v30  ;;  %2098 = vrot.lane.b32.xlu0 %v5003_v60, %s4519_s21  ;;  %1331 = vmatpush1.bf16.msra.mxu0 %v1311_v29 }
 0x150   : >> { %2100 = vrot.lane.b32.xlu1 %v5008_v61, %s4519_s21  ;;  %4163 = vmatpush3.bf16.msra.mxu1 %v1313_v31 }
 0x151   : >> { %v1492_v32 = vpop.permute.xlu0 %1491  ;;  %4168 = vmatprep.subr.bf16.mxu1 %v4512_v10 }
 0x152   : >> { %v1494_v33 = vpop.permute.xlu1 %1493  ;;  %3902 = vmatmul.mubr.msk.bf16.vlgmr.msra.gmra.mrb[32].mxu0 %vm322_vm2, %v4624_v9 }
 0x153   : >> { %2096 = vrot.lane.b32.xlu0 %v5015_v26, %s4519_s21  ;;  %v1514_v34 = vsel %vm303_vm1, %v1492_v32, %v1494_v33  ;;  %4165 = vmatmul.mubr.msk.bf16.vlgmr.msra.gmra.mrb[32].mxu1 %vm322_vm2, %v4624_v9 }
 0x154   : >> { %2102 = vrot.lane.b32.xlu1 %v5020_v27, %s4519_s21  ;;  %1531 = vmatprep.subr.bf16.mxu0 %v1514_v34 }
 0x155   : >> { %v1490_v35 = vpop.permute.xlu0 %1489  ;;  %1563 = vmatprep.mubr.bf16.mxu0 %v4514_v21  ;;  %4174 = vmatprep.mubr.msk.bf16.mxu1 %vm4515_vm0, %v4512_v10 }
 0x156   : >> { %v1513_v36 = vsel %vm303_vm1, %v1490_v35, %v1492_v32  ;;  %v1496_v11 = vpop.permute.xlu1 %1495 }
 0x157   : >> { %v1515_v37 = vsel %vm303_vm1, %v1494_v33, %v1496_v11  ;;  %2208 = vrot.lane.b32.xlu0 %v4950_v19, %s4520_s22  ;;  %1532 = vmatpush1.bf16.msra.mxu0 %v1513_v36 }
 0x158   : >> { %2210 = vrot.lane.b32.xlu1 %v4957_v20, %s4520_s22  ;;  %4169 = vmatpush3.bf16.msra.mxu1 %v1515_v37 }
 0x159   : >> { %v1500_v13 = vpop.permute.xlu0 %1499  ;;  %4170 = vmatprep.subr.bf16.mxu1 %v4512_v10 }
 0x15a   : >> { %v1502_v12 = vpop.permute.xlu1 %1501 }
 0x15b   : >> { %2206 = vrot.lane.b32.xlu0 %v4967_v23, %s4520_s22  ;;  %v1517_v38 = vsel %vm303_vm1, %v1500_v13, %v1502_v12 }
 0x15c   : >> { %2212 = vrot.lane.b32.xlu1 %v4972_v45, %s4520_s22  ;;  %1533 = vmatprep.subr.bf16.mxu0 %v1517_v38 }
 0x15d   : >> { %v1498_v14 = vpop.permute.xlu0 %1497 }
 0x15e   : >> { %v1516_v15 = vsel %vm303_vm1, %v1498_v14, %v1500_v13  ;;  %v1504_v39 = vpop.permute.xlu1 %1503 }
 0x15f   : >> { %v1518_v40 = vsel %vm303_vm1, %v1502_v12, %v1504_v39  ;;  %2216 = vrot.lane.b32.xlu0 %v4979_v49, %s4520_s22  ;;  %1534 = vmatpush1.bf16.msra.mxu0 %v1516_v15 }
 0x160   : >> { %2218 = vrot.lane.b32.xlu1 %v4984_v50, %s4520_s22  ;;  %4171 = vmatpush3.bf16.msra.mxu1 %v1518_v40 }
 0x161   : >> { %v1508_v16 = vpop.permute.xlu0 %1507  ;;  %4172 = vmatprep.subr.bf16.mxu1 %v4512_v10 }
 0x162   : >> { %v1510_v17 = vpop.permute.xlu1 %1509 }
 0x163   : >> { %2214 = vrot.lane.b32.xlu0 %v4991_v55, %s4520_s22  ;;  %v1520_v18 = vsel %vm303_vm1, %v1508_v16, %v1510_v17 }
 0x164   : >> { %2220 = vrot.lane.b32.xlu1 %v4996_v56, %s4520_s22  ;;  %1535 = vmatprep.subr.bf16.mxu0 %v1520_v18 }
 0x165   : >> { %v1506_v41 = vpop.permute.xlu0 %1505 }
 0x166   : >> { %v1519_v42 = vsel %vm303_vm1, %v1506_v41, %v1508_v16  ;;  %v1512_v22 = vpop.permute.xlu1 %1511 }
 0x167   : >> { %v1521_v43 = vsel %vm303_vm1, %v1510_v17, %v1512_v22  ;;  %2224 = vrot.lane.b32.xlu0 %v5003_v60, %s4520_s22  ;;  %1536 = vmatpush1.bf16.msra.mxu0 %v1519_v42  ;;  %v5349_v42 = vld [vmem:[%s4645_s8 + $0x1c] ss:$40 sps:$4 sm:$0xff]  }
 0x168   : >> { %2226 = vrot.lane.b32.xlu1 %v5008_v61, %s4520_s22  ;;  %4173 = vmatpush3.bf16.msra.mxu1 %v1521_v43 }
 0x169   : >> { %v1705_v44 = vpop.permute.xlu0 %1704  ;;  %1621 = vmatprep.subr.bf16.mxu0 %v4950_v19  ;;  %4178 = vmatprep.subr.bf16.mxu1 %v4512_v10 }
 0x16a   : >> { %v1707_v46 = vpop.permute.xlu1 %1706  ;;  %3917 = vmatmul.mubr.msk.bf16.vlgmr.msra.gmra.mrb[36].mxu0 %vm322_vm2, %v4584_v1 }
 0x16b   : >> { %2222 = vrot.lane.b32.xlu0 %v5015_v26, %s4520_s22  ;;  %4175 = vmatmul.mubr.msk.bf16.vlgmr.msra.gmra.mrb[36].mxu1 %vm322_vm2, %v4584_v1  ;;  %v1727_v53 = vsel %vm524_vm3, %v1705_v44, %v1707_v46 }
 0x16c   : >> { %2228 = vrot.lane.b32.xlu1 %v5020_v27, %s4520_s22  ;;  %1622 = vmatpush1.bf16.msra.mxu0 %v4967_v23 }
 0x16d   : >> { %4179 = vmatpush3.bf16.msra.mxu1 %v4957_v20  ;;  %v1703_v47 = vpop.permute.xlu0 %1702  ;;  %1623 = vmatprep.subr.bf16.mxu0 %v4979_v49 }
 0x16e   : >> { %v1709_v48 = vpop.permute.xlu1 %1708  ;;  %4180 = vmatprep.subr.bf16.mxu1 %v4512_v10  ;;  %1653 = vmatprep.mubr.bf16.mxu0 %v4514_v21  ;;  %v1726_v58 = vsel %vm524_vm3, %v1703_v47, %v1705_v44  ;;  %v5371_v44 = vld [vmem:[%s4645_s8 + $0x24] ss:$40 sps:$4 sm:$0xff]  }
 0x16f   : >> { %2334 = vrot.lane.b32.xlu0 %v4950_v19, %s4521_s23  ;;  %4184 = vmatprep.mubr.msk.bf16.mxu1 %vm4515_vm0, %v4512_v10  ;;  %v1728_v59 = vsel %vm524_vm3, %v1707_v46, %v1709_v48 }
 0x170   : >> { %2336 = vrot.lane.b32.xlu1 %v4957_v20, %s4521_s23  ;;  %1624 = vmatpush1.bf16.msra.mxu0 %v4991_v55 }
 0x171   : >> { %4181 = vmatpush3.bf16.msra.mxu1 %v4984_v50  ;;  %v1713_v51 = vpop.permute.xlu0 %1712  ;;  %1625 = vmatprep.subr.bf16.mxu0 %v5003_v60 }
 0x172   : >> { %v1715_v52 = vpop.permute.xlu1 %1714  ;;  %4182 = vmatprep.subr.bf16.mxu1 %v4512_v10 }
 0x173   : >> { %2332 = vrot.lane.b32.xlu0 %v4967_v23, %s4521_s23  ;;  %v1730_v62 = vsel %vm524_vm3, %v1713_v51, %v1715_v52 }
 0x174   : >> { %2338 = vrot.lane.b32.xlu1 %v4972_v45, %s4521_s23  ;;  %1626 = vmatpush1.bf16.msra.mxu0 %v5015_v26 }
 0x175   : >> { %4183 = vmatpush3.bf16.msra.mxu1 %v5008_v61  ;;  %1744 = vmatprep.subr.bf16.mxu0 %v1727_v53  ;;  %v1711_v54 = vpop.permute.xlu0 %1710 }
 0x176   : >> { %v1717_v57 = vpop.permute.xlu1 %1716  ;;  %4188 = vmatprep.subr.bf16.mxu1 %v4512_v10  ;;  %v1729_v28 = vsel %vm524_vm3, %v1711_v54, %v1713_v51  ;;  %v5378_v51 = vld [vmem:[%s4645_s8 + $0x6c] ss:$40 sps:$4 sm:$0xff]  }
 0x177   : >> { %2342 = vrot.lane.b32.xlu0 %v4979_v49, %s4521_s23  ;;  %3919 = vmatmul.mubr.msk.bf16.vlgmr.msra.gmra.mrb[40].mxu0 %vm322_vm2, %v4579_v0  ;;  %v1731_v29 = vsel %vm524_vm3, %v1715_v52, %v1717_v57  ;;  %v5383_v52 = vld [vmem:[%s4645_s8 + $0x70] ss:$40 sps:$4 sm:$0xff]  }
 0x178   : >> { %2344 = vrot.lane.b32.xlu1 %v4984_v50, %s4521_s23  ;;  %4185 = vmatmul.mubr.msk.bf16.vlgmr.msra.gmra.mrb[40].mxu1 %vm322_vm2, %v4579_v0 }
 0x179   : >> { %1745 = vmatpush1.bf16.msra.mxu0 %v1726_v58  ;;  %4189 = vmatpush3.bf16.msra.mxu1 %v1728_v59  ;;  %v1721_v63 = vpop.permute.xlu0 %1720  ;;  %v5390_v59 = vld [vmem:[%s4645_s8 + $0x68] ss:$40 sps:$4 sm:$0xff]  }
 0x17a   : >> { %1746 = vmatprep.subr.bf16.mxu0 %v1730_v62  ;;  %v1723_v24 = vpop.permute.xlu1 %1722  ;;  %4190 = vmatprep.subr.bf16.mxu1 %v4512_v10  ;;  %v5395_v62 = vld [vmem:[%s4645_s8 + $0x74] ss:$40 sps:$4 sm:$0xff]  }
 0x17b   : >> { %2340 = vrot.lane.b32.xlu0 %v4991_v55, %s4521_s23  ;;  %v1733_v25 = vsel %vm524_vm3, %v1721_v63, %v1723_v24  ;;  %1776 = vmatprep.mubr.bf16.mxu0 %v4514_v21 }
 0x17c   : >> { %2346 = vrot.lane.b32.xlu1 %v4996_v56, %s4521_s23  ;;  %4194 = vmatprep.mubr.msk.bf16.mxu1 %vm4515_vm0, %v4512_v10 }
 0x17d   : >> { %1747 = vmatpush1.bf16.msra.mxu0 %v1729_v28  ;;  %4191 = vmatpush3.bf16.msra.mxu1 %v1731_v29  ;;  %v1719_v30 = vpop.permute.xlu0 %1718  ;;  %v5402_v28 = vld [vmem:[%s4645_s8 + $0xbc] ss:$40 sps:$4 sm:$0xff]   ;;  %v5407_v29 = vld [vmem:[%s4645_s8 + $0xc0] ss:$40 sps:$4 sm:$0xff]  }
 0x17e   : >> { %1748 = vmatprep.subr.bf16.mxu0 %v1733_v25  ;;  %v1732_v31 = vsel %vm524_vm3, %v1719_v30, %v1721_v63  ;;  %v1725_v32 = vpop.permute.xlu1 %1724  ;;  %4192 = vmatprep.subr.bf16.mxu1 %v4512_v10 }
 0x17f   : >> { %v1734_v33 = vsel %vm524_vm3, %v1723_v24, %v1725_v32  ;;  %2350 = vrot.lane.b32.xlu0 %v5003_v60, %s4521_s23 }
 0x180   : >> { %2352 = vrot.lane.b32.xlu1 %v5008_v61, %s4521_s23 }
 0x181   : >> { %1749 = vmatpush1.bf16.msra.mxu0 %v1732_v31  ;;  %4193 = vmatpush3.bf16.msra.mxu1 %v1734_v33  ;;  %v1831_v34 = vpop.permute.xlu0 %1830 }
 0x182   : >> { %v1833_v35 = vpop.permute.xlu1 %1832  ;;  %4198 = vmatprep.subr.bf16.mxu1 %v4512_v10 }
 0x183   : >> { %2348 = vrot.lane.b32.xlu0 %v5015_v26, %s4521_s23  ;;  %v1853_v36 = vsel %vm654_vm4, %v1831_v34, %v1833_v35 }
 0x184   : >> { %2354 = vrot.lane.b32.xlu1 %v5020_v27, %s4521_s23  ;;  %1870 = vmatprep.subr.bf16.mxu0 %v1853_v36 }
 0x185   : >> { %v1829_v11 = vpop.permute.xlu0 %1828  ;;  %3921 = vmatmul.mubr.msk.bf16.vlgmr.msra.gmra.mrb[44].mxu0 %vm322_vm2, %v4589_v2  ;;  %4195 = vmatmul.mubr.msk.bf16.vlgmr.msra.gmra.mrb[44].mxu1 %vm322_vm2, %v4589_v2 }
 0x186   : >> { %v1852_v37 = vsel %vm654_vm4, %v1829_v11, %v1831_v34  ;;  %v1835_v13 = vpop.permute.xlu1 %1834  ;;  %1902 = vmatprep.mubr.bf16.mxu0 %v4514_v21  ;;  %4204 = vmatprep.mubr.msk.bf16.mxu1 %vm4515_vm0, %v4512_v10  ;;  %v5414_v34 = vld [vmem:[%s4645_s8 + $0xb8] ss:$40 sps:$4 sm:$0xff]  }
 0x187   : >> { %v1854_v12 = vsel %vm654_vm4, %v1833_v35, %v1835_v13  ;;  %2460 = vrot.lane.b32.xlu0 %v4950_v19, %s4522_s25  ;;  %1871 = vmatpush1.bf16.msra.mxu0 %v1852_v37  ;;  %v5419_v35 = vld [vmem:[%s4645_s8 + $0xc4] ss:$40 sps:$4 sm:$0xff]  }
 0x188   : >> { %2462 = vrot.lane.b32.xlu1 %v4957_v20, %s4522_s25  ;;  %4199 = vmatpush3.bf16.msra.mxu1 %v1854_v12 }
 0x189   : >> { %v1839_v38 = vpop.permute.xlu0 %1838  ;;  %4200 = vmatprep.subr.bf16.mxu1 %v4512_v10 }
 0x18a   : >> { %v1841_v14 = vpop.permute.xlu1 %1840 }
 0x18b   : >> { %2458 = vrot.lane.b32.xlu0 %v4967_v23, %s4522_s25  ;;  %v1856_v15 = vsel %vm654_vm4, %v1839_v38, %v1841_v14 }
 0x18c   : >> { %2464 = vrot.lane.b32.xlu1 %v4972_v45, %s4522_s25  ;;  %1872 = vmatprep.subr.bf16.mxu0 %v1856_v15 }
 0x18d   : >> { %v1837_v39 = vpop.permute.xlu0 %1836 }
 0x18e   : >> { %v1855_v19 = vsel %vm654_vm4, %v1837_v39, %v1839_v38  ;;  %v1843_v40 = vpop.permute.xlu1 %1842 }
 0x18f   : >> { %v1857_v20 = vsel %vm654_vm4, %v1841_v14, %v1843_v40  ;;  %2468 = vrot.lane.b32.xlu0 %v4979_v49, %s4522_s25  ;;  %1873 = vmatpush1.bf16.msra.mxu0 %v1855_v19 }
 0x190   : >> { %2470 = vrot.lane.b32.xlu1 %v4984_v50, %s4522_s25  ;;  %4201 = vmatpush3.bf16.msra.mxu1 %v1857_v20 }
 0x191   : >> { %v1847_v23 = vpop.permute.xlu0 %1846  ;;  %4202 = vmatprep.subr.bf16.mxu1 %v4512_v10 }
 0x192   : >> { %v1849_v16 = vpop.permute.xlu1 %1848 }
 0x193   : >> { %2466 = vrot.lane.b32.xlu0 %v4991_v55, %s4522_s25  ;;  %v1859_v45 = vsel %vm654_vm4, %v1847_v23, %v1849_v16 }
 0x194   : >> { %2472 = vrot.lane.b32.xlu1 %v4996_v56, %s4522_s25  ;;  %1874 = vmatprep.subr.bf16.mxu0 %v1859_v45 }
 0x195   : >> { %v1845_v49 = vpop.permute.xlu0 %1844 }
 0x196   : >> { %v1858_v17 = vsel %vm654_vm4, %v1845_v49, %v1847_v23  ;;  %v1851_v18 = vpop.permute.xlu1 %1850 }
 0x197   : >> { %v1860_v50 = vsel %vm654_vm4, %v1849_v16, %v1851_v18  ;;  %2476 = vrot.lane.b32.xlu0 %v5003_v60, %s4522_s25  ;;  %1875 = vmatpush1.bf16.msra.mxu0 %v1858_v17  ;;  %v5356_v60 = vld [vmem:[%s4645_s8 + $0x20] ss:$40 sps:$4 sm:$0xff]  }
 0x198   : >> { %2478 = vrot.lane.b32.xlu1 %v5008_v61, %s4522_s25  ;;  %4203 = vmatpush3.bf16.msra.mxu1 %v1860_v50 }
 0x199   : >> { %v1957_v55 = vpop.permute.xlu0 %1956  ;;  %4208 = vmatprep.subr.bf16.mxu1 %v4512_v10 }
 0x19a   : >> { %v1959_v56 = vpop.permute.xlu1 %1958  ;;  %3923 = vmatmul.mubr.msk.bf16.vlgmr.msra.gmra.mrb[48].mxu0 %vm322_vm2, %v4594_v3 }
 0x19b   : >> { %2474 = vrot.lane.b32.xlu0 %v5015_v26, %s4522_s25  ;;  %v1979_v41 = vsel %vm784_vm5, %v1957_v55, %v1959_v56  ;;  %4205 = vmatmul.mubr.msk.bf16.vlgmr.msra.gmra.mrb[48].mxu1 %vm322_vm2, %v4594_v3 }
 0x19c   : >> { %2480 = vrot.lane.b32.xlu1 %v5020_v27, %s4522_s25  ;;  %1996 = vmatprep.subr.bf16.mxu0 %v1979_v41  ;;  %v5366_v27 = vld [vmem:[%s4645_s8 + $0x18] ss:$40 sps:$4 sm:$0xff]   ;;  %s3760_s8 = sshra.s32 %s3759_s7, 7 }
 0x19d   : >> { %v1955_v61 = vpop.permute.xlu0 %1954  ;;  %2028 = vmatprep.mubr.bf16.mxu0 %v4514_v21  ;;  %4214 = vmatprep.mubr.msk.bf16.mxu1 %vm4515_vm0, %v4512_v10 }
 0x19e   : >> { %v1978_v26 = vsel %vm784_vm5, %v1955_v61, %v1957_v55  ;;  %v1961_v22 = vpop.permute.xlu1 %1960 }
 0x19f   : >> { %v1980_v43 = vsel %vm784_vm5, %v1959_v56, %v1961_v22  ;;  %2660 = vrot.lane.b32.xlu0 %v5349_v42, %s4513_s9  ;;  %1997 = vmatpush1.bf16.msra.mxu0 %v1978_v26 }
 0x1a0   : >> { %2662 = vrot.lane.b32.xlu1 %v5356_v60, %s4513_s9  ;;  %4209 = vmatpush3.bf16.msra.mxu1 %v1980_v43 }
 0x1a1   : >> { %v1965_v46 = vpop.permute.xlu0 %1964  ;;  %4210 = vmatprep.subr.bf16.mxu1 %v4512_v10 }
 0x1a2   : >> { %v1967_v47 = vpop.permute.xlu1 %1966 }
 0x1a3   : >> { %2658 = vrot.lane.b32.xlu0 %v5366_v27, %s4513_s9  ;;  %v1982_v48 = vsel %vm784_vm5, %v1965_v46, %v1967_v47 }
 0x1a4   : >> { %2664 = vrot.lane.b32.xlu1 %v5371_v44, %s4513_s9  ;;  %1998 = vmatprep.subr.bf16.mxu0 %v1982_v48 }
 0x1a5   : >> { %v1963_v53 = vpop.permute.xlu0 %1962 }
 0x1a6   : >> { %v1981_v54 = vsel %vm784_vm5, %v1963_v53, %v1965_v46  ;;  %v1969_v57 = vpop.permute.xlu1 %1968 }
 0x1a7   : >> { %v1983_v58 = vsel %vm784_vm5, %v1967_v47, %v1969_v57  ;;  %2668 = vrot.lane.b32.xlu0 %v5378_v51, %s4513_s9  ;;  %1999 = vmatpush1.bf16.msra.mxu0 %v1981_v54 }
 0x1a8   : >> { %2670 = vrot.lane.b32.xlu1 %v5383_v52, %s4513_s9  ;;  %4211 = vmatpush3.bf16.msra.mxu1 %v1983_v58 }
 0x1a9   : >> { %v1973_v63 = vpop.permute.xlu0 %1972  ;;  %4212 = vmatprep.subr.bf16.mxu1 %v4512_v10 }
 0x1aa   : >> { %v1975_v24 = vpop.permute.xlu1 %1974 }
 0x1ab   : >> { %2666 = vrot.lane.b32.xlu0 %v5390_v59, %s4513_s9  ;;  %v1985_v25 = vsel %vm784_vm5, %v1973_v63, %v1975_v24 }
 0x1ac   : >> { %2672 = vrot.lane.b32.xlu1 %v5395_v62, %s4513_s9  ;;  %2000 = vmatprep.subr.bf16.mxu0 %v1985_v25 }
 0x1ad   : >> { %v1971_v30 = vpop.permute.xlu0 %1970 }
 0x1ae   : >> { %v1984_v31 = vsel %vm784_vm5, %v1971_v30, %v1973_v63  ;;  %v1977_v32 = vpop.permute.xlu1 %1976 }
 0x1af   : >> { %v1986_v33 = vsel %vm784_vm5, %v1975_v24, %v1977_v32  ;;  %2676 = vrot.lane.b32.xlu0 %v5402_v28, %s4513_s9  ;;  %2001 = vmatpush1.bf16.msra.mxu0 %v1984_v31  ;;  %v360_v32 = vpop.f32.mrb[0].mxu0 }
 0x1b0   : >> { %2678 = vrot.lane.b32.xlu1 %v5407_v29, %s4513_s9  ;;  %4213 = vmatpush3.bf16.msra.mxu1 %v1986_v33  ;;  %v362_v33 = vpop.f32.mrb[1].mxu0 }
 0x1b1   : >> { %v2083_v36 = vpop.permute.xlu0 %2082  ;;  %4218 = vmatprep.subr.bf16.mxu1 %v4512_v10 }
 0x1b2   : >> { %v2085_v11 = vpop.permute.xlu1 %2084  ;;  %3925 = vmatmul.mubr.msk.bf16.vlgmr.msra.gmra.mrb[52].mxu0 %vm322_vm2, %v4599_v4 }
 0x1b3   : >> { %2674 = vrot.lane.b32.xlu0 %v5414_v34, %s4513_s9  ;;  %v2105_v37 = vsel %vm914_vm6, %v2083_v36, %v2085_v11  ;;  %4215 = vmatmul.mubr.msk.bf16.vlgmr.msra.gmra.mrb[52].mxu1 %vm322_vm2, %v4599_v4 }
 0x1b4   : >> { %2680 = vrot.lane.b32.xlu1 %v5419_v35, %s4513_s9  ;;  %2122 = vmatprep.subr.bf16.mxu0 %v2105_v37  ;;  %s3966_s9 = sshll.u32 %s3760_s8, 3 }
 0x1b5   : >> { %v2081_v13 = vpop.permute.xlu0 %2080  ;;  %2154 = vmatprep.mubr.bf16.mxu0 %v4514_v21  ;;  %4224 = vmatprep.mubr.msk.bf16.mxu1 %vm4515_vm0, %v4512_v10 }
 0x1b6   : >> { %v2104_v12 = vsel %vm914_vm6, %v2081_v13, %v2083_v36  ;;  %v2087_v38 = vpop.permute.xlu1 %2086 }
 0x1b7   : >> { %v2106_v14 = vsel %vm914_vm6, %v2085_v11, %v2087_v38  ;;  %2873 = vrot.lane.b32.xlu0 %v5349_v42, %s4516_s10  ;;  %2123 = vmatpush1.bf16.msra.mxu0 %v2104_v12  ;;  %v364_v11 = vpop.f32.mrb[2].mxu0  ;;  %v401_v12 = vpop.f32.mrb[0].mxu1 }
 0x1b8   : >> { %2875 = vrot.lane.b32.xlu1 %v5356_v60, %s4516_s10  ;;  %4219 = vmatpush3.bf16.msra.mxu1 %v2106_v14  ;;  %v365_v14 = vpop.f32.mrb[3].mxu0 }
 0x1b9   : >> { %v2091_v15 = vpop.permute.xlu0 %2090  ;;  %4220 = vmatprep.subr.bf16.mxu1 %v4512_v10 }
 0x1ba   : >> { %v2093_v39 = vpop.permute.xlu1 %2092 }
 0x1bb   : >> { %2871 = vrot.lane.b32.xlu0 %v5366_v27, %s4516_s10  ;;  %v2108_v19 = vsel %vm914_vm6, %v2091_v15, %v2093_v39 }
 0x1bc   : >> { %2877 = vrot.lane.b32.xlu1 %v5371_v44, %s4516_s10  ;;  %2124 = vmatprep.subr.bf16.mxu0 %v2108_v19  ;;  %v453_v19 = vpop.f32.mrb[4].mxu0 }
 0x1bd   : >> { %v2089_v40 = vpop.permute.xlu0 %2088 }
 0x1be   : >> { %v2107_v20 = vsel %vm914_vm6, %v2089_v40, %v2091_v15  ;;  %v2095_v23 = vpop.permute.xlu1 %2094  ;;  %v4086_v15 = vpop.f32.mrb[1].mxu1 }
 0x1bf   : >> { %v2109_v16 = vsel %vm914_vm6, %v2093_v39, %v2095_v23  ;;  %2881 = vrot.lane.b32.xlu0 %v5378_v51, %s4516_s10  ;;  %2125 = vmatpush1.bf16.msra.mxu0 %v2107_v20  ;;  %v404_v39 = vpop.f32.mrb[2].mxu1  ;;  %v454_v20 = vadd.f32 %v453_v19, %v360_v32 }
 0x1c0   : >> { %2883 = vrot.lane.b32.xlu1 %v5383_v52, %s4516_s10  ;;  %4221 = vmatpush3.bf16.msra.mxu1 %v2109_v16  ;;  %v4087_v23 = vpop.f32.mrb[3].mxu1 }
 0x1c1   : >> { %v2099_v45 = vpop.permute.xlu0 %2098  ;;  %4222 = vmatprep.subr.bf16.mxu1 %v4512_v10 }
 0x1c2   : >> { %v2101_v49 = vpop.permute.xlu1 %2100 }
 0x1c3   : >> { %2879 = vrot.lane.b32.xlu0 %v5390_v59, %s4516_s10  ;;  %v2111_v17 = vsel %vm914_vm6, %v2099_v45, %v2101_v49 }
 0x1c4   : >> { %2885 = vrot.lane.b32.xlu1 %v5395_v62, %s4516_s10  ;;  %2126 = vmatprep.subr.bf16.mxu0 %v2111_v17 }
 0x1c5   : >> { %v2097_v18 = vpop.permute.xlu0 %2096 }
 0x1c6   : >> { %v2110_v50 = vsel %vm914_vm6, %v2097_v18, %v2099_v45  ;;  %v2103_v55 = vpop.permute.xlu1 %2102  ;;  %v455_v45 = vpop.f32.mrb[5].mxu0 }
 0x1c7   : >> { %v2112_v56 = vsel %vm914_vm6, %v2101_v49, %v2103_v55  ;;  %2889 = vrot.lane.b32.xlu0 %v5402_v28, %s4516_s10  ;;  %2127 = vmatpush1.bf16.msra.mxu0 %v2110_v50  ;;  %v456_v17 = vadd.f32 %v455_v45, %v362_v33  ;;  %v457_v18 = vpop.f32.mrb[6].mxu0  ;;  %v494_v50 = vpop.f32.mrb[4].mxu1 }
 0x1c8   : >> { %2891 = vrot.lane.b32.xlu1 %v5407_v29, %s4516_s10  ;;  %4223 = vmatpush3.bf16.msra.mxu1 %v2112_v56  ;;  %v495_v55 = vadd.f32 %v494_v50, %v401_v12  ;;  %v458_v56 = vpop.f32.mrb[7].mxu0 }
 0x1c9   : >> { %v2209_v41 = vpop.permute.xlu0 %2208  ;;  %4228 = vmatprep.subr.bf16.mxu1 %v4512_v10 }
 0x1ca   : >> { %v2211_v61 = vpop.permute.xlu1 %2210  ;;  %3927 = vmatmul.mubr.msk.bf16.vlgmr.msra.gmra.mrb[56].mxu0 %vm322_vm2, %v4604_v5 }
 0x1cb   : >> { %2887 = vrot.lane.b32.xlu0 %v5414_v34, %s4516_s10  ;;  %v2231_v26 = vsel %vm1044_vm7, %v2209_v41, %v2211_v61  ;;  %4225 = vmatmul.mubr.msk.bf16.vlgmr.msra.gmra.mrb[56].mxu1 %vm322_vm2, %v4604_v5 }
 0x1cc   : >> { %2893 = vrot.lane.b32.xlu1 %v5419_v35, %s4516_s10  ;;  %2248 = vmatprep.subr.bf16.mxu0 %v2231_v26  ;;  %s3763_s10 = scalar_lea.vmem %s4634_s30, %s3966_s9 }
 0x1cd   : >> { %v2207_v22 = vpop.permute.xlu0 %2206  ;;  %2280 = vmatprep.mubr.bf16.mxu0 %v4514_v21  ;;  %4234 = vmatprep.mubr.msk.bf16.mxu1 %vm4515_vm0, %v4512_v10 }
 0x1ce   : >> { %v2230_v43 = vsel %vm1044_vm7, %v2207_v22, %v2209_v41  ;;  %v2213_v46 = vpop.permute.xlu1 %2212  ;;  %v4096_v41 = vpop.f32.mrb[5].mxu1 }
 0x1cf   : >> { %v2232_v47 = vsel %vm1044_vm7, %v2211_v61, %v2213_v46  ;;  %2999 = vrot.lane.b32.xlu0 %v5349_v42, %s4517_s11  ;;  %2249 = vmatpush1.bf16.msra.mxu0 %v2230_v43  ;;  %v497_v26 = vpop.f32.mrb[6].mxu1  ;;  %v580_v46 = vpop.f32.mrb[8].mxu0 }
 0x1d0   : >> { %3001 = vrot.lane.b32.xlu1 %v5356_v60, %s4517_s11  ;;  %4229 = vmatpush3.bf16.msra.mxu1 %v2232_v47 }
 0x1d1   : >> { %v2217_v48 = vpop.permute.xlu0 %2216  ;;  %4230 = vmatprep.subr.bf16.mxu1 %v4512_v10 }
 0x1d2   : >> { %v2219_v53 = vpop.permute.xlu1 %2218 }
 0x1d3   : >> { %2997 = vrot.lane.b32.xlu0 %v5366_v27, %s4517_s11  ;;  %v2234_v54 = vsel %vm1044_vm7, %v2217_v48, %v2219_v53 }
 0x1d4   : >> { %3003 = vrot.lane.b32.xlu1 %v5371_v44, %s4517_s11  ;;  %2250 = vmatprep.subr.bf16.mxu0 %v2234_v54  ;;  %v582_v54 = vpop.f32.mrb[9].mxu0 }
 0x1d5   : >> { %v2215_v57 = vpop.permute.xlu0 %2214 }
 0x1d6   : >> { %v2233_v58 = vsel %vm1044_vm7, %v2215_v57, %v2217_v48  ;;  %v2221_v63 = vpop.permute.xlu1 %2220  ;;  %v627_v48 = vadd.f32 %v580_v46, %v454_v20  ;;  %v628_v57 = vadd.f32 %v582_v54, %v456_v17 }
 0x1d7   : >> { %v2235_v24 = vsel %vm1044_vm7, %v2219_v53, %v2221_v63  ;;  %3007 = vrot.lane.b32.xlu0 %v5378_v51, %s4517_s11  ;;  %2251 = vmatpush1.bf16.msra.mxu0 %v2233_v58  ;;  %v4097_v53 = vpop.f32.mrb[7].mxu1  ;;  %v584_v58 = vpop.f32.mrb[10].mxu0 }
 0x1d8   : >> { %3009 = vrot.lane.b32.xlu1 %v5383_v52, %s4517_s11  ;;  %4231 = vmatpush3.bf16.msra.mxu1 %v2235_v24  ;;  %v621_v63 = vpop.f32.mrb[8].mxu1 }
 0x1d9   : >> { %v2225_v25 = vpop.permute.xlu0 %2224  ;;  %4232 = vmatprep.subr.bf16.mxu1 %v4512_v10  ;;  %v4106_v32 = vpop.f32.mrb[9].mxu1 }
 0x1da   : >> { %v2227_v30 = vpop.permute.xlu1 %2226 }
 0x1db   : >> { %3005 = vrot.lane.b32.xlu0 %v5390_v59, %s4517_s11  ;;  %v2237_v31 = vsel %vm1044_vm7, %v2225_v25, %v2227_v30 }
 0x1dc   : >> { %3011 = vrot.lane.b32.xlu1 %v5395_v62, %s4517_s11  ;;  %2252 = vmatprep.subr.bf16.mxu0 %v2237_v31 }
 0x1dd   : >> { %v2223_v36 = vpop.permute.xlu0 %2222 }
 0x1de   : >> { %v2236_v37 = vsel %vm1044_vm7, %v2223_v36, %v2225_v25  ;;  %v2229_v13 = vpop.permute.xlu1 %2228  ;;  %v629_v25 = vadd.f32 %v621_v63, %v495_v55  ;;  %v624_v36 = vpop.f32.mrb[10].mxu1 }
 0x1df   : >> { %v2238_v38 = vsel %vm1044_vm7, %v2227_v30, %v2229_v13  ;;  %3015 = vrot.lane.b32.xlu0 %v5402_v28, %s4517_s11  ;;  %2253 = vmatpush1.bf16.msra.mxu0 %v2236_v37  ;;  %v585_v30 = vpop.f32.mrb[11].mxu0  ;;  %v4107_v13 = vpop.f32.mrb[11].mxu1 }
 0x1e0   : >> { %3017 = vrot.lane.b32.xlu1 %v5407_v29, %s4517_s11  ;;  %4233 = vmatpush3.bf16.msra.mxu1 %v2238_v38  ;;  %v710_v11 = vpop.f32.mrb[12].mxu0 }
 0x1e1   : >> { %v2335_v40 = vpop.permute.xlu0 %2334  ;;  %4238 = vmatprep.subr.bf16.mxu1 %v4512_v10  ;;  %v757_v37 = vadd.f32 %v710_v11, %v627_v48  ;;  %v712_v12 = vpop.f32.mrb[13].mxu0 }
 0x1e2   : >> { %v2337_v16 = vpop.permute.xlu1 %2336  ;;  %3929 = vmatmul.mubr.msk.bf16.vlgmr.msra.gmra.mrb[60].mxu0 %vm322_vm2, %v4609_v6  ;;  %v758_v14 = vadd.f32 %v712_v12, %v628_v57  ;;  %v714_v15 = vpop.f32.mrb[14].mxu0 }
 0x1e3   : >> { %3013 = vrot.lane.b32.xlu0 %v5414_v34, %s4517_s11  ;;  %v2357_v49 = vsel %vm1174_vm8, %v2335_v40, %v2337_v16  ;;  %4235 = vmatmul.mubr.msk.bf16.vlgmr.msra.gmra.mrb[60].mxu1 %vm322_vm2, %v4609_v6 }
 0x1e4   : >> { %3019 = vrot.lane.b32.xlu1 %v5419_v35, %s4517_s11  ;;  %2374 = vmatprep.subr.bf16.mxu0 %v2357_v49 }
 0x1e5   : >> { %v2333_v61 = vpop.permute.xlu0 %2332  ;;  %2406 = vmatprep.mubr.bf16.mxu0 %v4514_v21  ;;  %4244 = vmatprep.mubr.msk.bf16.mxu1 %vm4515_vm0, %v4512_v10 }
 0x1e6   : >> { %v2356_v22 = vsel %vm1174_vm8, %v2333_v61, %v2335_v40  ;;  %v2339_v43 = vpop.permute.xlu1 %2338  ;;  %v751_v40 = vpop.f32.mrb[12].mxu1 }
 0x1e7   : >> { %v2358_v47 = vsel %vm1174_vm8, %v2337_v16, %v2339_v43  ;;  %3125 = vrot.lane.b32.xlu0 %v5349_v42, %s4518_s20  ;;  %2375 = vmatpush1.bf16.msra.mxu0 %v2356_v22  ;;  %v759_v23 = vadd.f32 %v751_v40, %v629_v25  ;;  %v715_v16 = vpop.f32.mrb[15].mxu0  ;;  %v4116_v45 = vpop.f32.mrb[13].mxu1 }
 0x1e8   : >> { %3127 = vrot.lane.b32.xlu1 %v5356_v60, %s4518_s20  ;;  %4239 = vmatpush3.bf16.msra.mxu1 %v2358_v47  ;;  %v754_v49 = vpop.f32.mrb[14].mxu1  ;;  %v840_v17 = vpop.f32.mrb[16].mxu0 }
 0x1e9   : >> { %v2343_v24 = vpop.permute.xlu0 %2342  ;;  %4240 = vmatprep.subr.bf16.mxu1 %v4512_v10  ;;  %v887_v50 = vadd.f32 %v840_v17, %v757_v37  ;;  %v4117_v55 = vpop.f32.mrb[15].mxu1 }
 0x1ea   : >> { %v2345_v31 = vpop.permute.xlu1 %2344  ;;  %v842_v41 = vpop.f32.mrb[17].mxu0 }
 0x1eb   : >> { %3123 = vrot.lane.b32.xlu0 %v5366_v27, %s4518_s20  ;;  %v2360_v33 = vsel %vm1174_vm8, %v2343_v24, %v2345_v31  ;;  %v888_v26 = vadd.f32 %v842_v41, %v758_v14  ;;  %v844_v22 = vpop.f32.mrb[18].mxu0  ;;  %v881_v43 = vpop.f32.mrb[16].mxu1 }
 0x1ec   : >> { %3129 = vrot.lane.b32.xlu1 %v5371_v44, %s4518_s20  ;;  %2376 = vmatprep.subr.bf16.mxu0 %v2360_v33  ;;  %v889_v46 = vadd.f32 %v881_v43, %v759_v23  ;;  %v845_v47 = vpop.f32.mrb[19].mxu0  ;;  %v4126_v48 = vpop.f32.mrb[17].mxu1 }
 0x1ed   : >> { %v2341_v38 = vpop.permute.xlu0 %2340  ;;  %v884_v54 = vpop.f32.mrb[18].mxu1 }
 0x1ee   : >> { %v2359_v39 = vsel %vm1174_vm8, %v2341_v38, %v2343_v24  ;;  %v2347_v19 = vpop.permute.xlu1 %2346  ;;  %v970_v63 = vpop.f32.mrb[20].mxu0 }
 0x1ef   : >> { %v2361_v20 = vsel %vm1174_vm8, %v2345_v31, %v2347_v19  ;;  %3133 = vrot.lane.b32.xlu0 %v5378_v51, %s4518_s20  ;;  %2377 = vmatpush1.bf16.msra.mxu0 %v2359_v39  ;;  %v1017_v25 = vadd.f32 %v970_v63, %v887_v50  ;;  %v4127_v30 = vpop.f32.mrb[19].mxu1  ;;  %v972_v31 = vpop.f32.mrb[21].mxu0 }
 0x1f0   : >> { %3135 = vrot.lane.b32.xlu1 %v5383_v52, %s4518_s20  ;;  %4241 = vmatpush3.bf16.msra.mxu1 %v2361_v20  ;;  %v1018_v32 = vadd.f32 %v972_v31, %v888_v26  ;;  %v974_v33 = vpop.f32.mrb[22].mxu0  ;;  %v1011_v36 = vpop.f32.mrb[20].mxu1 }
 0x1f1   : >> { %v2351_v18 = vpop.permute.xlu0 %2350  ;;  %4242 = vmatprep.subr.bf16.mxu1 %v4512_v10  ;;  %v1019_v37 = vadd.f32 %v1011_v36, %v889_v46  ;;  %v975_v13 = vpop.f32.mrb[23].mxu0 }
 0x1f2   : >> { %v2353_v56 = vpop.permute.xlu1 %2352  ;;  %v4136_v38 = vpop.f32.mrb[21].mxu1 }
 0x1f3   : >> { %3131 = vrot.lane.b32.xlu0 %v5390_v59, %s4518_s20  ;;  %v2363_v61 = vsel %vm1174_vm8, %v2351_v18, %v2353_v56  ;;  %v1014_v15 = vpop.f32.mrb[22].mxu1 }
 0x1f4   : >> { %3137 = vrot.lane.b32.xlu1 %v5395_v62, %s4518_s20  ;;  %2378 = vmatprep.subr.bf16.mxu0 %v2363_v61  ;;  %v4137_v40 = vpop.f32.mrb[23].mxu1 }
 0x1f5   : >> { %v2349_v53 = vpop.permute.xlu0 %2348  ;;  %v1100_v39 = vpop.f32.mrb[24].mxu0 }
 0x1f6   : >> { %v2362_v57 = vsel %vm1174_vm8, %v2349_v53, %v2351_v18  ;;  %v2355_v58 = vpop.permute.xlu1 %2354  ;;  %v1147_v19 = vadd.f32 %v1100_v39, %v1017_v25  ;;  %v1102_v20 = vpop.f32.mrb[25].mxu0 }
 0x1f7   : >> { %v2364_v24 = vsel %vm1174_vm8, %v2353_v56, %v2355_v58  ;;  %3141 = vrot.lane.b32.xlu0 %v5402_v28, %s4518_s20  ;;  %2379 = vmatpush1.bf16.msra.mxu0 %v2362_v57  ;;  %v1148_v16 = vadd.f32 %v1102_v20, %v1018_v32  ;;  %v1104_v45 = vpop.f32.mrb[26].mxu0  ;;  %v1141_v18 = vpop.f32.mrb[24].mxu1 }
 0x1f8   : >> { %3143 = vrot.lane.b32.xlu1 %v5407_v29, %s4518_s20  ;;  %4243 = vmatpush3.bf16.msra.mxu1 %v2364_v24  ;;  %v1149_v55 = vadd.f32 %v1141_v18, %v1019_v37  ;;  %v1105_v56 = vpop.f32.mrb[27].mxu0  ;;  %v4146_v41 = vpop.f32.mrb[25].mxu1 }
 0x1f9   : >> { %v2461_v11 = vpop.permute.xlu0 %2460  ;;  %4248 = vmatprep.subr.bf16.mxu1 %v4512_v10  ;;  %v1144_v61 = vpop.f32.mrb[26].mxu1 }
 0x1fa   : >> { %v2463_v12 = vpop.permute.xlu1 %2462  ;;  %3931 = vmatmul.mubr.msk.bf16.vlgmr.msra.gmra.mrb[64].mxu0 %vm322_vm2, %v4619_v8  ;;  %v4147_v22 = vpop.f32.mrb[27].mxu1 }
 0x1fb   : >> { %3139 = vrot.lane.b32.xlu0 %v5414_v34, %s4518_s20  ;;  %v2483_v14 = vsel %vm1304_vm9, %v2461_v11, %v2463_v12  ;;  %4245 = vmatmul.mubr.msk.bf16.vlgmr.msra.gmra.mrb[64].mxu1 %vm322_vm2, %v4619_v8 }
 0x1fc   : >> { %3145 = vrot.lane.b32.xlu1 %v5419_v35, %s4518_s20  ;;  %2500 = vmatprep.subr.bf16.mxu0 %v2483_v14 }
 0x1fd   : >> { %v2459_v23 = vpop.permute.xlu0 %2458  ;;  %2532 = vmatprep.mubr.bf16.mxu0 %v4514_v21  ;;  %4254 = vmatprep.mubr.msk.bf16.mxu1 %vm4515_vm0, %v4512_v10 }
 0x1fe   : >> { %v2482_v49 = vsel %vm1304_vm9, %v2459_v23, %v2461_v11  ;;  %v2465_v17 = vpop.permute.xlu1 %2464 }
 0x1ff   : >> { %v2484_v50 = vsel %vm1304_vm9, %v2463_v12, %v2465_v17  ;;  %3251 = vrot.lane.b32.xlu0 %v5349_v42, %s4519_s21  ;;  %2501 = vmatpush1.bf16.msra.mxu0 %v2482_v49 }
 0x200   : >> { %3253 = vrot.lane.b32.xlu1 %v5356_v60, %s4519_s21  ;;  %4249 = vmatpush3.bf16.msra.mxu1 %v2484_v50 }
 0x201   : >> { %v2469_v26 = vpop.permute.xlu0 %2468  ;;  %4250 = vmatprep.subr.bf16.mxu1 %v4512_v10 }
 0x202   : >> { %v2471_v43 = vpop.permute.xlu1 %2470 }
 0x203   : >> { %3249 = vrot.lane.b32.xlu0 %v5366_v27, %s4519_s21  ;;  %v2486_v46 = vsel %vm1304_vm9, %v2469_v26, %v2471_v43 }
 0x204   : >> { %3255 = vrot.lane.b32.xlu1 %v5371_v44, %s4519_s21  ;;  %2502 = vmatprep.subr.bf16.mxu0 %v2486_v46 }
 0x205   : >> { %v2467_v47 = vpop.permute.xlu0 %2466 }
 0x206   : >> { %v2485_v48 = vsel %vm1304_vm9, %v2467_v47, %v2469_v26  ;;  %v2473_v53 = vpop.permute.xlu1 %2472 }
 0x207   : >> { %v2487_v54 = vsel %vm1304_vm9, %v2471_v43, %v2473_v53  ;;  %3259 = vrot.lane.b32.xlu0 %v5378_v51, %s4519_s21  ;;  %2503 = vmatpush1.bf16.msra.mxu0 %v2485_v48 }
 0x208   : >> { %3261 = vrot.lane.b32.xlu1 %v5383_v52, %s4519_s21  ;;  %4251 = vmatpush3.bf16.msra.mxu1 %v2487_v54 }
 0x209   : >> { %v2477_v57 = vpop.permute.xlu0 %2476  ;;  %4252 = vmatprep.subr.bf16.mxu1 %v4512_v10 }
 0x20a   : >> { %v2479_v58 = vpop.permute.xlu1 %2478 }
 0x20b   : >> { %3257 = vrot.lane.b32.xlu0 %v5390_v59, %s4519_s21  ;;  %v2489_v63 = vsel %vm1304_vm9, %v2477_v57, %v2479_v58 }
 0x20c   : >> { %3263 = vrot.lane.b32.xlu1 %v5395_v62, %s4519_s21  ;;  %2504 = vmatprep.subr.bf16.mxu0 %v2489_v63 }
 0x20d   : >> { %v2475_v24 = vpop.permute.xlu0 %2474  ;;  %v1230_v25 = vpop.f32.mrb[28].mxu0 }
 0x20e   : >> { %v2488_v30 = vsel %vm1304_vm9, %v2475_v24, %v2477_v57  ;;  %v2481_v31 = vpop.permute.xlu1 %2480  ;;  %v1277_v32 = vadd.f32 %v1230_v25, %v1147_v19  ;;  %v1232_v33 = vpop.f32.mrb[29].mxu0 }
 0x20f   : >> { %v2490_v36 = vsel %vm1304_vm9, %v2479_v58, %v2481_v31  ;;  %3267 = vrot.lane.b32.xlu0 %v5402_v28, %s4519_s21  ;;  %2505 = vmatpush1.bf16.msra.mxu0 %v2488_v30  ;;  %v1278_v11 = vadd.f32 %v1232_v33, %v1148_v16  ;;  %v1234_v37 = vpop.f32.mrb[30].mxu0  ;;  %v1271_v13 = vpop.f32.mrb[28].mxu1 }
 0x210   : >> { %3269 = vrot.lane.b32.xlu1 %v5407_v29, %s4519_s21  ;;  %4253 = vmatpush3.bf16.msra.mxu1 %v2490_v36  ;;  %v1279_v12 = vadd.f32 %v1271_v13, %v1149_v55  ;;  %v1235_v38 = vpop.f32.mrb[31].mxu0  ;;  %v4156_v14 = vpop.f32.mrb[29].mxu1 }
 0x211   : >> { %v2661_v15 = vpop.permute.xlu0 %2660  ;;  %4258 = vmatprep.subr.bf16.mxu1 %v4512_v10  ;;  %v1274_v39 = vpop.f32.mrb[30].mxu1 }
 0x212   : >> { %v2663_v19 = vpop.permute.xlu1 %2662  ;;  %3933 = vmatmul.mubr.msk.bf16.vlgmr.msra.gmra.mrb[68].mxu0 %vm322_vm2, %v4624_v9  ;;  %v4157_v40 = vpop.f32.mrb[31].mxu1 }
 0x213   : >> { %3265 = vrot.lane.b32.xlu0 %v5414_v34, %s4519_s21  ;;  %v2683_v20 = vsel %vm303_vm1, %v2661_v15, %v2663_v19  ;;  %4255 = vmatmul.mubr.msk.bf16.vlgmr.msra.gmra.mrb[68].mxu1 %vm322_vm2, %v4624_v9 }
 0x214   : >> { %3271 = vrot.lane.b32.xlu1 %v5419_v35, %s4519_s21  ;;  %2700 = vmatprep.subr.bf16.mxu0 %v2683_v20 }
 0x215   : >> { %v2659_v23 = vpop.permute.xlu0 %2658  ;;  %2732 = vmatprep.mubr.bf16.mxu0 %v4514_v21  ;;  %4264 = vmatprep.mubr.msk.bf16.mxu1 %vm4515_vm0, %v4512_v10 }
 0x216   : >> { %v2682_v16 = vsel %vm303_vm1, %v2659_v23, %v2661_v15  ;;  %v2665_v45 = vpop.permute.xlu1 %2664 }
 0x217   : >> { %v2684_v49 = vsel %vm303_vm1, %v2663_v19, %v2665_v45  ;;  %3377 = vrot.lane.b32.xlu0 %v5349_v42, %s4520_s22  ;;  %2701 = vmatpush1.bf16.msra.mxu0 %v2682_v16 }
 0x218   : >> { %3379 = vrot.lane.b32.xlu1 %v5356_v60, %s4520_s22  ;;  %4259 = vmatpush3.bf16.msra.mxu1 %v2684_v49 }
 0x219   : >> { %v2669_v17 = vpop.permute.xlu0 %2668  ;;  %4260 = vmatprep.subr.bf16.mxu1 %v4512_v10 }
 0x21a   : >> { %v2671_v18 = vpop.permute.xlu1 %2670 }
 0x21b   : >> { %3375 = vrot.lane.b32.xlu0 %v5366_v27, %s4520_s22  ;;  %v2686_v50 = vsel %vm303_vm1, %v2669_v17, %v2671_v18 }
 0x21c   : >> { %3381 = vrot.lane.b32.xlu1 %v5371_v44, %s4520_s22  ;;  %2702 = vmatprep.subr.bf16.mxu0 %v2686_v50 }
 0x21d   : >> { %v2667_v55 = vpop.permute.xlu0 %2666 }
 0x21e   : >> { %v2685_v56 = vsel %vm303_vm1, %v2667_v55, %v2669_v17  ;;  %v2673_v41 = vpop.permute.xlu1 %2672 }
 0x21f   : >> { %v2687_v61 = vsel %vm303_vm1, %v2671_v18, %v2673_v41  ;;  %3385 = vrot.lane.b32.xlu0 %v5378_v51, %s4520_s22  ;;  %2703 = vmatpush1.bf16.msra.mxu0 %v2685_v56 }
 0x220   : >> { %3387 = vrot.lane.b32.xlu1 %v5383_v52, %s4520_s22  ;;  %4261 = vmatpush3.bf16.msra.mxu1 %v2687_v61 }
 0x221   : >> { %v2677_v26 = vpop.permute.xlu0 %2676  ;;  %4262 = vmatprep.subr.bf16.mxu1 %v4512_v10 }
 0x222   : >> { %v2679_v22 = vpop.permute.xlu1 %2678 }
 0x223   : >> { %3383 = vrot.lane.b32.xlu0 %v5390_v59, %s4520_s22  ;;  %v2689_v43 = vsel %vm303_vm1, %v2677_v26, %v2679_v22 }
 0x224   : >> { %3389 = vrot.lane.b32.xlu1 %v5395_v62, %s4520_s22  ;;  %2704 = vmatprep.subr.bf16.mxu0 %v2689_v43 }
 0x225   : >> { %v2675_v46 = vpop.permute.xlu0 %2674  ;;  %v1360_v47 = vpop.f32.mrb[32].mxu0 }
 0x226   : >> { %v2688_v48 = vsel %vm303_vm1, %v2675_v46, %v2677_v26  ;;  %v2681_v53 = vpop.permute.xlu1 %2680  ;;  %v5631_v54 = vadd.f32 %v1360_v47, %v1277_v32  ;;  %v1362_v57 = vpop.f32.mrb[33].mxu0 }
 0x227   : >> { %v2690_v58 = vsel %vm303_vm1, %v2679_v22, %v2681_v53  ;;  %3393 = vrot.lane.b32.xlu0 %v5402_v28, %s4520_s22  ;;  %2705 = vmatpush1.bf16.msra.mxu0 %v2688_v48  ;;  %v5636_v63 = vadd.f32 %v1362_v57, %v1278_v11  ;;  %v1401_v24 = vpop.f32.mrb[32].mxu1  ;;  %v1364_v25 = vpop.f32.mrb[34].mxu0 }
 0x228   : >> { %3395 = vrot.lane.b32.xlu1 %v5407_v29, %s4520_s22  ;;  %4263 = vmatpush3.bf16.msra.mxu1 %v2690_v58  ;;  %v5640_v30 = vadd.f32 %v1401_v24, %v1279_v12  ;;  %v1365_v31 = vpop.f32.mrb[35].mxu0  ;;  %v4166_v32 = vpop.f32.mrb[33].mxu1 }
 0x229   : >> { %v2874_v33 = vpop.permute.xlu0 %2873  ;;  %2790 = vmatprep.subr.bf16.mxu0 %v5349_v42  ;;  %4268 = vmatprep.subr.bf16.mxu1 %v4512_v10  ;;  %v1404_v36 = vpop.f32.mrb[34].mxu1 }
 0x22a   : >> { %v2876_v37 = vpop.permute.xlu1 %2875  ;;  %3948 = vmatmul.mubr.msk.bf16.vlgmr.msra.gmra.mrb[72].mxu0 %vm322_vm2, %v4584_v1  ;;  %v4167_v11 = vpop.f32.mrb[35].mxu1 }
 0x22b   : >> { %3391 = vrot.lane.b32.xlu0 %v5414_v34, %s4520_s22  ;;  %4265 = vmatmul.mubr.msk.bf16.vlgmr.msra.gmra.mrb[72].mxu1 %vm322_vm2, %v4584_v1  ;;  %v2896_v15 = vsel %vm524_vm3, %v2874_v33, %v2876_v37 }
 0x22c   : >> { %3397 = vrot.lane.b32.xlu1 %v5419_v35, %s4520_s22  ;;  %2791 = vmatpush1.bf16.msra.mxu0 %v5366_v27 }
 0x22d   : >> { %4269 = vmatpush3.bf16.msra.mxu1 %v5356_v60  ;;  %v2872_v13 = vpop.permute.xlu0 %2871  ;;  %2792 = vmatprep.subr.bf16.mxu0 %v5378_v51 }
 0x22e   : >> { %v2878_v12 = vpop.permute.xlu1 %2877  ;;  %4270 = vmatprep.subr.bf16.mxu1 %v4512_v10  ;;  %2822 = vmatprep.mubr.bf16.mxu0 %v4514_v21  ;;  %v2895_v40 = vsel %vm524_vm3, %v2872_v13, %v2874_v33 }
 0x22f   : >> { %3503 = vrot.lane.b32.xlu0 %v5349_v42, %s4521_s23  ;;  %4274 = vmatprep.mubr.msk.bf16.mxu1 %vm4515_vm0, %v4512_v10  ;;  %v2897_v20 = vsel %vm524_vm3, %v2876_v37, %v2878_v12 }
 0x230   : >> { %3505 = vrot.lane.b32.xlu1 %v5356_v60, %s4521_s23  ;;  %2793 = vmatpush1.bf16.msra.mxu0 %v5390_v59 }
 0x231   : >> { %4271 = vmatpush3.bf16.msra.mxu1 %v5383_v52  ;;  %v2882_v38 = vpop.permute.xlu0 %2881  ;;  %2794 = vmatprep.subr.bf16.mxu0 %v5402_v28 }
 0x232   : >> { %v2884_v14 = vpop.permute.xlu1 %2883  ;;  %4272 = vmatprep.subr.bf16.mxu1 %v4512_v10 }
 0x233   : >> { %3501 = vrot.lane.b32.xlu0 %v5366_v27, %s4521_s23  ;;  %v2899_v23 = vsel %vm524_vm3, %v2882_v38, %v2884_v14 }
 0x234   : >> { %3507 = vrot.lane.b32.xlu1 %v5371_v44, %s4521_s23  ;;  %2795 = vmatpush1.bf16.msra.mxu0 %v5414_v34 }
 0x235   : >> { %4273 = vmatpush3.bf16.msra.mxu1 %v5407_v29  ;;  %2913 = vmatprep.subr.bf16.mxu0 %v2896_v15  ;;  %v2880_v39 = vpop.permute.xlu0 %2879 }
 0x236   : >> { %v2886_v19 = vpop.permute.xlu1 %2885  ;;  %4278 = vmatprep.subr.bf16.mxu1 %v4512_v10  ;;  %v2898_v17 = vsel %vm524_vm3, %v2880_v39, %v2882_v38 }
 0x237   : >> { %3511 = vrot.lane.b32.xlu0 %v5378_v51, %s4521_s23  ;;  %3950 = vmatmul.mubr.msk.bf16.vlgmr.msra.gmra.mrb[76].mxu0 %vm322_vm2, %v4579_v0  ;;  %v2900_v18 = vsel %vm524_vm3, %v2884_v14, %v2886_v19 }
 0x238   : >> { %3513 = vrot.lane.b32.xlu1 %v5383_v52, %s4521_s23  ;;  %4275 = vmatmul.mubr.msk.bf16.vlgmr.msra.gmra.mrb[76].mxu1 %vm322_vm2, %v4579_v0 }
 0x239   : >> { %2914 = vmatpush1.bf16.msra.mxu0 %v2895_v40  ;;  %4279 = vmatpush3.bf16.msra.mxu1 %v2897_v20  ;;  %v2890_v16 = vpop.permute.xlu0 %2889 }
 0x23a   : >> { %2915 = vmatprep.subr.bf16.mxu0 %v2899_v23  ;;  %v2892_v45 = vpop.permute.xlu1 %2891  ;;  %4280 = vmatprep.subr.bf16.mxu1 %v4512_v10 }
 0x23b   : >> { %3509 = vrot.lane.b32.xlu0 %v5390_v59, %s4521_s23  ;;  %v2902_v49 = vsel %vm524_vm3, %v2890_v16, %v2892_v45  ;;  %2945 = vmatprep.mubr.bf16.mxu0 %v4514_v21 }
 0x23c   : >> { %3515 = vrot.lane.b32.xlu1 %v5395_v62, %s4521_s23  ;;  %4284 = vmatprep.mubr.msk.bf16.mxu1 %vm4515_vm0, %v4512_v10 }
 0x23d   : >> { %2916 = vmatpush1.bf16.msra.mxu0 %v2898_v17  ;;  %4281 = vmatpush3.bf16.msra.mxu1 %v2900_v18  ;;  %v2888_v50 = vpop.permute.xlu0 %2887  ;;  %v1565_v53 = vpop.f32.mrb[36].mxu0 }
 0x23e   : >> { %2917 = vmatprep.subr.bf16.mxu0 %v2902_v49  ;;  %v2901_v55 = vsel %vm524_vm3, %v2888_v50, %v2890_v16  ;;  %v2894_v56 = vpop.permute.xlu1 %2893  ;;  %4282 = vmatprep.subr.bf16.mxu1 %v4512_v10  ;;  %v1567_v57 = vpop.f32.mrb[37].mxu0 }
 0x23f   : >> { %v2903_v41 = vsel %vm524_vm3, %v2892_v45, %v2894_v56  ;;  %3519 = vrot.lane.b32.xlu0 %v5402_v28, %s4521_s23  ;;  %v1569_v24 = vpop.f32.mrb[38].mxu0  ;;  %v1606_v31 = vpop.f32.mrb[36].mxu1 }
 0x240   : >> { %3521 = vrot.lane.b32.xlu1 %v5407_v29, %s4521_s23  ;;  %v1570_v33 = vpop.f32.mrb[39].mxu0 }
 0x241   : >> { %2918 = vmatpush1.bf16.msra.mxu0 %v2901_v55  ;;  %4283 = vmatpush3.bf16.msra.mxu1 %v2903_v41  ;;  %v3000_v61 = vpop.permute.xlu0 %2999 }
 0x242   : >> { %v3002_v26 = vpop.permute.xlu1 %3001  ;;  %4288 = vmatprep.subr.bf16.mxu1 %v4512_v10 }
 0x243   : >> { %3517 = vrot.lane.b32.xlu0 %v5414_v34, %s4521_s23  ;;  %v3022_v22 = vsel %vm654_vm4, %v3000_v61, %v3002_v26 }
 0x244   : >> { %3523 = vrot.lane.b32.xlu1 %v5419_v35, %s4521_s23  ;;  %3039 = vmatprep.subr.bf16.mxu0 %v3022_v22 }
 0x245   : >> { %v2998_v43 = vpop.permute.xlu0 %2997  ;;  %3952 = vmatmul.mubr.msk.bf16.vlgmr.msra.gmra.mrb[80].mxu0 %vm322_vm2, %v4589_v2  ;;  %4285 = vmatmul.mubr.msk.bf16.vlgmr.msra.gmra.mrb[80].mxu1 %vm322_vm2, %v4589_v2 }
 0x246   : >> { %v3021_v46 = vsel %vm654_vm4, %v2998_v43, %v3000_v61  ;;  %v3004_v47 = vpop.permute.xlu1 %3003  ;;  %3071 = vmatprep.mubr.bf16.mxu0 %v4514_v21  ;;  %4294 = vmatprep.mubr.msk.bf16.mxu1 %vm4515_vm0, %v4512_v10 }
 0x247   : >> { %v3023_v48 = vsel %vm654_vm4, %v3002_v26, %v3004_v47  ;;  %3629 = vrot.lane.b32.xlu0 %v5349_v42, %s4522_s25  ;;  %3040 = vmatpush1.bf16.msra.mxu0 %v3021_v46  ;;  %v4176_v42 = vpop.f32.mrb[37].mxu1 }
 0x248   : >> { %3631 = vrot.lane.b32.xlu1 %v5356_v60, %s4522_s25  ;;  %4289 = vmatpush3.bf16.msra.mxu1 %v3023_v48  ;;  %v1609_v60 = vpop.f32.mrb[38].mxu1 }
 0x249   : >> { %v3008_v58 = vpop.permute.xlu0 %3007  ;;  %4290 = vmatprep.subr.bf16.mxu1 %v4512_v10  ;;  %v4177_v13 = vpop.f32.mrb[39].mxu1 }
 0x24a   : >> { %v3010_v25 = vpop.permute.xlu1 %3009  ;;  %v1655_v36 = vpop.f32.mrb[40].mxu0 }
 0x24b   : >> { %3627 = vrot.lane.b32.xlu0 %v5366_v27, %s4522_s25  ;;  %v3025_v32 = vsel %vm654_vm4, %v3008_v58, %v3010_v25  ;;  %v1656_v11 = vadd.f32 %v1655_v36, %v1565_v53  ;;  %v1657_v14 = vpop.f32.mrb[41].mxu0  ;;  %v1696_v19 = vpop.f32.mrb[40].mxu1 }
 0x24c   : >> { %3633 = vrot.lane.b32.xlu1 %v5371_v44, %s4522_s25  ;;  %3041 = vmatprep.subr.bf16.mxu0 %v3025_v32  ;;  %v1658_v27 = vadd.f32 %v1657_v14, %v1567_v57  ;;  %v1659_v39 = vpop.f32.mrb[42].mxu0  ;;  %v1697_v44 = vadd.f32 %v1696_v19, %v1606_v31  ;;  %v4186_v20 = vpop.f32.mrb[41].mxu1 }
 0x24d   : >> { %v3006_v37 = vpop.permute.xlu0 %3005  ;;  %v1660_v40 = vpop.f32.mrb[43].mxu0 }
 0x24e   : >> { %v3024_v12 = vsel %vm654_vm4, %v3006_v37, %v3008_v58  ;;  %v3012_v38 = vpop.permute.xlu1 %3011  ;;  %v1699_v16 = vpop.f32.mrb[42].mxu1 }
 0x24f   : >> { %v3026_v15 = vsel %vm654_vm4, %v3010_v25, %v3012_v38  ;;  %3637 = vrot.lane.b32.xlu0 %v5378_v51, %s4522_s25  ;;  %3042 = vmatpush1.bf16.msra.mxu0 %v3024_v12  ;;  %v4187_v49 = vpop.f32.mrb[43].mxu1 }
 0x250   : >> { %3639 = vrot.lane.b32.xlu1 %v5383_v52, %s4522_s25  ;;  %4291 = vmatpush3.bf16.msra.mxu1 %v3026_v15 }
 0x251   : >> { %v3016_v23 = vpop.permute.xlu0 %3015  ;;  %4292 = vmatprep.subr.bf16.mxu1 %v4512_v10 }
 0x252   : >> { %v3018_v45 = vpop.permute.xlu1 %3017 }
 0x253   : >> { %3635 = vrot.lane.b32.xlu0 %v5390_v59, %s4522_s25  ;;  %v3028_v51 = vsel %vm654_vm4, %v3016_v23, %v3018_v45 }
 0x254   : >> { %3641 = vrot.lane.b32.xlu1 %v5395_v62, %s4522_s25  ;;  %3043 = vmatprep.subr.bf16.mxu0 %v3028_v51 }
 0x255   : >> { %v3014_v52 = vpop.permute.xlu0 %3013 }
 0x256   : >> { %v3027_v17 = vsel %vm654_vm4, %v3014_v52, %v3016_v23  ;;  %v3020_v18 = vpop.permute.xlu1 %3019 }
 0x257   : >> { %v3029_v50 = vsel %vm654_vm4, %v3018_v45, %v3020_v18  ;;  %3645 = vrot.lane.b32.xlu0 %v5402_v28, %s4522_s25  ;;  %3044 = vmatpush1.bf16.msra.mxu0 %v3027_v17 }
 0x258   : >> { %3647 = vrot.lane.b32.xlu1 %v5407_v29, %s4522_s25  ;;  %4293 = vmatpush3.bf16.msra.mxu1 %v3029_v50  ;;  %v1778_v59 = vpop.f32.mrb[44].mxu0  ;;  %v1819_v55 = vpop.f32.mrb[44].mxu1 }
 0x259   : >> { %v3126_v56 = vpop.permute.xlu0 %3125  ;;  %4298 = vmatprep.subr.bf16.mxu1 %v4512_v10  ;;  %v1825_v62 = vadd.f32 %v1778_v59, %v1656_v11  ;;  %v1780_v41 = vpop.f32.mrb[45].mxu0  ;;  %v1827_v61 = vadd.f32 %v1819_v55, %v1697_v44 }
 0x25a   : >> { %v3128_v26 = vpop.permute.xlu1 %3127  ;;  %3954 = vmatmul.mubr.msk.bf16.vlgmr.msra.gmra.mrb[84].mxu0 %vm322_vm2, %v4594_v3  ;;  %v1826_v22 = vadd.f32 %v1780_v41, %v1658_v27  ;;  %v1782_v43 = vpop.f32.mrb[46].mxu0 }
 0x25b   : >> { %3643 = vrot.lane.b32.xlu0 %v5414_v34, %s4522_s25  ;;  %v3148_v28 = vsel %vm784_vm5, %v3126_v56, %v3128_v26  ;;  %4295 = vmatmul.mubr.msk.bf16.vlgmr.msra.gmra.mrb[84].mxu1 %vm322_vm2, %v4594_v3  ;;  %v1783_v29 = vpop.f32.mrb[47].mxu0  ;;  %v4196_v46 = vpop.f32.mrb[45].mxu1 }
 0x25c   : >> { %3649 = vrot.lane.b32.xlu1 %v5419_v35, %s4522_s25  ;;  %3165 = vmatprep.subr.bf16.mxu0 %v3148_v28  ;;  %v1822_v47 = vpop.f32.mrb[46].mxu1 }
 0x25d   : >> { %v3124_v48 = vpop.permute.xlu0 %3123  ;;  %3197 = vmatprep.mubr.bf16.mxu0 %v4514_v21  ;;  %4304 = vmatprep.mubr.msk.bf16.mxu1 %vm4515_vm0, %v4512_v10  ;;  %v4197_v53 = vpop.f32.mrb[47].mxu1 }
 0x25e   : >> { %v3147_v34 = vsel %vm784_vm5, %v3124_v48, %v3126_v56  ;;  %v3130_v57 = vpop.permute.xlu1 %3129 }
 0x25f   : >> { %v3149_v58 = vsel %vm784_vm5, %v3128_v26, %v3130_v57  ;;  %1412 = vperm.xlu0 %4409, %v4614_v7   ;;  %3166 = vmatpush1.bf16.msra.mxu0 %v3147_v34 }
 0x260   : >> { %4299 = vmatpush3.bf16.msra.mxu1 %v3149_v58 }
 0x261   : >> { %v3134_v24 = vpop.permute.xlu0 %3133  ;;  %4300 = vmatprep.subr.bf16.mxu1 %v4512_v10 }
 0x262   : >> { %v3136_v35 = vpop.permute.xlu1 %3135 }
 0x263   : >> { %v3151_v25 = vsel %vm784_vm5, %v3134_v24, %v3136_v35 }
 0x264   : >> { %3167 = vmatprep.subr.bf16.mxu0 %v3151_v25 }
 0x265   : >> { %v3132_v31 = vpop.permute.xlu0 %3131 }
 0x266   : >> { %v3150_v32 = vsel %vm784_vm5, %v3132_v31, %v3134_v24  ;;  %v3138_v33 = vpop.permute.xlu1 %3137 }
 0x267   : >> { %v3152_v42 = vsel %vm784_vm5, %v3136_v35, %v3138_v33  ;;  %3168 = vmatpush1.bf16.msra.mxu0 %v3150_v32 }
 0x268   : >> { %4301 = vmatpush3.bf16.msra.mxu1 %v3152_v42 }
 0x269   : >> { %v3142_v60 = vpop.permute.xlu0 %3141  ;;  %4302 = vmatprep.subr.bf16.mxu1 %v4512_v10 }
 0x26a   : >> { %v3144_v36 = vpop.permute.xlu1 %3143 }
 0x26b   : >> { %v3154_v37 = vsel %vm784_vm5, %v3142_v60, %v3144_v36 }
 0x26c   : >> { %3169 = vmatprep.subr.bf16.mxu0 %v3154_v37 }
 0x26d   : >> { %v3140_v11 = vpop.permute.xlu0 %3139  ;;  %v1904_v13 = vpop.f32.mrb[48].mxu0 }
 0x26e   : >> { %v3153_v12 = vsel %vm784_vm5, %v3140_v11, %v3142_v60  ;;  %v3146_v38 = vpop.permute.xlu1 %3145  ;;  %v1951_v14 = vadd.f32 %v1904_v13, %v1825_v62  ;;  %v1906_v15 = vpop.f32.mrb[49].mxu0 }
 0x26f   : >> { %v3155_v27 = vsel %vm784_vm5, %v3144_v36, %v3146_v38  ;;  %3170 = vmatpush1.bf16.msra.mxu0 %v3153_v12  ;;  %v1952_v39 = vadd.f32 %v1906_v15, %v1826_v22  ;;  %v1908_v19 = vpop.f32.mrb[50].mxu0  ;;  %v1945_v44 = vpop.f32.mrb[48].mxu1 }
 0x270   : >> { %4303 = vmatpush3.bf16.msra.mxu1 %v3155_v27  ;;  %v1953_v40 = vadd.f32 %v1945_v44, %v1827_v61  ;;  %v1909_v20 = vpop.f32.mrb[51].mxu0  ;;  %v4206_v23 = vpop.f32.mrb[49].mxu1 }
 0x271   : >> { %v3252_v16 = vpop.permute.xlu0 %3251  ;;  %4308 = vmatprep.subr.bf16.mxu1 %v4512_v10  ;;  %v1948_v45 = vpop.f32.mrb[50].mxu1 }
 0x272   : >> { %v3254_v49 = vpop.permute.xlu1 %3253  ;;  %3956 = vmatmul.mubr.msk.bf16.vlgmr.msra.gmra.mrb[88].mxu0 %vm322_vm2, %v4599_v4  ;;  %v4207_v51 = vpop.f32.mrb[51].mxu1 }
 0x273   : >> { %v3274_v52 = vsel %vm914_vm6, %v3252_v16, %v3254_v49  ;;  %4305 = vmatmul.mubr.msk.bf16.vlgmr.msra.gmra.mrb[88].mxu1 %vm322_vm2, %v4599_v4  ;;  %3323 = vmatprep.mubr.bf16.mxu0 %v4514_v21 }
 0x274   : >> { %3291 = vmatprep.subr.bf16.mxu0 %v3274_v52  ;;  %4314 = vmatprep.mubr.msk.bf16.mxu1 %vm4515_vm0, %v4512_v10 }
 0x275   : >> { %v3250_v17 = vpop.permute.xlu0 %3249 }
 0x276   : >> { %v3273_v18 = vsel %vm914_vm6, %v3250_v17, %v3252_v16  ;;  %v3256_v50 = vpop.permute.xlu1 %3255 }
 0x277   : >> { %v3275_v59 = vsel %vm914_vm6, %v3254_v49, %v3256_v50  ;;  %3292 = vmatpush1.bf16.msra.mxu0 %v3273_v18 }
 0x278   : >> { %4309 = vmatpush3.bf16.msra.mxu1 %v3275_v59 }
 0x279   : >> { %v3260_v55 = vpop.permute.xlu0 %3259  ;;  %4310 = vmatprep.subr.bf16.mxu1 %v4512_v10 }
 0x27a   : >> { %v3262_v56 = vpop.permute.xlu1 %3261 }
 0x27b   : >> { %v3277_v62 = vsel %vm914_vm6, %v3260_v55, %v3262_v56 }
 0x27c   : >> { %3293 = vmatprep.subr.bf16.mxu0 %v3277_v62 }
 0x27d   : >> { %v3258_v41 = vpop.permute.xlu0 %3257 }
 0x27e   : >> { %v3276_v61 = vsel %vm914_vm6, %v3258_v41, %v3260_v55  ;;  %v3264_v26 = vpop.permute.xlu1 %3263 }
 0x27f   : >> { %v3278_v22 = vsel %vm914_vm6, %v3262_v56, %v3264_v26  ;;  %3294 = vmatpush1.bf16.msra.mxu0 %v3276_v61 }
 0x280   : >> { %4311 = vmatpush3.bf16.msra.mxu1 %v3278_v22 }
 0x281   : >> { %v3268_v43 = vpop.permute.xlu0 %3267  ;;  %4312 = vmatprep.subr.bf16.mxu1 %v4512_v10 }
 0x282   : >> { %v3270_v28 = vpop.permute.xlu1 %3269 }
 0x283   : >> { %v3280_v29 = vsel %vm914_vm6, %v3268_v43, %v3270_v28 }
 0x284   : >> { %3295 = vmatprep.subr.bf16.mxu0 %v3280_v29 }
 0x285   : >> { %v3266_v46 = vpop.permute.xlu0 %3265  ;;  %v2030_v47 = vpop.f32.mrb[52].mxu0 }
 0x286   : >> { %v3279_v48 = vsel %vm914_vm6, %v3266_v46, %v3268_v43  ;;  %v3272_v53 = vpop.permute.xlu1 %3271  ;;  %v2077_v34 = vadd.f32 %v2030_v47, %v1951_v14  ;;  %v2032_v57 = vpop.f32.mrb[53].mxu0 }
 0x287   : >> { %v3281_v58 = vsel %vm914_vm6, %v3270_v28, %v3272_v53  ;;  %3296 = vmatpush1.bf16.msra.mxu0 %v3279_v48  ;;  %v2078_v24 = vadd.f32 %v2032_v57, %v1952_v39  ;;  %v2034_v35 = vpop.f32.mrb[54].mxu0  ;;  %v2071_v25 = vpop.f32.mrb[52].mxu1 }
 0x288   : >> { %4313 = vmatpush3.bf16.msra.mxu1 %v3281_v58  ;;  %v2079_v31 = vadd.f32 %v2071_v25, %v1953_v40  ;;  %v2035_v32 = vpop.f32.mrb[55].mxu0  ;;  %v4216_v33 = vpop.f32.mrb[53].mxu1 }
 0x289   : >> { %v3378_v42 = vpop.permute.xlu0 %3377  ;;  %4318 = vmatprep.subr.bf16.mxu1 %v4512_v10  ;;  %v2074_v60 = vpop.f32.mrb[54].mxu1 }
 0x28a   : >> { %v3380_v36 = vpop.permute.xlu1 %3379  ;;  %3958 = vmatmul.mubr.msk.bf16.vlgmr.msra.gmra.mrb[92].mxu0 %vm322_vm2, %v4604_v5  ;;  %v4217_v37 = vpop.f32.mrb[55].mxu1 }
 0x28b   : >> { %4315 = vmatmul.mubr.msk.bf16.vlgmr.msra.gmra.mrb[92].mxu1 %vm322_vm2, %v4604_v5  ;;  %v3400_v11 = vsel %vm1044_vm7, %v3378_v42, %v3380_v36  ;;  %3449 = vmatprep.mubr.bf16.mxu0 %v4514_v21 }
 0x28c   : >> { %3417 = vmatprep.subr.bf16.mxu0 %v3400_v11  ;;  %4324 = vmatprep.mubr.msk.bf16.mxu1 %vm4515_vm0, %v4512_v10 }
 0x28d   : >> { %v3376_v13 = vpop.permute.xlu0 %3375 }
 0x28e   : >> { %v3399_v12 = vsel %vm1044_vm7, %v3376_v13, %v3378_v42  ;;  %v3382_v38 = vpop.permute.xlu1 %3381 }
 0x28f   : >> { %v3401_v14 = vsel %vm1044_vm7, %v3380_v36, %v3382_v38  ;;  %3418 = vmatpush1.bf16.msra.mxu0 %v3399_v12 }
 0x290   : >> { %4319 = vmatpush3.bf16.msra.mxu1 %v3401_v14 }
 0x291   : >> { %v3386_v15 = vpop.permute.xlu0 %3385  ;;  %4320 = vmatprep.subr.bf16.mxu1 %v4512_v10 }
 0x292   : >> { %v3388_v27 = vpop.permute.xlu1 %3387 }
 0x293   : >> { %v3403_v39 = vsel %vm1044_vm7, %v3386_v15, %v3388_v27 }
 0x294   : >> { %3419 = vmatprep.subr.bf16.mxu0 %v3403_v39 }
 0x295   : >> { %v3384_v19 = vpop.permute.xlu0 %3383 }
 0x296   : >> { %v3402_v44 = vsel %vm1044_vm7, %v3384_v19, %v3386_v15  ;;  %v3390_v40 = vpop.permute.xlu1 %3389 }
 0x297   : >> { %v3404_v20 = vsel %vm1044_vm7, %v3388_v27, %v3390_v40  ;;  %3420 = vmatpush1.bf16.msra.mxu0 %v3402_v44 }
 0x298   : >> { %4321 = vmatpush3.bf16.msra.mxu1 %v3404_v20 }
 0x299   : >> { %v3394_v23 = vpop.permute.xlu0 %3393  ;;  %4322 = vmatprep.subr.bf16.mxu1 %v4512_v10 }
 0x29a   : >> { %v3396_v16 = vpop.permute.xlu1 %3395 }
 0x29b   : >> { %v3406_v45 = vsel %vm1044_vm7, %v3394_v23, %v3396_v16 }
 0x29c   : >> { %3421 = vmatprep.subr.bf16.mxu0 %v3406_v45 }
 0x29d   : >> { %v3392_v49 = vpop.permute.xlu0 %3391  ;;  %v2156_v51 = vpop.f32.mrb[56].mxu0 }
 0x29e   : >> { %v3405_v52 = vsel %vm1044_vm7, %v3392_v49, %v3394_v23  ;;  %v3398_v17 = vpop.permute.xlu1 %3397  ;;  %v2203_v18 = vadd.f32 %v2156_v51, %v2077_v34  ;;  %v2158_v50 = vpop.f32.mrb[57].mxu0 }
 0x29f   : >> { %v3407_v59 = vsel %vm1044_vm7, %v3396_v16, %v3398_v17  ;;  %3422 = vmatpush1.bf16.msra.mxu0 %v3405_v52  ;;  %v2204_v55 = vadd.f32 %v2158_v50, %v2078_v24  ;;  %v2160_v56 = vpop.f32.mrb[58].mxu0  ;;  %v2197_v62 = vpop.f32.mrb[56].mxu1 }
 0x2a0   : >> { %4323 = vmatpush3.bf16.msra.mxu1 %v3407_v59  ;;  %v2205_v41 = vadd.f32 %v2197_v62, %v2079_v31  ;;  %v2161_v61 = vpop.f32.mrb[59].mxu0  ;;  %v4226_v26 = vpop.f32.mrb[57].mxu1 }
 0x2a1   : >> { %v3504_v22 = vpop.permute.xlu0 %3503  ;;  %4328 = vmatprep.subr.bf16.mxu1 %v4512_v10  ;;  %v2200_v43 = vpop.f32.mrb[58].mxu1 }
 0x2a2   : >> { %v3506_v28 = vpop.permute.xlu1 %3505  ;;  %3960 = vmatmul.mubr.msk.bf16.vlgmr.msra.gmra.mrb[96].mxu0 %vm322_vm2, %v4609_v6  ;;  %v4227_v29 = vpop.f32.mrb[59].mxu1 }
 0x2a3   : >> { %4325 = vmatmul.mubr.msk.bf16.vlgmr.msra.gmra.mrb[96].mxu1 %vm322_vm2, %v4609_v6  ;;  %v3526_v46 = vsel %vm1174_vm8, %v3504_v22, %v3506_v28  ;;  %3575 = vmatprep.mubr.bf16.mxu0 %v4514_v21 }
 0x2a4   : >> { %3543 = vmatprep.subr.bf16.mxu0 %v3526_v46  ;;  %4334 = vmatprep.mubr.msk.bf16.mxu1 %vm4515_vm0, %v4512_v10 }
 0x2a5   : >> { %v3502_v47 = vpop.permute.xlu0 %3501 }
 0x2a6   : >> { %v3525_v48 = vsel %vm1174_vm8, %v3502_v47, %v3504_v22  ;;  %v3508_v53 = vpop.permute.xlu1 %3507 }
 0x2a7   : >> { %v3527_v34 = vsel %vm1174_vm8, %v3506_v28, %v3508_v53  ;;  %3544 = vmatpush1.bf16.msra.mxu0 %v3525_v48 }
 0x2a8   : >> { %4329 = vmatpush3.bf16.msra.mxu1 %v3527_v34 }
 0x2a9   : >> { %v3512_v57 = vpop.permute.xlu0 %3511  ;;  %4330 = vmatprep.subr.bf16.mxu1 %v4512_v10 }
 0x2aa   : >> { %v3514_v58 = vpop.permute.xlu1 %3513 }
 0x2ab   : >> { %v3529_v24 = vsel %vm1174_vm8, %v3512_v57, %v3514_v58 }
 0x2ac   : >> { %3545 = vmatprep.subr.bf16.mxu0 %v3529_v24 }
 0x2ad   : >> { %v3510_v35 = vpop.permute.xlu0 %3509 }
 0x2ae   : >> { %v3528_v25 = vsel %vm1174_vm8, %v3510_v35, %v3512_v57  ;;  %v3516_v31 = vpop.permute.xlu1 %3515 }
 0x2af   : >> { %v3530_v32 = vsel %vm1174_vm8, %v3514_v58, %v3516_v31  ;;  %3546 = vmatpush1.bf16.msra.mxu0 %v3528_v25 }
 0x2b0   : >> { %4331 = vmatpush3.bf16.msra.mxu1 %v3530_v32 }
 0x2b1   : >> { %v3520_v33 = vpop.permute.xlu0 %3519  ;;  %4332 = vmatprep.subr.bf16.mxu1 %v4512_v10 }
 0x2b2   : >> { %v3522_v42 = vpop.permute.xlu1 %3521 }
 0x2b3   : >> { %v3532_v60 = vsel %vm1174_vm8, %v3520_v33, %v3522_v42 }
 0x2b4   : >> { %3547 = vmatprep.subr.bf16.mxu0 %v3532_v60 }
 0x2b5   : >> { %v3518_v36 = vpop.permute.xlu0 %3517  ;;  %v2282_v37 = vpop.f32.mrb[60].mxu0 }
 0x2b6   : >> { %v3531_v11 = vsel %vm1174_vm8, %v3518_v36, %v3520_v33  ;;  %v3524_v13 = vpop.permute.xlu1 %3523  ;;  %v2329_v12 = vadd.f32 %v2282_v37, %v2203_v18  ;;  %v2284_v38 = vpop.f32.mrb[61].mxu0 }
 0x2b7   : >> { %v3533_v14 = vsel %vm1174_vm8, %v3522_v42, %v3524_v13  ;;  %3548 = vmatpush1.bf16.msra.mxu0 %v3531_v11  ;;  %v2330_v15 = vadd.f32 %v2284_v38, %v2204_v55  ;;  %v2286_v27 = vpop.f32.mrb[62].mxu0  ;;  %v2323_v39 = vpop.f32.mrb[60].mxu1 }
 0x2b8   : >> { %4333 = vmatpush3.bf16.msra.mxu1 %v3533_v14  ;;  %v2331_v19 = vadd.f32 %v2323_v39, %v2205_v41  ;;  %v2287_v44 = vpop.f32.mrb[63].mxu0  ;;  %v4236_v40 = vpop.f32.mrb[61].mxu1 }
 0x2b9   : >> { %v3630_v20 = vpop.permute.xlu0 %3629  ;;  %4338 = vmatprep.subr.bf16.mxu1 %v4512_v10  ;;  %v2326_v23 = vpop.f32.mrb[62].mxu1 }
 0x2ba   : >> { %v3632_v16 = vpop.permute.xlu1 %3631  ;;  %3962 = vmatmul.mubr.msk.bf16.vlgmr.msra.gmra.mrb[100].mxu0 %vm322_vm2, %v4619_v8  ;;  %v4237_v45 = vpop.f32.mrb[63].mxu1 }
 0x2bb   : >> { %4335 = vmatmul.mubr.msk.bf16.vlgmr.msra.gmra.mrb[100].mxu1 %vm322_vm2, %v4619_v8  ;;  %v3652_v49 = vsel %vm1304_vm9, %v3630_v20, %v3632_v16  ;;  %3701 = vmatprep.mubr.bf16.mxu0 %v4514_v21 }
 0x2bc   : >> { %3669 = vmatprep.subr.bf16.mxu0 %v3652_v49  ;;  %4344 = vmatprep.mubr.msk.bf16.mxu1 %vm4515_vm0, %v4512_v10 }
 0x2bd   : >> { %v3628_v51 = vpop.permute.xlu0 %3627 }
 0x2be   : >> { %v3651_v52 = vsel %vm1304_vm9, %v3628_v51, %v3630_v20  ;;  %v3634_v17 = vpop.permute.xlu1 %3633 }
 0x2bf   : >> { %v3653_v18 = vsel %vm1304_vm9, %v3632_v16, %v3634_v17  ;;  %3670 = vmatpush1.bf16.msra.mxu0 %v3651_v52 }
 0x2c0   : >> { %4339 = vmatpush3.bf16.msra.mxu1 %v3653_v18 }
 0x2c1   : >> { %v3638_v50 = vpop.permute.xlu0 %3637  ;;  %4340 = vmatprep.subr.bf16.mxu1 %v4512_v10 }
 0x2c2   : >> { %v3640_v59 = vpop.permute.xlu1 %3639 }
 0x2c3   : >> { %v3655_v55 = vsel %vm1304_vm9, %v3638_v50, %v3640_v59 }
 0x2c4   : >> { %3671 = vmatprep.subr.bf16.mxu0 %v3655_v55 }
 0x2c5   : >> { %v3636_v21 = vpop.permute.xlu0 %3635 }
 0x2c6   : >> { %v3654_v56 = vsel %vm1304_vm9, %v3636_v21, %v3638_v50  ;;  %v3642_v62 = vpop.permute.xlu1 %3641 }
 0x2c7   : >> { %v3656_v41 = vsel %vm1304_vm9, %v3640_v59, %v3642_v62  ;;  %3672 = vmatpush1.bf16.msra.mxu0 %v3654_v56 }
 0x2c8   : >> { %4341 = vmatpush3.bf16.msra.mxu1 %v3656_v41 }
 0x2c9   : >> { %v3646_v61 = vpop.permute.xlu0 %3645  ;;  %4342 = vmatprep.subr.bf16.mxu1 %v4512_v10 }
 0x2ca   : >> { %v3648_v26 = vpop.permute.xlu1 %3647 }
 0x2cb   : >> { %v3658_v22 = vsel %vm1304_vm9, %v3646_v61, %v3648_v26 }
 0x2cc   : >> { %3673 = vmatprep.subr.bf16.mxu0 %v3658_v22 }
 0x2cd   : >> { %v3644_v43 = vpop.permute.xlu0 %3643  ;;  %v2408_v28 = vpop.f32.mrb[64].mxu0 }
 0x2ce   : >> { %v3657_v29 = vsel %vm1304_vm9, %v3644_v43, %v3646_v61  ;;  %v3650_v46 = vpop.permute.xlu1 %3649  ;;  %v2455_v47 = vadd.f32 %v2408_v28, %v2329_v12  ;;  %v2410_v48 = vpop.f32.mrb[65].mxu0 }
 0x2cf   : >> { %v3659_v53 = vsel %vm1304_vm9, %v3648_v26, %v3650_v46  ;;  %3674 = vmatpush1.bf16.msra.mxu0 %v3657_v29  ;;  %v2456_v34 = vadd.f32 %v2410_v48, %v2330_v15  ;;  %v2412_v57 = vpop.f32.mrb[66].mxu0  ;;  %v2449_v58 = vpop.f32.mrb[64].mxu1 }
 0x2d0   : >> { %4343 = vmatpush3.bf16.msra.mxu1 %v3659_v53  ;;  %v2457_v10 = vadd.f32 %v2449_v58, %v2331_v19  ;;  %v2413_v24 = vpop.f32.mrb[67].mxu0  ;;  %v4246_v35 = vpop.f32.mrb[65].mxu1 }
 0x2d1   : >> { %v2452_v25 = vpop.f32.mrb[66].mxu1 }
 0x2d2   : >> { %3964 = vmatmul.mubr.msk.bf16.vlgmr.msra.gmra.mrb[104].mxu0 %vm322_vm2, %v4624_v9  ;;  %v4247_v31 = vpop.f32.mrb[67].mxu1 }
 0x2d3   : >> { %4345 = vmatmul.mubr.msk.bf16.vlgmr.msra.gmra.mrb[104].mxu1 %vm322_vm2, %v4624_v9 }
 0x2de   : >> { %v5855_v32 = vpop.permute.xlu0 %1412 }
 0x2df   : >> { %v1415_v33 = vadd.f32 %v5855_v32, %v5631_v54  ;;  %v1416_v42 = vadd.f32 %v5855_v32, %v5636_v63  ;;  %v1417_v60 = vadd.f32 %v5855_v32, %v5640_v30 }
 0x2e1   : >> { %v1418_v36 = vmax.f32 %v1415_v33, 0.0  ;;  %v1419_v37 = vmax.f32 %v1416_v42, 0.0  ;;  %v1420_v11 = vmax.f32 %v1417_v60, 0.0 }
 0x2e3   : >> { %1426 = vst [vmem:[%s1425_s29] sm:$0xff] %v1418_v36  ;;  %1427 = vst [vmem:[%s1425_s29 + $0x8] sm:$0xff] %v1419_v37 }
 0x2e4   : >> { %1428 = vst [vmem:[%s1425_s29 + $0x10] sm:$0xff] %v1420_v11 }
 0x2e5   : >> { %v2534_v13 = vpop.f32.mrb[68].mxu0 }
 0x2e6   : >> { %v2581_v12 = vadd.f32 %v2534_v13, %v2455_v47  ;;  %v2536_v54 = vpop.f32.mrb[69].mxu0  ;;  %v2575_v38 = vpop.f32.mrb[68].mxu1 }
 0x2e7   : >> { %v2582_v14 = vadd.f32 %v2536_v54, %v2456_v34  ;;  %v2583_v63 = vadd.f32 %v2575_v38, %v2457_v10  ;;  %v2538_v15 = vpop.f32.mrb[70].mxu0  ;;  %v4256_v27 = vpop.f32.mrb[69].mxu1 }
 0x2e8   : >> { %v2584_v30 = vadd.f32 %v2581_v12, %v5855_v32  ;;  %v2539_v39 = vpop.f32.mrb[71].mxu0  ;;  %v2578_v19 = vpop.f32.mrb[70].mxu1 }
 0x2e9   : >> { %v2585_v44 = vadd.f32 %v2582_v14, %v5855_v32  ;;  %v2586_v40 = vadd.f32 %v2583_v63, %v5855_v32  ;;  %v4257_v20 = vpop.f32.mrb[71].mxu1 }
 0x2ea   : >> { %v2587_v23 = vmax.f32 %v2584_v30, 0.0 }
 0x2eb   : >> { %v2588_v16 = vmax.f32 %v2585_v44, 0.0  ;;  %v2589_v45 = vmax.f32 %v2586_v40, 0.0 }
 0x2ec   : >> { %2595 = vst [vmem:[%s2594_s19] sm:$0xff] %v2587_v23 }
 0x2ed   : >> { %2596 = vst [vmem:[%s2594_s19 + $0x8] sm:$0xff] %v2588_v16  ;;  %2597 = vst [vmem:[%s2594_s19 + $0x10] sm:$0xff] %v2589_v45 }
 0x2fd   : >> { %v2734_v49 = vpop.f32.mrb[72].mxu0 }
 0x2fe   : >> { %v2736_v51 = vpop.f32.mrb[73].mxu0  ;;  %v2775_v52 = vpop.f32.mrb[72].mxu1 }
 0x2ff   : >> { %v2738_v17 = vpop.f32.mrb[74].mxu0  ;;  %v4266_v18 = vpop.f32.mrb[73].mxu1 }
 0x300   : >> { %v2739_v50 = vpop.f32.mrb[75].mxu0  ;;  %v2778_v59 = vpop.f32.mrb[74].mxu1 }
 0x301   : >> { %v4267_v55 = vpop.f32.mrb[75].mxu1 }
 0x30a   : >> { %v2824_v21 = vpop.f32.mrb[76].mxu0 }
 0x30b   : >> { %v2825_v56 = vadd.f32 %v2824_v21, %v2734_v49  ;;  %v2826_v62 = vpop.f32.mrb[77].mxu0  ;;  %v2865_v41 = vpop.f32.mrb[76].mxu1 }
 0x30c   : >> { %v2827_v61 = vadd.f32 %v2826_v62, %v2736_v51  ;;  %v2828_v26 = vpop.f32.mrb[78].mxu0  ;;  %v2866_v22 = vadd.f32 %v2865_v41, %v2775_v52  ;;  %v4276_v43 = vpop.f32.mrb[77].mxu1 }
 0x30d   : >> { %v2829_v28 = vpop.f32.mrb[79].mxu0  ;;  %v2868_v29 = vpop.f32.mrb[78].mxu1 }
 0x30e   : >> { %v4277_v46 = vpop.f32.mrb[79].mxu1 }
 0x318   : >> { %v2947_v47 = vpop.f32.mrb[80].mxu0  ;;  %v2988_v48 = vpop.f32.mrb[80].mxu1 }
 0x319   : >> { %v2994_v53 = vadd.f32 %v2947_v47, %v2825_v56  ;;  %v2949_v34 = vpop.f32.mrb[81].mxu0  ;;  %v2996_v57 = vadd.f32 %v2988_v48, %v2866_v22  ;;  %v4286_v58 = vpop.f32.mrb[81].mxu1 }
 0x31a   : >> { %v2995_v10 = vadd.f32 %v2949_v34, %v2827_v61  ;;  %v2951_v24 = vpop.f32.mrb[82].mxu0  ;;  %v2991_v35 = vpop.f32.mrb[82].mxu1 }
 0x31b   : >> { %v2952_v25 = vpop.f32.mrb[83].mxu0  ;;  %v4287_v31 = vpop.f32.mrb[83].mxu1 }
 0x32d   : >> { %v3073_v33 = vpop.f32.mrb[84].mxu0 }
 0x32e   : >> { %v3120_v42 = vadd.f32 %v3073_v33, %v2994_v53  ;;  %v3075_v60 = vpop.f32.mrb[85].mxu0  ;;  %v3114_v36 = vpop.f32.mrb[84].mxu1 }
 0x32f   : >> { %v3121_v37 = vadd.f32 %v3075_v60, %v2995_v10  ;;  %v3077_v11 = vpop.f32.mrb[86].mxu0  ;;  %v3122_v13 = vadd.f32 %v3114_v36, %v2996_v57  ;;  %v4296_v12 = vpop.f32.mrb[85].mxu1 }
 0x330   : >> { %v3078_v54 = vpop.f32.mrb[87].mxu0  ;;  %v3117_v38 = vpop.f32.mrb[86].mxu1 }
 0x331   : >> { %v4297_v14 = vpop.f32.mrb[87].mxu1 }
 0x345   : >> { %v3199_v63 = vpop.f32.mrb[88].mxu0 }
 0x346   : >> { %v3246_v15 = vadd.f32 %v3199_v63, %v3120_v42  ;;  %v3201_v27 = vpop.f32.mrb[89].mxu0  ;;  %v3240_v30 = vpop.f32.mrb[88].mxu1 }
 0x347   : >> { %v3247_v39 = vadd.f32 %v3201_v27, %v3121_v37  ;;  %v3248_v19 = vadd.f32 %v3240_v30, %v3122_v13  ;;  %v4306_v44 = vpop.f32.mrb[89].mxu1  ;;  %v3203_v40 = vpop.f32.mrb[90].mxu0 }
 0x348   : >> { %v3243_v20 = vpop.f32.mrb[90].mxu1  ;;  %v3204_v23 = vpop.f32.mrb[91].mxu0 }
 0x349   : >> { %v4307_v16 = vpop.f32.mrb[91].mxu1 }
 0x35d   : >> { %v3325_v45 = vpop.f32.mrb[92].mxu0 }
 0x35e   : >> { %v3372_v49 = vadd.f32 %v3325_v45, %v3246_v15  ;;  %v3366_v51 = vpop.f32.mrb[92].mxu1  ;;  %v3327_v52 = vpop.f32.mrb[93].mxu0 }
 0x35f   : >> { %v3374_v17 = vadd.f32 %v3366_v51, %v3248_v19  ;;  %v3373_v18 = vadd.f32 %v3327_v52, %v3247_v39  ;;  %v4316_v50 = vpop.f32.mrb[93].mxu1  ;;  %v3329_v59 = vpop.f32.mrb[94].mxu0 }
 0x360   : >> { %v3369_v55 = vpop.f32.mrb[94].mxu1  ;;  %v3330_v21 = vpop.f32.mrb[95].mxu0 }
 0x361   : >> { %v4317_v56 = vpop.f32.mrb[95].mxu1 }
 0x375   : >> { %v3451_v62 = vpop.f32.mrb[96].mxu0 }
 0x376   : >> { %v3498_v41 = vadd.f32 %v3451_v62, %v3372_v49  ;;  %v3492_v61 = vpop.f32.mrb[96].mxu1  ;;  %v3453_v26 = vpop.f32.mrb[97].mxu0 }
 0x377   : >> { %v3500_v22 = vadd.f32 %v3492_v61, %v3374_v17  ;;  %v3499_v43 = vadd.f32 %v3453_v26, %v3373_v18  ;;  %v4326_v28 = vpop.f32.mrb[97].mxu1  ;;  %v3455_v29 = vpop.f32.mrb[98].mxu0 }
 0x378   : >> { %v3495_v46 = vpop.f32.mrb[98].mxu1  ;;  %v3456_v47 = vpop.f32.mrb[99].mxu0 }
 0x379   : >> { %v4327_v48 = vpop.f32.mrb[99].mxu1 }
 0x38d   : >> { %v3577_v53 = vpop.f32.mrb[100].mxu0 }
 0x38e   : >> { %v3624_v34 = vadd.f32 %v3577_v53, %v3498_v41  ;;  %v3618_v57 = vpop.f32.mrb[100].mxu1  ;;  %v3579_v58 = vpop.f32.mrb[101].mxu0 }
 0x38f   : >> { %v3626_v10 = vadd.f32 %v3618_v57, %v3500_v22  ;;  %v3625_v24 = vadd.f32 %v3579_v58, %v3499_v43  ;;  %v3581_v35 = vpop.f32.mrb[102].mxu0  ;;  %v4336_v25 = vpop.f32.mrb[101].mxu1 }
 0x390   : >> { %v3582_v31 = vpop.f32.mrb[103].mxu0  ;;  %v3621_v33 = vpop.f32.mrb[102].mxu1 }
 0x391   : >> { %v4337_v42 = vpop.f32.mrb[103].mxu1 }
 0x3a5   : >> { %v3703_v60 = vpop.f32.mrb[104].mxu0 }
 0x3a6   : >> { %v3750_v36 = vadd.f32 %v3703_v60, %v3624_v34  ;;  %v3744_v37 = vpop.f32.mrb[104].mxu1  ;;  %v3705_v11 = vpop.f32.mrb[105].mxu0 }
 0x3a7   : >> { %v3752_v13 = vadd.f32 %v3744_v37, %v3626_v10  ;;  %v3751_v12 = vadd.f32 %v3705_v11, %v3625_v24  ;;  %v4346_v54 = vpop.f32.mrb[105].mxu1  ;;  %v3707_v38 = vpop.f32.mrb[106].mxu0  ;;  %209 = sbr.rel (!%p207_p7) target bundleno = 23 (0x17), region = 73 }
 0x3a8   : >> { %v3753_v14 = vadd.f32 %v3750_v36, %v5855_v32  ;;  %v3747_v63 = vpop.f32.mrb[106].mxu1  ;;  %v3708_v15 = vpop.f32.mrb[107].mxu0 }
 0x3a9   : >> { %v3755_v27 = vadd.f32 %v3752_v13, %v5855_v32  ;;  %v3754_v30 = vadd.f32 %v3751_v12, %v5855_v32  ;;  %v4347_v39 = vpop.f32.mrb[107].mxu1 }
 0x3aa   : >> { %v3756_v19 = vmax.f32 %v3753_v14, 0.0 }
 0x3ab   : >> { %v3758_v44 = vmax.f32 %v3755_v27, 0.0  ;;  %v3757_v40 = vmax.f32 %v3754_v30, 0.0 }
 0x3ac   : >> { %3764 = vst [vmem:[%s3763_s10] sm:$0xff] %v3756_v19 }
 0x3ad   : >> { %3766 = vst [vmem:[%s3763_s10 + $0x10] sm:$0xff] %v3758_v44  ;;  %3765 = vst [vmem:[%s3763_s10 + $0x8] sm:$0xff] %v3757_v40 }
 0x3ae PF: > { %s13_s16 = sadd.s32 1, %s4506_s16   ;;  %s5896_s12 = smov %s4498_s14 }
 0x3af   : > { %p10_p8 = scmp.ge.s32.totalorder %s13_s16, 6   ;;  %s5897_s13 = smov %s4502_s15 }
 0x3b0   : > { %s5898_s14 = smov %s5901_s17  ;;  %s5899_s15 = smov %s5905_s18 }
 0x3b1   :  { %12 = sbr.rel (!%p10_p8) target bundleno = 3 (0x3), region = 84 }

</bundles_post_ra>
